<compile_context>
chip_gen: v6e
topology: v6e:2x2x1
jax: 0.10.0
libtpu: 0.0.40
codegen_flags: <defaults>
</compile_context>

<pallas_src>
import jax
import jax.numpy as jnp
from jax import lax
from jax.experimental import pallas as pl
from jax.experimental.pallas import tpu as pltpu


# ----------------------------------------------------------------------------
# In-kernel helpers (f32 math, bf16 MXU operands)
# ----------------------------------------------------------------------------
def _rmsnorm(x, scale, eps=1e-6):
    ms = jnp.mean(x * x, axis=-1, keepdims=True)
    return x * lax.rsqrt(ms + eps) * scale


def _softmax(s):
    # explicit max/exp/sum; divide goes to the EUP via approximate reciprocal
    m = jnp.max(s, axis=-1, keepdims=True)
    e = jnp.exp(s - m)
    return e * pl.reciprocal(jnp.sum(e, axis=-1, keepdims=True), approx=True)


# ----------------------------------------------------------------------------
# Kernel 1: mol encoder (synthetic per-node linear) fused with mol_proj
# ----------------------------------------------------------------------------
def _mol_enc_kernel(x_ref, w1_ref, b1_ref, w2_ref, b2_ref, o_ref):
    x = x_ref[...]                                                   # (M, Fm) bf16
    h = jnp.dot(x, w1_ref[...], preferred_element_type=jnp.float32) + b1_ref[...]
    h = jnp.dot(h.astype(jnp.bfloat16), w2_ref[...],
                preferred_element_type=jnp.float32) + b2_ref[...]
    o_ref[...] = h.astype(o_ref.dtype)


def fused_mol_encode(x, w1, b1, w2, b2):
    """x: (M, Fm) -> (M, D) f32; mol GNN replaced by a per-node linear."""
    # TODO(synk): real GNN message passing has no clean static-BlockSpec form;
    #             synthetic per-node projection keeps the matmul hot path.
    M, Fm = x.shape
    Hm = w1.shape[1]
    D = w2.shape[1]
    return pl.pallas_call(
        _mol_enc_kernel,
        out_shape=jax.ShapeDtypeStruct((M, D), jnp.float32),
        grid=(1,),
        in_specs=[
            pl.BlockSpec((M, Fm), lambda i: (0, 0)),
            pl.BlockSpec((Fm, Hm), lambda i: (0, 0)),
            pl.BlockSpec((1, Hm), lambda i: (0, 0)),
            pl.BlockSpec((Hm, D), lambda i: (0, 0)),
            pl.BlockSpec((1, D), lambda i: (0, 0)),
        ],
        out_specs=pl.BlockSpec((M, D), lambda i: (0, 0)),
        compiler_params=pltpu.CompilerParams(dimension_semantics=("arbitrary",)),
    )(x.astype(jnp.bfloat16), w1, b1.reshape(1, Hm), w2, b2.reshape(1, D))


# ----------------------------------------------------------------------------
# Kernel 2: transformer encoder layer + encoder->decoder projection epilogue
#            (whole batch in a single grid step; QKV fused; RMSNorm reused)
# ----------------------------------------------------------------------------
def _enc_layer_kernel(x_ref, mask_ref, qkv_w_ref, o_w_ref, norms_ref,
                      w1_ref, b1_ref, w2_ref, b2_ref, ed_w_ref, ed_b_ref, o_ref):
    x = x_ref[...]                                   # (B, S, D) f32
    B, S, D = x.shape
    mask = mask_ref[...]                             # (B, 1, S) f32
    scale = 1.0 / (D ** 0.5)
    bias = (mask - 1.0) * 1e9                        # additive key mask

    n1 = norms_ref[0:1, :]
    n2 = norms_ref[1:2, :]

    # ---- self-attention (pre-norm computed once, fused QKV matmul) ----
    xn = _rmsnorm(x, n1)
    xn_bf = xn.reshape(B * S, D).astype(jnp.bfloat16)
    qkv = jnp.dot(xn_bf, qkv_w_ref[...], preferred_element_type=jnp.float32)
    q = qkv[:, :D].reshape(B, S, D).astype(jnp.bfloat16)
    k = qkv[:, D:2 * D].reshape(B, S, D).astype(jnp.bfloat16)
    v = qkv[:, 2 * D:].reshape(B, S, D).astype(jnp.bfloat16)
    # contraction over last dims -> no explicit k transpose / XLU relayout
    s = jnp.einsum('bqd,bkd->bqk', q, k,
                   preferred_element_type=jnp.float32) * scale + bias
    p = _softmax(s).astype(jnp.bfloat16)
    ctx = jnp.einsum('bqk,bkd->bqd', p, v, preferred_element_type=jnp.float32)
    attn = jnp.dot(ctx.reshape(B * S, D).astype(jnp.bfloat16), o_w_ref[...],
                   preferred_element_type=jnp.float32).reshape(B, S, D)
    h = x + attn

    # ---- FFN ----
    hn_bf = _rmsnorm(h, n2).reshape(B * S, D).astype(jnp.bfloat16)
    hid = jax.nn.relu(
        jnp.dot(hn_bf, w1_ref[...], preferred_element_type=jnp.float32) + b1_ref[...])
    ff = jnp.dot(hid.astype(jnp.bfloat16), w2_ref[...],
                 preferred_element_type=jnp.float32) + b2_ref[...]
    y = h + ff.reshape(B, S, D)

    # ---- fused encoder->decoder projection epilogue ----
    Hd = ed_w_ref.shape[1]
    out = jnp.dot(y.reshape(B * S, D).astype(jnp.bfloat16), ed_w_ref[...],
                  preferred_element_type=jnp.float32) + ed_b_ref[...]
    o_ref[...] = out.reshape(B, S, Hd).astype(o_ref.dtype)


def encoder_layer(x, mask, qkv_w, o_w, norms, w1, b1, w2, b2, ed_w, ed_b):
    B, S, D = x.shape
    F = w1.shape[1]
    Hd = ed_w.shape[1]
    return pl.pallas_call(
        _enc_layer_kernel,
        out_shape=jax.ShapeDtypeStruct((B, S, Hd), jnp.float32),
        grid=(1,),
        in_specs=[
            pl.BlockSpec((B, S, D), lambda i: (0, 0, 0)),
            pl.BlockSpec((B, 1, S), lambda i: (0, 0, 0)),
            pl.BlockSpec((D, 3 * D), lambda i: (0, 0)),
            pl.BlockSpec((D, D), lambda i: (0, 0)),
            pl.BlockSpec((2, D), lambda i: (0, 0)),
            pl.BlockSpec((D, F), lambda i: (0, 0)),
            pl.BlockSpec((1, F), lambda i: (0, 0)),
            pl.BlockSpec((F, D), lambda i: (0, 0)),
            pl.BlockSpec((1, D), lambda i: (0, 0)),
            pl.BlockSpec((D, Hd), lambda i: (0, 0)),
            pl.BlockSpec((1, Hd), lambda i: (0, 0)),
        ],
        out_specs=pl.BlockSpec((B, S, Hd), lambda i: (0, 0, 0)),
        compiler_params=pltpu.CompilerParams(dimension_semantics=("arbitrary",)),
    )(x.astype(jnp.float32), mask.reshape(B, 1, S).astype(jnp.float32),
      qkv_w, o_w, norms, w1, b1.reshape(1, F), w2, b2.reshape(1, D),
      ed_w, ed_b.reshape(1, Hd))


# ----------------------------------------------------------------------------
# Kernel 3: transformer decoder layer (causal self-attn + cross-attn + FFN)
# ----------------------------------------------------------------------------
def _dec_layer_kernel(x_ref, dmask_ref, enc_ref, emask_ref,
                      self_qkv_ref, self_o_ref,
                      cross_q_ref, cross_kv_ref, cross_o_ref,
                      norms_ref, w1_ref, b1_ref, w2_ref, b2_ref, o_ref):
    x = x_ref[...]                                   # (B, Ld, H) f32
    B, Ld, H = x.shape
    enc = enc_ref[...]                               # (B, Se, H) f32
    Se = enc.shape[1]
    dmask = dmask_ref[...]                           # (B, 1, Ld) f32
    emask = emask_ref[...]                           # (B, 1, Se) f32
    scale = 1.0 / (H ** 0.5)

    row = lax.broadcasted_iota(jnp.int32, (1, Ld, Ld), 1)
    col = lax.broadcasted_iota(jnp.int32, (1, Ld, Ld), 2)
    causal = jnp.where(row >= col, 0.0, -1e9)
    self_bias = causal + (dmask - 1.0) * 1e9         # (B, Ld, Ld)
    cross_bias = (emask - 1.0) * 1e9                 # (B, 1, Se)

    n1 = norms_ref[0:1, :]
    n2 = norms_ref[1:2, :]
    n3 = norms_ref[2:3, :]

    # ---- causal self-attention (fused QKV) ----
    xn_bf = _rmsnorm(x, n1).reshape(B * Ld, H).astype(jnp.bfloat16)
    qkv = jnp.dot(xn_bf, self_qkv_ref[...], preferred_element_type=jnp.float32)
    q = qkv[:, :H].reshape(B, Ld, H).astype(jnp.bfloat16)
    k = qkv[:, H:2 * H].reshape(B, Ld, H).astype(jnp.bfloat16)
    v = qkv[:, 2 * H:].reshape(B, Ld, H).astype(jnp.bfloat16)
    s = jnp.einsum('bqd,bkd->bqk', q, k,
                   preferred_element_type=jnp.float32) * scale + self_bias
    p = _softmax(s).astype(jnp.bfloat16)
    ctx = jnp.einsum('bqk,bkd->bqd', p, v, preferred_element_type=jnp.float32)
    h = x + jnp.dot(ctx.reshape(B * Ld, H).astype(jnp.bfloat16), self_o_ref[...],
                    preferred_element_type=jnp.float32).reshape(B, Ld, H)

    # ---- cross-attention over encoder memory (fused KV) ----
    hn_bf = _rmsnorm(h, n2).reshape(B * Ld, H).astype(jnp.bfloat16)
    enc_bf = enc.reshape(B * Se, H).astype(jnp.bfloat16)
    q2 = jnp.dot(hn_bf, cross_q_ref[...],
                 preferred_element_type=jnp.float32).reshape(B, Ld, H).astype(jnp.bfloat16)
    kv2 = jnp.dot(enc_bf, cross_kv_ref[...], preferred_element_type=jnp.float32)
    k2 = kv2[:, :H].reshape(B, Se, H).astype(jnp.bfloat16)
    v2 = kv2[:, H:].reshape(B, Se, H).astype(jnp.bfloat16)
    s2 = jnp.einsum('bqd,bkd->bqk', q2, k2,
                    preferred_element_type=jnp.float32) * scale + cross_bias
    p2 = _softmax(s2).astype(jnp.bfloat16)
    ctx2 = jnp.einsum('bqk,bkd->bqd', p2, v2, preferred_element_type=jnp.float32)
    h = h + jnp.dot(ctx2.reshape(B * Ld, H).astype(jnp.bfloat16), cross_o_ref[...],
                    preferred_element_type=jnp.float32).reshape(B, Ld, H)

    # ---- FFN ----
    ffn_in = _rmsnorm(h, n3).reshape(B * Ld, H).astype(jnp.bfloat16)
    hid = jax.nn.relu(
        jnp.dot(ffn_in, w1_ref[...], preferred_element_type=jnp.float32) + b1_ref[...])
    ff = jnp.dot(hid.astype(jnp.bfloat16), w2_ref[...],
                 preferred_element_type=jnp.float32) + b2_ref[...]
    o_ref[...] = (h + ff.reshape(B, Ld, H)).astype(o_ref.dtype)


def decoder_layer(x, dmask, enc, emask, self_qkv, self_o,
                  cross_q, cross_kv, cross_o, norms, w1, b1, w2, b2):
    B, Ld, H = x.shape
    Se = enc.shape[1]
    F = w1.shape[1]
    return pl.pallas_call(
        _dec_layer_kernel,
        out_shape=jax.ShapeDtypeStruct((B, Ld, H), jnp.float32),
        grid=(1,),
        in_specs=[
            pl.BlockSpec((B, Ld, H), lambda i: (0, 0, 0)),
            pl.BlockSpec((B, 1, Ld), lambda i: (0, 0, 0)),
            pl.BlockSpec((B, Se, H), lambda i: (0, 0, 0)),
            pl.BlockSpec((B, 1, Se), lambda i: (0, 0, 0)),
            pl.BlockSpec((H, 3 * H), lambda i: (0, 0)),
            pl.BlockSpec((H, H), lambda i: (0, 0)),
            pl.BlockSpec((H, H), lambda i: (0, 0)),
            pl.BlockSpec((H, 2 * H), lambda i: (0, 0)),
            pl.BlockSpec((H, H), lambda i: (0, 0)),
            pl.BlockSpec((3, H), lambda i: (0, 0)),
            pl.BlockSpec((H, F), lambda i: (0, 0)),
            pl.BlockSpec((1, F), lambda i: (0, 0)),
            pl.BlockSpec((F, H), lambda i: (0, 0)),
            pl.BlockSpec((1, H), lambda i: (0, 0)),
        ],
        out_specs=pl.BlockSpec((B, Ld, H), lambda i: (0, 0, 0)),
        compiler_params=pltpu.CompilerParams(dimension_semantics=("arbitrary",)),
    )(x.astype(jnp.float32), dmask.reshape(B, 1, Ld).astype(jnp.float32),
      enc.astype(jnp.float32), emask.reshape(B, 1, Se).astype(jnp.float32),
      self_qkv, self_o, cross_q, cross_kv, cross_o, norms,
      w1, b1.reshape(1, F), w2, b2.reshape(1, H))


# ----------------------------------------------------------------------------
# Kernel 4: LM head fused with masked cross-entropy (vocab tiled on the grid,
#            online logsumexp accumulators, SMEM scalar loss output)
# ----------------------------------------------------------------------------
def _lmhead_ce_kernel(h_ref, w_ref, b_ref, lab_ref,
                      logits_ref, loss_ref, m_scr, l_scr, p_scr):
    j = pl.program_id(0)

    @pl.when(j == 0)
    def _():
        m_scr[...] = jnp.full(m_scr.shape, -1e30, jnp.float32)
        l_scr[...] = jnp.zeros(l_scr.shape, jnp.float32)
        p_scr[...] = jnp.zeros(p_scr.shape, jnp.float32)

    # logits for this vocab tile (lane-dense (M, 128) block)
    logits = jnp.dot(h_ref[...], w_ref[...],
                     preferred_element_type=jnp.float32) + b_ref[...]
    logits_ref[...] = logits.astype(logits_ref.dtype)

    # online logsumexp across vocab tiles
    M, TV = logits.shape
    m_prev = m_scr[...]
    m_new = jnp.maximum(m_prev, jnp.max(logits, axis=-1, keepdims=True))
    alpha = jnp.exp(m_prev - m_new)
    l_scr[...] = alpha * l_scr[...] + jnp.sum(jnp.exp(logits - m_new),
                                              axis=-1, keepdims=True)
    m_scr[...] = m_new

    # picked (label) logit contribution from this vocab tile
    col = lax.broadcasted_iota(jnp.int32, (M, TV), 1) + j * TV
    onehot = (lab_ref[...] == col).astype(jnp.float32)
    p_scr[...] = p_scr[...] + jnp.sum(onehot * logits, axis=-1, keepdims=True)

    @pl.when(j == pl.num_programs(0) - 1)
    def _():
        valid = (lab_ref[...] != -100).astype(jnp.float32)
        lse = m_scr[...] + jnp.log(l_scr[...])
        loss_sum = jnp.sum((lse - p_scr[...]) * valid)
        cnt = jnp.sum(valid)
        loss_ref[0, 0] = loss_sum / jnp.maximum(cnt, 1.0)


def lm_head_ce(dec_h, lm_w, lm_b, labels, tv=128):
    """dec_h: (B, La, Hd), labels: (B, La) int32 (-100 = ignore).
       Returns (mean masked CE loss scalar, logits (B, La, V))."""
    B, La, Hd = dec_h.shape
    M = B * La
    V = lm_w.shape[1]
    assert V % tv == 0
    nvt = V // tv
    h = dec_h.reshape(M, Hd).astype(jnp.bfloat16)
    lab = labels.reshape(M, 1).astype(jnp.int32)
    logits, loss = pl.pallas_call(
        _lmhead_ce_kernel,
        out_shape=(jax.ShapeDtypeStruct((M, V), jnp.float32),
                   jax.ShapeDtypeStruct((1, 1), jnp.float32)),
        grid=(nvt,),
        in_specs=[
            pl.BlockSpec((M, Hd), lambda j: (0, 0)),
            pl.BlockSpec((Hd, tv), lambda j: (0, j)),
            pl.BlockSpec((1, tv), lambda j: (0, j)),
            pl.BlockSpec((M, 1), lambda j: (0, 0)),
        ],
        out_specs=(
            pl.BlockSpec((M, tv), lambda j: (0, j)),
            pl.BlockSpec((1, 1), lambda j: (0, 0),
                         memory_space=pltpu.MemorySpace.SMEM),
        ),
        scratch_shapes=[pltpu.VMEM((M, 1), jnp.float32),
                        pltpu.VMEM((M, 1), jnp.float32),
                        pltpu.VMEM((M, 1), jnp.float32)],
        compiler_params=pltpu.CompilerParams(dimension_semantics=("arbitrary",)),
    )(h, lm_w, lm_b.reshape(1, V), lab)
    return loss[0, 0], logits.reshape(B, La, V)


# ----------------------------------------------------------------------------
# JAX glue (exact _concat_mol_text semantics, embedding lookups, label masking)
# ----------------------------------------------------------------------------
def concat_mol_text(mol_embeds, mol_mask, text_embeds, text_mask):
    """Per example i with n = num_atoms[i]:
       out = [text[0], mol[:n], text[1:], mol[n:]]  (same for the masks)."""
    B, Nm, D = mol_embeds.shape
    Lq = text_embeds.shape[1]
    S = Nm + Lq
    num_atoms = jnp.sum(mol_mask, axis=1).astype(jnp.int32)
    p = jnp.arange(S)

    def one(me, mm, te, tm, n):
        is_first = p == 0
        is_mol_front = (p >= 1) & (p <= n)
        is_text_rest = (p >= n + 1) & (p <= n + Lq - 1)
        src_idx = jnp.where(
            is_first, 0,
            jnp.where(is_mol_front, p - 1,
                      jnp.where(is_text_rest, p - n, p - Lq)))
        is_mol = is_mol_front | (p >= n + Lq)
        mol_g = jnp.take(me, src_idx, axis=0)
        txt_g = jnp.take(te, src_idx, axis=0)
        emb = jnp.where(is_mol[:, None], mol_g, txt_g)
        msk = jnp.where(is_mol, jnp.take(mm, src_idx), jnp.take(tm, src_idx))
        return emb, msk

    return jax.vmap(one)(mol_embeds, mol_mask, text_embeds, text_mask, num_atoms)


def molqa_forward(params, mol_feats, mol_mask, q_ids, q_mask, ans_ids, ans_mask):
    B, Nm, Fm = mol_feats.shape
    Lq = q_ids.shape[1]
    La = ans_ids.shape[1]

    # fused mol encoder + mol_proj (one kernel, no HBM round-trip in between)
    mol_embeds = fused_mol_encode(mol_feats.reshape(B * Nm, Fm),
                                  params['mol_enc_w'], params['mol_enc_b'],
                                  params['mol_proj_w'], params['mol_proj_b']
                                  ).reshape(B, Nm, -1)

    # text input embeddings
    text_embeds = jnp.take(params['text_emb'], q_ids, axis=0)

    # interleave mol / question tokens (exact _concat_mol_text semantics)
    embeds, attn_mask = concat_mol_text(mol_embeds,
                                        mol_mask.astype(jnp.float32),
                                        text_embeds,
                                        q_mask.astype(jnp.float32))

    # fused text-encoder layer + encoder->decoder projection
    enc_proj = encoder_layer(embeds, attn_mask,
                             params['enc_qkv_w'], params['enc_o_w'],
                             params['enc_norms'],
                             params['enc_w1'], params['enc_b1'],
                             params['enc_w2'], params['enc_b2'],
                             params['ed_proj_w'], params['ed_proj_b'])

    # labels = answer ids masked with -100 where attention_mask == 0
    labels = jnp.where(ans_mask == 0, -100, ans_ids).astype(jnp.int32)

    # decoder inputs = shift-right of the answer ids (teacher forcing); the
    # reference module passes the un-shifted answer.attention_mask as the
    # decoder_attention_mask, which is what we use here as well.
    dec_input_ids = jnp.concatenate(
        [jnp.zeros((B, 1), ans_ids.dtype), ans_ids[:, :-1]], axis=1)
    dec_in = jnp.take(params['dec_emb'], dec_input_ids, axis=0)

    dec_h = decoder_layer(dec_in, ans_mask.astype(jnp.float32),
                          enc_proj, attn_mask,
                          params['dec_self_qkv_w'], params['dec_self_o_w'],
                          params['dec_cross_q_w'], params['dec_cross_kv_w'],
                          params['dec_cross_o_w'], params['dec_norms'],
                          params['dec_w1'], params['dec_b1'],
                          params['dec_w2'], params['dec_b2'])

    # fused LM head + masked cross-entropy
    loss, logits = lm_head_ce(dec_h, params['lm_w'], params['lm_b'], labels)
    return loss, logits


# ----------------------------------------------------------------------------
# Deterministic parameter init (weights bf16 for MXU/DMA, scales/biases f32)
# ----------------------------------------------------------------------------
def init_params(key, Fm=128, Hm=128, D=128, Hd=128, Fenc=256, Fdec=256,
                Vt=256, Vd=256):
    keys = jax.random.split(key, 18)

    def w(k, shape, scale=0.05):
        return (scale * jax.random.normal(k, shape, jnp.float32)).astype(jnp.bfloat16)

    def b(shape):
        return jnp.zeros(shape, jnp.float32)

    return dict(
        mol_enc_w=w(keys[0], (Fm, Hm)), mol_enc_b=b((Hm,)),
        mol_proj_w=w(keys[1], (Hm, D)), mol_proj_b=b((D,)),
        text_emb=(0.05 * jax.random.normal(keys[2], (Vt, D))).astype(jnp.float32),
        enc_qkv_w=w(keys[3], (D, 3 * D)), enc_o_w=w(keys[4], (D, D)),
        enc_norms=jnp.ones((2, D), jnp.float32),
        enc_w1=w(keys[5], (D, Fenc)), enc_b1=b((Fenc,)),
        enc_w2=w(keys[6], (Fenc, D)), enc_b2=b((D,)),
        ed_proj_w=w(keys[7], (D, Hd)), ed_proj_b=b((Hd,)),
        dec_emb=(0.05 * jax.random.normal(keys[8], (Vd, Hd))).astype(jnp.float32),
        dec_self_qkv_w=w(keys[9], (Hd, 3 * Hd)), dec_self_o_w=w(keys[10], (Hd, Hd)),
        dec_cross_q_w=w(keys[11], (Hd, Hd)),
        dec_cross_kv_w=w(keys[12], (Hd, 2 * Hd)),
        dec_cross_o_w=w(keys[13], (Hd, Hd)),
        dec_norms=jnp.ones((3, Hd), jnp.float32),
        dec_w1=w(keys[14], (Hd, Fdec)), dec_b1=b((Fdec,)),
        dec_w2=w(keys[15], (Fdec, Hd)), dec_b2=b((Hd,)),
        lm_w=w(keys[16], (Hd, Vd)), lm_b=b((Vd,)),
    )


if __name__ == "__main__":
    root = jax.random.PRNGKey(0)
    pkey, dkey = jax.random.split(root)
    params = init_params(pkey)

    B, Nm, Fm, Lq, La, V = 2, 8, 128, 8, 8, 256
    k1, k2, k3 = jax.random.split(dkey, 3)

    mol_feats = jax.random.normal(k1, (B, Nm, Fm), jnp.float32)
    num_atoms = jnp.array([5, 8], jnp.int32)
    mol_mask = (jnp.arange(Nm)[None, :] < num_atoms[:, None]).astype(jnp.float32)

    q_ids = jax.random.randint(k2, (B, Lq), 0, V)
    q_mask = jnp.ones((B, Lq), jnp.float32).at[0, 6:].set(0.0)

    ans_ids = jax.random.randint(k3, (B, La), 0, V)
    ans_mask = jnp.ones((B, La), jnp.int32).at[1, 5:].set(0)

    fwd = jax.jit(molqa_forward)
    loss, logits = fwd(params, mol_feats, mol_mask, q_ids, q_mask, ans_ids, ans_mask)
    jax.block_until_ready((loss, logits))
    assert logits.shape == (B, La, V)
    assert bool(jnp.isfinite(loss))
    print("KERNEL_OK")
</pallas_src>

<mosaic_0001>
module attributes {stable_mosaic.version = 11 : i64} {
  func.func @_mol_enc_kernel(%arg0: i32, %arg1: memref<16x128xbf16, #tpu.memory_space<vmem>>, %arg2: memref<128x128xbf16, #tpu.memory_space<vmem>>, %arg3: memref<1x128xf32, #tpu.memory_space<vmem>>, %arg4: memref<128x128xbf16, #tpu.memory_space<vmem>>, %arg5: memref<1x128xf32, #tpu.memory_space<vmem>>, %arg6: memref<16x128xf32, #tpu.memory_space<vmem>>) attributes {dimension_semantics = [#tpu.dimension_semantics<arbitrary>], iteration_bounds = array<i64: 1>, scalar_prefetch = 0 : i64, scratch_operands = 0 : i64, tpu.core_type = #tpu.core_type<tc>, window_params = [{pipeline_mode = #tpu.pipeline_mode<synchronous>, transform_indices = @transform_0, window_bounds = array<i64: 16, 128>}, {pipeline_mode = #tpu.pipeline_mode<synchronous>, transform_indices = @transform_1, window_bounds = array<i64: 128, 128>}, {pipeline_mode = #tpu.pipeline_mode<synchronous>, transform_indices = @transform_2, window_bounds = array<i64: 1, 128>}, {pipeline_mode = #tpu.pipeline_mode<synchronous>, transform_indices = @transform_3, window_bounds = array<i64: 128, 128>}, {pipeline_mode = #tpu.pipeline_mode<synchronous>, transform_indices = @transform_4, window_bounds = array<i64: 1, 128>}, {pipeline_mode = #tpu.pipeline_mode<synchronous>, transform_indices = @transform_5, window_bounds = array<i64: 16, 128>}]} {
    %c0 = arith.constant 0 : index
    %c0_0 = arith.constant 0 : index
    %0 = vector.load %arg1[%c0, %c0_0] : memref<16x128xbf16, #tpu.memory_space<vmem>>, vector<16x128xbf16>
    %c0_1 = arith.constant 0 : index
    %c0_2 = arith.constant 0 : index
    %1 = vector.load %arg2[%c0_1, %c0_2] : memref<128x128xbf16, #tpu.memory_space<vmem>>, vector<128x128xbf16>
    %cst = arith.constant dense<0.000000e+00> : vector<16x128xf32>
    %2 = tpu.matmul %0, %1, %cst {dimension_numbers = #tpu.dot_dimension_numbers<[1], [0], [0], [1], [0, 0, 1, 1], [], []>} : vector<16x128xbf16>, vector<128x128xbf16>, vector<16x128xf32> -> vector<16x128xf32>
    %c0_3 = arith.constant 0 : index
    %c0_4 = arith.constant 0 : index
    %3 = vector.load %arg3[%c0_3, %c0_4] : memref<1x128xf32, #tpu.memory_space<vmem>>, vector<1x128xf32>
    %4 = vector.broadcast %3 : vector<1x128xf32> to vector<16x128xf32>
    %5 = arith.addf %2, %4 : vector<16x128xf32>
    %6 = arith.truncf %5 : vector<16x128xf32> to vector<16x128xbf16>
    %c0_5 = arith.constant 0 : index
    %c0_6 = arith.constant 0 : index
    %7 = vector.load %arg4[%c0_5, %c0_6] : memref<128x128xbf16, #tpu.memory_space<vmem>>, vector<128x128xbf16>
    %cst_7 = arith.constant dense<0.000000e+00> : vector<16x128xf32>
    %8 = tpu.matmul %6, %7, %cst_7 {dimension_numbers = #tpu.dot_dimension_numbers<[1], [0], [0], [1], [0, 0, 1, 1], [], []>} : vector<16x128xbf16>, vector<128x128xbf16>, vector<16x128xf32> -> vector<16x128xf32>
    %c0_8 = arith.constant 0 : index
    %c0_9 = arith.constant 0 : index
    %9 = vector.load %arg5[%c0_8, %c0_9] : memref<1x128xf32, #tpu.memory_space<vmem>>, vector<1x128xf32>
    %10 = vector.broadcast %9 : vector<1x128xf32> to vector<16x128xf32>
    %11 = arith.addf %8, %10 : vector<16x128xf32>
    %c0_10 = arith.constant 0 : index
    %c0_11 = arith.constant 0 : index
    %12 = vector.load %arg6[%c0_10, %c0_11] : memref<16x128xf32, #tpu.memory_space<vmem>>, vector<16x128xf32>
    tpu.vector_store %arg6[%c0_10, %c0_11], %11 {strides = array<i32>} : memref<16x128xf32, #tpu.memory_space<vmem>>, vector<16x128xf32>,
    return
  }
  func.func @transform_0(%arg0: i32) -> (i32, i32) {
    %c0_i32 = arith.constant 0 : i32
    %c0_i32_0 = arith.constant 0 : i32
    %c0_i32_1 = arith.constant 0 : i32
    return %c0_i32, %c0_i32_0 : i32, i32
  }
  func.func @transform_1(%arg0: i32) -> (i32, i32) {
    %c0_i32 = arith.constant 0 : i32
    %c0_i32_0 = arith.constant 0 : i32
    %c0_i32_1 = arith.constant 0 : i32
    return %c0_i32, %c0_i32_0 : i32, i32
  }
  func.func @transform_2(%arg0: i32) -> (i32, i32) {
    %c0_i32 = arith.constant 0 : i32
    %c0_i32_0 = arith.constant 0 : i32
    %c0_i32_1 = arith.constant 0 : i32
    return %c0_i32, %c0_i32_0 : i32, i32
  }
  func.func @transform_3(%arg0: i32) -> (i32, i32) {
    %c0_i32 = arith.constant 0 : i32
    %c0_i32_0 = arith.constant 0 : i32
    %c0_i32_1 = arith.constant 0 : i32
    return %c0_i32, %c0_i32_0 : i32, i32
  }
  func.func @transform_4(%arg0: i32) -> (i32, i32) {
    %c0_i32 = arith.constant 0 : i32
    %c0_i32_0 = arith.constant 0 : i32
    %c0_i32_1 = arith.constant 0 : i32
    return %c0_i32, %c0_i32_0 : i32, i32
  }
  func.func @transform_5(%arg0: i32) -> (i32, i32) {
    %c0_i32 = arith.constant 0 : i32
    %c0_i32_0 = arith.constant 0 : i32
    %c0_i32_1 = arith.constant 0 : i32
    return %c0_i32, %c0_i32_0 : i32, i32
  }
}

module attributes {stable_mosaic.version = 11 : i64} {
  func.func @_enc_layer_kernel(%arg0: i32, %arg1: memref<2x16x128xf32, #tpu.memory_space<vmem>>, %arg2: memref<2x1x16xf32, #tpu.memory_space<vmem>>, %arg3: memref<128x384xbf16, #tpu.memory_space<vmem>>, %arg4: memref<128x128xbf16, #tpu.memory_space<vmem>>, %arg5: memref<2x128xf32, #tpu.memory_space<vmem>>, %arg6: memref<128x256xbf16, #tpu.memory_space<vmem>>, %arg7: memref<1x256xf32, #tpu.memory_space<vmem>>, %arg8: memref<256x128xbf16, #tpu.memory_space<vmem>>, %arg9: memref<1x128xf32, #tpu.memory_space<vmem>>, %arg10: memref<128x128xbf16, #tpu.memory_space<vmem>>, %arg11: memref<1x128xf32, #tpu.memory_space<vmem>>, %arg12: memref<2x16x128xf32, #tpu.memory_space<vmem>>) attributes {dimension_semantics = [#tpu.dimension_semantics<arbitrary>], iteration_bounds = array<i64: 1>, scalar_prefetch = 0 : i64, scratch_operands = 0 : i64, tpu.core_type = #tpu.core_type<tc>, window_params = [{pipeline_mode = #tpu.pipeline_mode<synchronous>, transform_indices = @transform_0, window_bounds = array<i64: 2, 16, 128>}, {pipeline_mode = #tpu.pipeline_mode<synchronous>, transform_indices = @transform_1, window_bounds = array<i64: 2, 1, 16>}, {pipeline_mode = #tpu.pipeline_mode<synchronous>, transform_indices = @transform_2, window_bounds = array<i64: 128, 384>}, {pipeline_mode = #tpu.pipeline_mode<synchronous>, transform_indices = @transform_3, window_bounds = array<i64: 128, 128>}, {pipeline_mode = #tpu.pipeline_mode<synchronous>, transform_indices = @transform_4, window_bounds = array<i64: 2, 128>}, {pipeline_mode = #tpu.pipeline_mode<synchronous>, transform_indices = @transform_5, window_bounds = array<i64: 128, 256>}, {pipeline_mode = #tpu.pipeline_mode<synchronous>, transform_indices = @transform_6, window_bounds = array<i64: 1, 256>}, {pipeline_mode = #tpu.pipeline_mode<synchronous>, transform_indices = @transform_7, window_bounds = array<i64: 256, 128>}, {pipeline_mode = #tpu.pipeline_mode<synchronous>, transform_indices = @transform_8, window_bounds = array<i64: 1, 128>}, {pipeline_mode = #tpu.pipeline_mode<synchronous>, transform_indices = @transform_9, window_bounds = array<i64: 128, 128>}, {pipeline_mode = #tpu.pipeline_mode<synchronous>, transform_indices = @transform_10, window_bounds = array<i64: 1, 128>}, {pipeline_mode = #tpu.pipeline_mode<synchronous>, transform_indices = @transform_11, window_bounds = array<i64: 2, 16, 128>}]} {
    %c0 = arith.constant 0 : index
    %c0_0 = arith.constant 0 : index
    %c0_1 = arith.constant 0 : index
    %0 = vector.load %arg1[%c0, %c0_0, %c0_1] : memref<2x16x128xf32, #tpu.memory_space<vmem>>, vector<2x16x128xf32>
    %c0_2 = arith.constant 0 : index
    %c0_3 = arith.constant 0 : index
    %c0_4 = arith.constant 0 : index
    %1 = vector.load %arg2[%c0_2, %c0_3, %c0_4] : memref<2x1x16xf32, #tpu.memory_space<vmem>>, vector<2x1x16xf32>
    %cst = arith.constant 1.000000e+00 : f32
    %2 = vector.broadcast %cst : f32 to vector<2x1x16xf32>
    %3 = arith.subf %1, %2 : vector<2x1x16xf32>
    %cst_5 = arith.constant 1.000000e+09 : f32
    %4 = vector.broadcast %cst_5 : f32 to vector<2x1x16xf32>
    %5 = arith.mulf %3, %4 : vector<2x1x16xf32>
    %c0_6 = arith.constant 0 : index
    %c0_7 = arith.constant 0 : index
    %6 = vector.load %arg5[%c0_6, %c0_7] : memref<2x128xf32, #tpu.memory_space<vmem>>, vector<1x128xf32>
    %c1 = arith.constant 1 : index
    %c0_8 = arith.constant 0 : index
    %7 = vector.load %arg5[%c1, %c0_8] : memref<2x128xf32, #tpu.memory_space<vmem>>, vector<1x128xf32>
    %8 = arith.mulf %0, %0 : vector<2x16x128xf32>
    %cst_9 = arith.constant dense<0.000000e+00> : vector<2x16xf32>
    %9 = vector.multi_reduction <add>, %8, %cst_9 [2] : vector<2x16x128xf32> to vector<2x16xf32>
    %10 = vector.shape_cast %9 : vector<2x16xf32> to vector<2x16x1xf32>
    %cst_10 = arith.constant 1.280000e+02 : f32
    %11 = vector.broadcast %cst_10 : f32 to vector<2x16x1xf32>
    %12 = arith.divf %10, %11 : vector<2x16x1xf32>
    %cst_11 = arith.constant 9.99999997E-7 : f32
    %13 = vector.broadcast %cst_11 : f32 to vector<2x16x1xf32>
    %14 = arith.addf %12, %13 : vector<2x16x1xf32>
    %15 = math.rsqrt %14 : vector<2x16x1xf32>
    %16 = vector.broadcast %15 : vector<2x16x1xf32> to vector<2x16x128xf32>
    %17 = arith.mulf %0, %16 : vector<2x16x128xf32>
    %18 = vector.shape_cast %6 : vector<1x128xf32> to vector<1x1x128xf32>
    %19 = vector.broadcast %18 : vector<1x1x128xf32> to vector<2x16x128xf32>
    %20 = arith.mulf %17, %19 : vector<2x16x128xf32>
    %21 = vector.shape_cast %20 : vector<2x16x128xf32> to vector<32x128xf32>
    %22 = arith.truncf %21 : vector<32x128xf32> to vector<32x128xbf16>
    %c0_12 = arith.constant 0 : index
    %c0_13 = arith.constant 0 : index
    %23 = vector.load %arg3[%c0_12, %c0_13] : memref<128x384xbf16, #tpu.memory_space<vmem>>, vector<128x384xbf16>
    %cst_14 = arith.constant dense<0.000000e+00> : vector<32x384xf32>
    %24 = tpu.matmul %22, %23, %cst_14 {dimension_numbers = #tpu.dot_dimension_numbers<[1], [0], [0], [1], [0, 0, 1, 1], [], []>} : vector<32x128xbf16>, vector<128x384xbf16>, vector<32x384xf32> -> vector<32x384xf32>
    %25 = vector.extract_strided_slice %24 {offsets = [0, 0], sizes = [32, 128], strides = [1, 1]} : vector<32x384xf32> to vector<32x128xf32>
    %26 = vector.shape_cast %25 : vector<32x128xf32> to vector<2x16x128xf32>
    %27 = arith.truncf %26 : vector<2x16x128xf32> to vector<2x16x128xbf16>
    %28 = vector.extract_strided_slice %24 {offsets = [0, 128], sizes = [32, 128], strides = [1, 1]} : vector<32x384xf32> to vector<32x128xf32>
    %29 = vector.shape_cast %28 : vector<32x128xf32> to vector<2x16x128xf32>
    %30 = arith.truncf %29 : vector<2x16x128xf32> to vector<2x16x128xbf16>
    %31 = vector.extract_strided_slice %24 {offsets = [0, 256], sizes = [32, 128], strides = [1, 1]} : vector<32x384xf32> to vector<32x128xf32>
    %32 = vector.shape_cast %31 : vector<32x128xf32> to vector<2x16x128xf32>
    %33 = arith.truncf %32 : vector<2x16x128xf32> to vector<2x16x128xbf16>
    "tpu.trace_start"() <{level = 10 : i32, message = "bqd,bkd->bqk"}> : () -> ()
    %cst_15 = arith.constant dense<0.000000e+00> : vector<2x16x16xf32>
    %34 = tpu.matmul %27, %30, %cst_15 {dimension_numbers = #tpu.dot_dimension_numbers<[2], [2], [1], [1], [0, 0, 0, 1, 1, 1], [0], [0]>} : vector<2x16x128xbf16>, vector<2x16x128xbf16>, vector<2x16x16xf32> -> vector<2x16x16xf32>
    "tpu.trace_stop"() : () -> ()
    %cst_16 = arith.constant 0.0883883461 : f32
    %35 = vector.broadcast %cst_16 : f32 to vector<2x16x16xf32>
    %36 = arith.mulf %34, %35 : vector<2x16x16xf32>
    %37 = vector.broadcast %5 : vector<2x1x16xf32> to vector<2x16x16xf32>
    %38 = arith.addf %36, %37 : vector<2x16x16xf32>
    %cst_17 = arith.constant dense<0xFF800000> : vector<2x16xf32>
    %39 = vector.multi_reduction <maximumf>, %38, %cst_17 [2] : vector<2x16x16xf32> to vector<2x16xf32>
    %40 = vector.shape_cast %39 : vector<2x16xf32> to vector<2x16x1xf32>
    %41 = vector.broadcast %40 : vector<2x16x1xf32> to vector<2x16x16xf32>
    %42 = arith.subf %38, %41 : vector<2x16x16xf32>
    %43 = math.exp %42 : vector<2x16x16xf32>
    %cst_18 = arith.constant dense<0.000000e+00> : vector<2x16xf32>
    %44 = vector.multi_reduction <add>, %43, %cst_18 [2] : vector<2x16x16xf32> to vector<2x16xf32>
    %45 = vector.shape_cast %44 : vector<2x16xf32> to vector<2x16x1xf32>
    %46 = tpu.reciprocal %45 {approx = true} : vector<2x16x1xf32> -> vector<2x16x1xf32>
    %47 = vector.broadcast %46 : vector<2x16x1xf32> to vector<2x16x16xf32>
    %48 = arith.mulf %43, %47 : vector<2x16x16xf32>
    %49 = arith.truncf %48 : vector<2x16x16xf32> to vector<2x16x16xbf16>
    "tpu.trace_start"() <{level = 10 : i32, message = "bqk,bkd->bqd"}> : () -> ()
    %cst_19 = arith.constant dense<0.000000e+00> : vector<2x16x128xf32>
    %50 = tpu.matmul %49, %33, %cst_19 {dimension_numbers = #tpu.dot_dimension_numbers<[2], [1], [1], [2], [0, 0, 0, 1, 1, 2], [0], [0]>} : vector<2x16x16xbf16>, vector<2x16x128xbf16>, vector<2x16x128xf32> -> vector<2x16x128xf32>
    "tpu.trace_stop"() : () -> ()
    %51 = vector.shape_cast %50 : vector<2x16x128xf32> to vector<32x128xf32>
    %52 = arith.truncf %51 : vector<32x128xf32> to vector<32x128xbf16>
    %c0_20 = arith.constant 0 : index
    %c0_21 = arith.constant 0 : index
    %53 = vector.load %arg4[%c0_20, %c0_21] : memref<128x128xbf16, #tpu.memory_space<vmem>>, vector<128x128xbf16>
    %cst_22 = arith.constant dense<0.000000e+00> : vector<32x128xf32>
    %54 = tpu.matmul %52, %53, %cst_22 {dimension_numbers = #tpu.dot_dimension_numbers<[1], [0], [0], [1], [0, 0, 1, 1], [], []>} : vector<32x128xbf16>, vector<128x128xbf16>, vector<32x128xf32> -> vector<32x128xf32>
    %55 = vector.shape_cast %54 : vector<32x128xf32> to vector<2x16x128xf32>
    %56 = arith.addf %0, %55 : vector<2x16x128xf32>
    %57 = arith.mulf %56, %56 : vector<2x16x128xf32>
    %cst_23 = arith.constant dense<0.000000e+00> : vector<2x16xf32>
    %58 = vector.multi_reduction <add>, %57, %cst_23 [2] : vector<2x16x128xf32> to vector<2x16xf32>
    %59 = vector.shape_cast %58 : vector<2x16xf32> to vector<2x16x1xf32>
    %cst_24 = arith.constant 1.280000e+02 : f32
    %60 = vector.broadcast %cst_24 : f32 to vector<2x16x1xf32>
    %61 = arith.divf %59, %60 : vector<2x16x1xf32>
    %cst_25 = arith.constant 9.99999997E-7 : f32
    %62 = vector.broadcast %cst_25 : f32 to vector<2x16x1xf32>
    %63 = arith.addf %61, %62 : vector<2x16x1xf32>
    %64 = math.rsqrt %63 : vector<2x16x1xf32>
    %65 = vector.broadcast %64 : vector<2x16x1xf32> to vector<2x16x128xf32>
    %66 = arith.mulf %56, %65 : vector<2x16x128xf32>
    %67 = vector.shape_cast %7 : vector<1x128xf32> to vector<1x1x128xf32>
    %68 = vector.broadcast %67 : vector<1x1x128xf32> to vector<2x16x128xf32>
    %69 = arith.mulf %66, %68 : vector<2x16x128xf32>
    %70 = vector.shape_cast %69 : vector<2x16x128xf32> to vector<32x128xf32>
    %71 = arith.truncf %70 : vector<32x128xf32> to vector<32x128xbf16>
    %c0_26 = arith.constant 0 : index
    %c0_27 = arith.constant 0 : index
    %72 = vector.load %arg6[%c0_26, %c0_27] : memref<128x256xbf16, #tpu.memory_space<vmem>>, vector<128x256xbf16>
    %cst_28 = arith.constant dense<0.000000e+00> : vector<32x256xf32>
    %73 = tpu.matmul %71, %72, %cst_28 {dimension_numbers = #tpu.dot_dimension_numbers<[1], [0], [0], [1], [0, 0, 1, 1], [], []>} : vector<32x128xbf16>, vector<128x256xbf16>, vector<32x256xf32> -> vector<32x256xf32>
    %c0_29 = arith.constant 0 : index
    %c0_30 = arith.constant 0 : index
    %74 = vector.load %arg7[%c0_29, %c0_30] : memref<1x256xf32, #tpu.memory_space<vmem>>, vector<1x256xf32>
    %75 = vector.broadcast %74 : vector<1x256xf32> to vector<32x256xf32>
    %76 = arith.addf %73, %75 : vector<32x256xf32>
    %cst_31 = arith.constant 0.000000e+00 : f32
    %77 = vector.broadcast %cst_31 : f32 to vector<32x256xf32>
    %78 = arith.maximumf %76, %77 : vector<32x256xf32>
    %79 = arith.truncf %78 : vector<32x256xf32> to vector<32x256xbf16>
    %c0_32 = arith.constant 0 : index
    %c0_33 = arith.constant 0 : index
    %80 = vector.load %arg8[%c0_32, %c0_33] : memref<256x128xbf16, #tpu.memory_space<vmem>>, vector<256x128xbf16>
    %cst_34 = arith.constant dense<0.000000e+00> : vector<32x128xf32>
    %81 = tpu.matmul %79, %80, %cst_34 {dimension_numbers = #tpu.dot_dimension_numbers<[1], [0], [0], [1], [0, 0, 1, 1], [], []>} : vector<32x256xbf16>, vector<256x128xbf16>, vector<32x128xf32> -> vector<32x128xf32>
    %c0_35 = arith.constant 0 : index
    %c0_36 = arith.constant 0 : index
    %82 = vector.load %arg9[%c0_35, %c0_36] : memref<1x128xf32, #tpu.memory_space<vmem>>, vector<1x128xf32>
    %83 = vector.broadcast %82 : vector<1x128xf32> to vector<32x128xf32>
    %84 = arith.addf %81, %83 : vector<32x128xf32>
    %85 = vector.shape_cast %84 : vector<32x128xf32> to vector<2x16x128xf32>
    %86 = arith.addf %56, %85 : vector<2x16x128xf32>
    %87 = vector.shape_cast %86 : vector<2x16x128xf32> to vector<32x128xf32>
    %88 = arith.truncf %87 : vector<32x128xf32> to vector<32x128xbf16>
    %c0_37 = arith.constant 0 : index
    %c0_38 = arith.constant 0 : index
    %89 = vector.load %arg10[%c0_37, %c0_38] : memref<128x128xbf16, #tpu.memory_space<vmem>>, vector<128x128xbf16>
    %cst_39 = arith.constant dense<0.000000e+00> : vector<32x128xf32>
    %90 = tpu.matmul %88, %89, %cst_39 {dimension_numbers = #tpu.dot_dimension_numbers<[1], [0], [0], [1], [0, 0, 1, 1], [], []>} : vector<32x128xbf16>, vector<128x128xbf16>, vector<32x128xf32> -> vector<32x128xf32>
    %c0_40 = arith.constant 0 : index
    %c0_41 = arith.constant 0 : index
    %91 = vector.load %arg11[%c0_40, %c0_41] : memref<1x128xf32, #tpu.memory_space<vmem>>, vector<1x128xf32>
    %92 = vector.broadcast %91 : vector<1x128xf32> to vector<32x128xf32>
    %93 = arith.addf %90, %92 : vector<32x128xf32>
    %94 = vector.shape_cast %93 : vector<32x128xf32> to vector<2x16x128xf32>
    %c0_42 = arith.constant 0 : index
    %c0_43 = arith.constant 0 : index
    %c0_44 = arith.constant 0 : index
    %95 = vector.load %arg12[%c0_42, %c0_43, %c0_44] : memref<2x16x128xf32, #tpu.memory_space<vmem>>, vector<2x16x128xf32>
    tpu.vector_store %arg12[%c0_42, %c0_43, %c0_44], %94 {strides = array<i32>} : memref<2x16x128xf32, #tpu.memory_space<vmem>>, vector<2x16x128xf32>,
    return
  }
  func.func @transform_0(%arg0: i32) -> (i32, i32, i32) {
    %c0_i32 = arith.constant 0 : i32
    %c0_i32_0 = arith.constant 0 : i32
    %c0_i32_1 = arith.constant 0 : i32
    %c0_i32_2 = arith.constant 0 : i32
    return %c0_i32, %c0_i32_0, %c0_i32_1 : i32, i32, i32
  }
  func.func @transform_1(%arg0: i32) -> (i32, i32, i32) {
    %c0_i32 = arith.constant 0 : i32
    %c0_i32_0 = arith.constant 0 : i32
    %c0_i32_1 = arith.constant 0 : i32
    %c0_i32_2 = arith.constant 0 : i32
    return %c0_i32, %c0_i32_0, %c0_i32_1 : i32, i32, i32
  }
  func.func @transform_2(%arg0: i32) -> (i32, i32) {
    %c0_i32 = arith.constant 0 : i32
    %c0_i32_0 = arith.constant 0 : i32
    %c0_i32_1 = arith.constant 0 : i32
    return %c0_i32, %c0_i32_0 : i32, i32
  }
  func.func @transform_3(%arg0: i32) -> (i32, i32) {
    %c0_i32 = arith.constant 0 : i32
    %c0_i32_0 = arith.constant 0 : i32
    %c0_i32_1 = arith.constant 0 : i32
    return %c0_i32, %c0_i32_0 : i32, i32
  }
  func.func @transform_4(%arg0: i32) -> (i32, i32) {
    %c0_i32 = arith.constant 0 : i32
    %c0_i32_0 = arith.constant 0 : i32
    %c0_i32_1 = arith.constant 0 : i32
    return %c0_i32, %c0_i32_0 : i32, i32
  }
  func.func @transform_5(%arg0: i32) -> (i32, i32) {
    %c0_i32 = arith.constant 0 : i32
    %c0_i32_0 = arith.constant 0 : i32
    %c0_i32_1 = arith.constant 0 : i32
    return %c0_i32, %c0_i32_0 : i32, i32
  }
  func.func @transform_6(%arg0: i32) -> (i32, i32) {
    %c0_i32 = arith.constant 0 : i32
    %c0_i32_0 = arith.constant 0 : i32
    %c0_i32_1 = arith.constant 0 : i32
    return %c0_i32, %c0_i32_0 : i32, i32
  }
  func.func @transform_7(%arg0: i32) -> (i32, i32) {
    %c0_i32 = arith.constant 0 : i32
    %c0_i32_0 = arith.constant 0 : i32
    %c0_i32_1 = arith.constant 0 : i32
    return %c0_i32, %c0_i32_0 : i32, i32
  }
  func.func @transform_8(%arg0: i32) -> (i32, i32) {
    %c0_i32 = arith.constant 0 : i32
    %c0_i32_0 = arith.constant 0 : i32
    %c0_i32_1 = arith.constant 0 : i32
    return %c0_i32, %c0_i32_0 : i32, i32
  }
  func.func @transform_9(%arg0: i32) -> (i32, i32) {
    %c0_i32 = arith.constant 0 : i32
    %c0_i32_0 = arith.constant 0 : i32
    %c0_i32_1 = arith.constant 0 : i32
    return %c0_i32, %c0_i32_0 : i32, i32
  }
  func.func @transform_10(%arg0: i32) -> (i32, i32) {
    %c0_i32 = arith.constant 0 : i32
    %c0_i32_0 = arith.constant 0 : i32
    %c0_i32_1 = arith.constant 0 : i32
    return %c0_i32, %c0_i32_0 : i32, i32
  }
  func.func @transform_11(%arg0: i32) -> (i32, i32, i32) {
    %c0_i32 = arith.constant 0 : i32
    %c0_i32_0 = arith.constant 0 : i32
    %c0_i32_1 = arith.constant 0 : i32
    %c0_i32_2 = arith.constant 0 : i32
    return %c0_i32, %c0_i32_0, %c0_i32_1 : i32, i32, i32
  }
}

module attributes {stable_mosaic.version = 11 : i64} {
  func.func @_lmhead_ce_kernel(%arg0: i32, %arg1: memref<16x128xbf16, #tpu.memory_space<vmem>>, %arg2: memref<128x128xbf16, #tpu.memory_space<vmem>>, %arg3: memref<1x128xf32, #tpu.memory_space<vmem>>, %arg4: memref<16x1xi32, #tpu.memory_space<vmem>>, %arg5: memref<16x128xf32, #tpu.memory_space<vmem>>, %arg6: memref<1x1xf32, #tpu.memory_space<smem>>, %arg7: memref<16x1xf32, #tpu.memory_space<vmem>>, %arg8: memref<16x1xf32, #tpu.memory_space<vmem>>, %arg9: memref<16x1xf32, #tpu.memory_space<vmem>>) attributes {dimension_semantics = [#tpu.dimension_semantics<arbitrary>], iteration_bounds = array<i64: 2>, scalar_prefetch = 0 : i64, scratch_operands = 3 : i64, tpu.core_type = #tpu.core_type<tc>, window_params = [{pipeline_mode = #tpu.pipeline_mode<synchronous>, transform_indices = @transform_0, window_bounds = array<i64: 16, 128>}, {transform_indices = @transform_1, window_bounds = array<i64: 128, 128>}, {transform_indices = @transform_2, window_bounds = array<i64: 1, 128>}, {pipeline_mode = #tpu.pipeline_mode<synchronous>, transform_indices = @transform_3, window_bounds = array<i64: 16, 1>}, {transform_indices = @transform_4, window_bounds = array<i64: 16, 128>}, {transform_indices = @transform_5, window_bounds = array<i64: 1, 1>}]} {
    %c0_i32 = arith.constant 0 : i32
    %0 = arith.cmpi eq, %arg0, %c0_i32 : i32
    %1 = arith.extui %0 : i1 to i32
    %c0_i32_0 = arith.constant 0 : i32
    %2 = arith.cmpi ne, %1, %c0_i32_0 : i32
    scf.if %2 {
      %cst_26 = arith.constant -1.000000e+30 : f32
      %44 = vector.broadcast %cst_26 : f32 to vector<16x1xf32>
      %c0_27 = arith.constant 0 : index
      %c0_28 = arith.constant 0 : index
      %45 = vector.load %arg7[%c0_27, %c0_28] : memref<16x1xf32, #tpu.memory_space<vmem>>, vector<16x1xf32>
      tpu.vector_store %arg7[%c0_27, %c0_28], %44 {strides = array<i32>} : memref<16x1xf32, #tpu.memory_space<vmem>>, vector<16x1xf32>,
      %cst_29 = arith.constant 0.000000e+00 : f32
      %46 = vector.broadcast %cst_29 : f32 to vector<16x1xf32>
      %c0_30 = arith.constant 0 : index
      %c0_31 = arith.constant 0 : index
      %47 = vector.load %arg8[%c0_30, %c0_31] : memref<16x1xf32, #tpu.memory_space<vmem>>, vector<16x1xf32>
      tpu.vector_store %arg8[%c0_30, %c0_31], %46 {strides = array<i32>} : memref<16x1xf32, #tpu.memory_space<vmem>>, vector<16x1xf32>,
      %cst_32 = arith.constant 0.000000e+00 : f32
      %48 = vector.broadcast %cst_32 : f32 to vector<16x1xf32>
      %c0_33 = arith.constant 0 : index
      %c0_34 = arith.constant 0 : index
      %49 = vector.load %arg9[%c0_33, %c0_34] : memref<16x1xf32, #tpu.memory_space<vmem>>, vector<16x1xf32>
      tpu.vector_store %arg9[%c0_33, %c0_34], %48 {strides = array<i32>} : memref<16x1xf32, #tpu.memory_space<vmem>>, vector<16x1xf32>,
    } else {
    }
    %c0 = arith.constant 0 : index
    %c0_1 = arith.constant 0 : index
    %3 = vector.load %arg1[%c0, %c0_1] : memref<16x128xbf16, #tpu.memory_space<vmem>>, vector<16x128xbf16>
    %c0_2 = arith.constant 0 : index
    %c0_3 = arith.constant 0 : index
    %4 = vector.load %arg2[%c0_2, %c0_3] : memref<128x128xbf16, #tpu.memory_space<vmem>>, vector<128x128xbf16>
    %cst = arith.constant dense<0.000000e+00> : vector<16x128xf32>
    %5 = tpu.matmul %3, %4, %cst {dimension_numbers = #tpu.dot_dimension_numbers<[1], [0], [0], [1], [0, 0, 1, 1], [], []>} : vector<16x128xbf16>, vector<128x128xbf16>, vector<16x128xf32> -> vector<16x128xf32>
    %c0_4 = arith.constant 0 : index
    %c0_5 = arith.constant 0 : index
    %6 = vector.load %arg3[%c0_4, %c0_5] : memref<1x128xf32, #tpu.memory_space<vmem>>, vector<1x128xf32>
    %7 = vector.broadcast %6 : vector<1x128xf32> to vector<16x128xf32>
    %8 = arith.addf %5, %7 : vector<16x128xf32>
    %c0_6 = arith.constant 0 : index
    %c0_7 = arith.constant 0 : index
    %9 = vector.load %arg5[%c0_6, %c0_7] : memref<16x128xf32, #tpu.memory_space<vmem>>, vector<16x128xf32>
    tpu.vector_store %arg5[%c0_6, %c0_7], %8 {strides = array<i32>} : memref<16x128xf32, #tpu.memory_space<vmem>>, vector<16x128xf32>,
    %c0_8 = arith.constant 0 : index
    %c0_9 = arith.constant 0 : index
    %10 = vector.load %arg7[%c0_8, %c0_9] : memref<16x1xf32, #tpu.memory_space<vmem>>, vector<16x1xf32>
    %cst_10 = arith.constant dense<0xFF800000> : vector<16xf32>
    %11 = vector.multi_reduction <maximumf>, %8, %cst_10 [1] : vector<16x128xf32> to vector<16xf32>
    %12 = vector.shape_cast %11 : vector<16xf32> to vector<16x1xf32>
    %13 = arith.maximumf %10, %12 : vector<16x1xf32>
    %14 = arith.subf %10, %13 : vector<16x1xf32>
    %15 = math.exp %14 : vector<16x1xf32>
    %c0_11 = arith.constant 0 : index
    %c0_12 = arith.constant 0 : index
    %16 = vector.load %arg8[%c0_11, %c0_12] : memref<16x1xf32, #tpu.memory_space<vmem>>, vector<16x1xf32>
    %17 = arith.mulf %15, %16 : vector<16x1xf32>
    %18 = vector.broadcast %13 : vector<16x1xf32> to vector<16x128xf32>
    %19 = arith.subf %8, %18 : vector<16x128xf32>
    %20 = math.exp %19 : vector<16x128xf32>
    %cst_13 = arith.constant dense<0.000000e+00> : vector<16xf32>
    %21 = vector.multi_reduction <add>, %20, %cst_13 [1] : vector<16x128xf32> to vector<16xf32>
    %22 = vector.shape_cast %21 : vector<16xf32> to vector<16x1xf32>
    %23 = arith.addf %17, %22 : vector<16x1xf32>
    %c0_14 = arith.constant 0 : index
    %c0_15 = arith.constant 0 : index
    %24 = vector.load %arg8[%c0_14, %c0_15] : memref<16x1xf32, #tpu.memory_space<vmem>>, vector<16x1xf32>
    tpu.vector_store %arg8[%c0_14, %c0_15], %23 {strides = array<i32>} : memref<16x1xf32, #tpu.memory_space<vmem>>, vector<16x1xf32>,
    %c0_16 = arith.constant 0 : index
    %c0_17 = arith.constant 0 : index
    %25 = vector.load %arg7[%c0_16, %c0_17] : memref<16x1xf32, #tpu.memory_space<vmem>>, vector<16x1xf32>
    tpu.vector_store %arg7[%c0_16, %c0_17], %13 {strides = array<i32>} : memref<16x1xf32, #tpu.memory_space<vmem>>, vector<16x1xf32>,
    %26 = tpu.iota {dimensions = array<i32: 1>} : vector<16x128xi32>
    %c128_i32 = arith.constant 128 : i32
    %27 = arith.muli %arg0, %c128_i32 : i32
    %28 = vector.broadcast %27 : i32 to vector<16x128xi32>
    %29 = arith.addi %26, %28 : vector<16x128xi32>
    %c0_18 = arith.constant 0 : index
    %c0_19 = arith.constant 0 : index
    %30 = vector.load %arg4[%c0_18, %c0_19] : memref<16x1xi32, #tpu.memory_space<vmem>>, vector<16x1xi32>
    %31 = vector.broadcast %30 : vector<16x1xi32> to vector<16x128xi32>
    %32 = arith.cmpi eq, %31, %29 : vector<16x128xi32>
    %33 = arith.extui %32 : vector<16x128xi1> to vector<16x128xi32>
    %34 = arith.sitofp %33 : vector<16x128xi32> to vector<16x128xf32>
    %c0_20 = arith.constant 0 : index
    %c0_21 = arith.constant 0 : index
    %35 = vector.load %arg9[%c0_20, %c0_21] : memref<16x1xf32, #tpu.memory_space<vmem>>, vector<16x1xf32>
    %36 = arith.mulf %34, %8 : vector<16x128xf32>
    %cst_22 = arith.constant dense<0.000000e+00> : vector<16xf32>
    %37 = vector.multi_reduction <add>, %36, %cst_22 [1] : vector<16x128xf32> to vector<16xf32>
    %38 = vector.shape_cast %37 : vector<16xf32> to vector<16x1xf32>
    %39 = arith.addf %35, %38 : vector<16x1xf32>
    %c0_23 = arith.constant 0 : index
    %c0_24 = arith.constant 0 : index
    %40 = vector.load %arg9[%c0_23, %c0_24] : memref<16x1xf32, #tpu.memory_space<vmem>>, vector<16x1xf32>
    tpu.vector_store %arg9[%c0_23, %c0_24], %39 {strides = array<i32>} : memref<16x1xf32, #tpu.memory_space<vmem>>, vector<16x1xf32>,
    %c1_i32 = arith.constant 1 : i32
    %41 = arith.cmpi eq, %arg0, %c1_i32 : i32
    %42 = arith.extui %41 : i1 to i32
    %c0_i32_25 = arith.constant 0 : i32
    %43 = arith.cmpi ne, %42, %c0_i32_25 : i32
    scf.if %43 {
      %c0_26 = arith.constant 0 : index
      %c0_27 = arith.constant 0 : index
      %44 = vector.load %arg4[%c0_26, %c0_27] : memref<16x1xi32, #tpu.memory_space<vmem>>, vector<16x1xi32>
      %c-100_i32 = arith.constant -100 : i32
      %45 = vector.broadcast %c-100_i32 : i32 to vector<16x1xi32>
      %46 = arith.cmpi ne, %44, %45 : vector<16x1xi32>
      %47 = arith.extui %46 : vector<16x1xi1> to vector<16x1xi32>
      %48 = arith.sitofp %47 : vector<16x1xi32> to vector<16x1xf32>
      %c0_28 = arith.constant 0 : index
      %c0_29 = arith.constant 0 : index
      %49 = vector.load %arg7[%c0_28, %c0_29] : memref<16x1xf32, #tpu.memory_space<vmem>>, vector<16x1xf32>
      %c0_30 = arith.constant 0 : index
      %c0_31 = arith.constant 0 : index
      %50 = vector.load %arg8[%c0_30, %c0_31] : memref<16x1xf32, #tpu.memory_space<vmem>>, vector<16x1xf32>
      %51 = math.log %50 : vector<16x1xf32>
      %52 = arith.addf %49, %51 : vector<16x1xf32>
      %c0_32 = arith.constant 0 : index
      %c0_33 = arith.constant 0 : index
      %53 = vector.load %arg9[%c0_32, %c0_33] : memref<16x1xf32, #tpu.memory_space<vmem>>, vector<16x1xf32>
      %54 = arith.subf %52, %53 : vector<16x1xf32>
      %55 = arith.mulf %54, %48 : vector<16x1xf32>
      %56 = vector.shape_cast %55 : vector<16x1xf32> to vector<1x16x1xf32>
      %cst_34 = arith.constant dense<0.000000e+00> : vector<1xf32>
      %57 = vector.multi_reduction <add>, %56, %cst_34 [1, 2] : vector<1x16x1xf32> to vector<1xf32>
      %58 = vector.shape_cast %57 : vector<1xf32> to vector<1x1x1xf32>
      %59 = vector.extract %58[0, 0, 0] : f32 from vector<1x1x1xf32>
      %60 = vector.shape_cast %48 : vector<16x1xf32> to vector<1x16x1xf32>
      %cst_35 = arith.constant dense<0.000000e+00> : vector<1xf32>
      %61 = vector.multi_reduction <add>, %60, %cst_35 [1, 2] : vector<1x16x1xf32> to vector<1xf32>
      %62 = vector.shape_cast %61 : vector<1xf32> to vector<1x1x1xf32>
      %63 = vector.extract %62[0, 0, 0] : f32 from vector<1x1x1xf32>
      %cst_36 = arith.constant 1.000000e+00 : f32
      %64 = arith.maximumf %63, %cst_36 : f32
      %65 = arith.divf %59, %64 : f32
      %c0_37 = arith.constant 0 : index
      %c0_38 = arith.constant 0 : index
      %66 = memref.load %arg6[%c0_37, %c0_38] : memref<1x1xf32, #tpu.memory_space<smem>>
      memref.store %65, %arg6[%c0_37, %c0_38] : memref<1x1xf32, #tpu.memory_space<smem>>
    } else {
    }
    return
  }
  func.func @transform_0(%arg0: i32) -> (i32, i32) {
    %c0_i32 = arith.constant 0 : i32
    %c0_i32_0 = arith.constant 0 : i32
    %c0_i32_1 = arith.constant 0 : i32
    return %c0_i32, %c0_i32_0 : i32, i32
  }
  func.func @transform_1(%arg0: i32) -> (i32, i32) {
    %c0_i32 = arith.constant 0 : i32
    %c0_i32_0 = arith.constant 0 : i32
    return %c0_i32, %arg0 : i32, i32
  }
  func.func @transform_2(%arg0: i32) -> (i32, i32) {
    %c0_i32 = arith.constant 0 : i32
    %c0_i32_0 = arith.constant 0 : i32
    return %c0_i32, %arg0 : i32, i32
  }
  func.func @transform_3(%arg0: i32) -> (i32, i32) {
    %c0_i32 = arith.constant 0 : i32
    %c0_i32_0 = arith.constant 0 : i32
    %c0_i32_1 = arith.constant 0 : i32
    return %c0_i32, %c0_i32_0 : i32, i32
  }
  func.func @transform_4(%arg0: i32) -> (i32, i32) {
    %c0_i32 = arith.constant 0 : i32
    %c0_i32_0 = arith.constant 0 : i32
    return %c0_i32, %arg0 : i32, i32
  }
  func.func @transform_5(%arg0: i32) -> (i32, i32) {
    %c0_i32 = arith.constant 0 : i32
    %c0_i32_0 = arith.constant 0 : i32
    %c0_i32_1 = arith.constant 0 : i32
    return %c0_i32, %c0_i32_0 : i32, i32
  }
}

module attributes {stable_mosaic.version = 11 : i64} {
  func.func @_dec_layer_kernel(%arg0: i32, %arg1: memref<2x8x128xf32, #tpu.memory_space<vmem>>, %arg2: memref<2x1x8xf32, #tpu.memory_space<vmem>>, %arg3: memref<2x16x128xf32, #tpu.memory_space<vmem>>, %arg4: memref<2x1x16xf32, #tpu.memory_space<vmem>>, %arg5: memref<128x384xbf16, #tpu.memory_space<vmem>>, %arg6: memref<128x128xbf16, #tpu.memory_space<vmem>>, %arg7: memref<128x128xbf16, #tpu.memory_space<vmem>>, %arg8: memref<128x256xbf16, #tpu.memory_space<vmem>>, %arg9: memref<128x128xbf16, #tpu.memory_space<vmem>>, %arg10: memref<3x128xf32, #tpu.memory_space<vmem>>, %arg11: memref<128x256xbf16, #tpu.memory_space<vmem>>, %arg12: memref<1x256xf32, #tpu.memory_space<vmem>>, %arg13: memref<256x128xbf16, #tpu.memory_space<vmem>>, %arg14: memref<1x128xf32, #tpu.memory_space<vmem>>, %arg15: memref<2x8x128xf32, #tpu.memory_space<vmem>>) attributes {dimension_semantics = [#tpu.dimension_semantics<arbitrary>], iteration_bounds = array<i64: 1>, scalar_prefetch = 0 : i64, scratch_operands = 0 : i64, tpu.core_type = #tpu.core_type<tc>, window_params = [{pipeline_mode = #tpu.pipeline_mode<synchronous>, transform_indices = @transform_0, window_bounds = array<i64: 2, 8, 128>}, {pipeline_mode = #tpu.pipeline_mode<synchronous>, transform_indices = @transform_1, window_bounds = array<i64: 2, 1, 8>}, {pipeline_mode = #tpu.pipeline_mode<synchronous>, transform_indices = @transform_2, window_bounds = array<i64: 2, 16, 128>}, {pipeline_mode = #tpu.pipeline_mode<synchronous>, transform_indices = @transform_3, window_bounds = array<i64: 2, 1, 16>}, {pipeline_mode = #tpu.pipeline_mode<synchronous>, transform_indices = @transform_4, window_bounds = array<i64: 128, 384>}, {pipeline_mode = #tpu.pipeline_mode<synchronous>, transform_indices = @transform_5, window_bounds = array<i64: 128, 128>}, {pipeline_mode = #tpu.pipeline_mode<synchronous>, transform_indices = @transform_6, window_bounds = array<i64: 128, 128>}, {pipeline_mode = #tpu.pipeline_mode<synchronous>, transform_indices = @transform_7, window_bounds = array<i64: 128, 256>}, {pipeline_mode = #tpu.pipeline_mode<synchronous>, transform_indices = @transform_8, window_bounds = array<i64: 128, 128>}, {pipeline_mode = #tpu.pipeline_mode<synchronous>, transform_indices = @transform_9, window_bounds = array<i64: 3, 128>}, {pipeline_mode = #tpu.pipeline_mode<synchronous>, transform_indices = @transform_10, window_bounds = array<i64: 128, 256>}, {pipeline_mode = #tpu.pipeline_mode<synchronous>, transform_indices = @transform_11, window_bounds = array<i64: 1, 256>}, {pipeline_mode = #tpu.pipeline_mode<synchronous>, transform_indices = @transform_12, window_bounds = array<i64: 256, 128>}, {pipeline_mode = #tpu.pipeline_mode<synchronous>, transform_indices = @transform_13, window_bounds = array<i64: 1, 128>}, {pipeline_mode = #tpu.pipeline_mode<synchronous>, transform_indices = @transform_14, window_bounds = array<i64: 2, 8, 128>}]} {
    %c0 = arith.constant 0 : index
    %c0_0 = arith.constant 0 : index
    %c0_1 = arith.constant 0 : index
    %0 = vector.load %arg1[%c0, %c0_0, %c0_1] : memref<2x8x128xf32, #tpu.memory_space<vmem>>, vector<2x8x128xf32>
    %c0_2 = arith.constant 0 : index
    %c0_3 = arith.constant 0 : index
    %c0_4 = arith.constant 0 : index
    %1 = vector.load %arg3[%c0_2, %c0_3, %c0_4] : memref<2x16x128xf32, #tpu.memory_space<vmem>>, vector<2x16x128xf32>
    %c0_5 = arith.constant 0 : index
    %c0_6 = arith.constant 0 : index
    %c0_7 = arith.constant 0 : index
    %2 = vector.load %arg2[%c0_5, %c0_6, %c0_7] : memref<2x1x8xf32, #tpu.memory_space<vmem>>, vector<2x1x8xf32>
    %c0_8 = arith.constant 0 : index
    %c0_9 = arith.constant 0 : index
    %c0_10 = arith.constant 0 : index
    %3 = vector.load %arg4[%c0_8, %c0_9, %c0_10] : memref<2x1x16xf32, #tpu.memory_space<vmem>>, vector<2x1x16xf32>
    %4 = tpu.iota {dimensions = array<i32: 1>} : vector<1x8x8xi32>
    %5 = tpu.iota {dimensions = array<i32: 2>} : vector<1x8x8xi32>
    %6 = arith.cmpi sge, %4, %5 : vector<1x8x8xi32>
    %cst = arith.constant 0.000000e+00 : f32
    %cst_11 = arith.constant -1.000000e+09 : f32
    %7 = vector.broadcast %cst : f32 to vector<1x8x8xf32>
    %8 = vector.broadcast %cst_11 : f32 to vector<1x8x8xf32>
    %9 = arith.select %6, %7, %8 : vector<1x8x8xi1>, vector<1x8x8xf32>
    %cst_12 = arith.constant 1.000000e+00 : f32
    %10 = vector.broadcast %cst_12 : f32 to vector<2x1x8xf32>
    %11 = arith.subf %2, %10 : vector<2x1x8xf32>
    %cst_13 = arith.constant 1.000000e+09 : f32
    %12 = vector.broadcast %cst_13 : f32 to vector<2x1x8xf32>
    %13 = arith.mulf %11, %12 : vector<2x1x8xf32>
    %14 = vector.broadcast %9 : vector<1x8x8xf32> to vector<2x8x8xf32>
    %15 = vector.broadcast %13 : vector<2x1x8xf32> to vector<2x8x8xf32>
    %16 = arith.addf %14, %15 : vector<2x8x8xf32>
    %cst_14 = arith.constant 1.000000e+00 : f32
    %17 = vector.broadcast %cst_14 : f32 to vector<2x1x16xf32>
    %18 = arith.subf %3, %17 : vector<2x1x16xf32>
    %cst_15 = arith.constant 1.000000e+09 : f32
    %19 = vector.broadcast %cst_15 : f32 to vector<2x1x16xf32>
    %20 = arith.mulf %18, %19 : vector<2x1x16xf32>
    %c0_16 = arith.constant 0 : index
    %c0_17 = arith.constant 0 : index
    %21 = vector.load %arg10[%c0_16, %c0_17] : memref<3x128xf32, #tpu.memory_space<vmem>>, vector<1x128xf32>
    %c1 = arith.constant 1 : index
    %c0_18 = arith.constant 0 : index
    %22 = vector.load %arg10[%c1, %c0_18] : memref<3x128xf32, #tpu.memory_space<vmem>>, vector<1x128xf32>
    %c2 = arith.constant 2 : index
    %c0_19 = arith.constant 0 : index
    %23 = vector.load %arg10[%c2, %c0_19] : memref<3x128xf32, #tpu.memory_space<vmem>>, vector<1x128xf32>
    %24 = arith.mulf %0, %0 : vector<2x8x128xf32>
    %cst_20 = arith.constant dense<0.000000e+00> : vector<2x8xf32>
    %25 = vector.multi_reduction <add>, %24, %cst_20 [2] : vector<2x8x128xf32> to vector<2x8xf32>
    %26 = vector.shape_cast %25 : vector<2x8xf32> to vector<2x8x1xf32>
    %cst_21 = arith.constant 1.280000e+02 : f32
    %27 = vector.broadcast %cst_21 : f32 to vector<2x8x1xf32>
    %28 = arith.divf %26, %27 : vector<2x8x1xf32>
    %cst_22 = arith.constant 9.99999997E-7 : f32
    %29 = vector.broadcast %cst_22 : f32 to vector<2x8x1xf32>
    %30 = arith.addf %28, %29 : vector<2x8x1xf32>
    %31 = math.rsqrt %30 : vector<2x8x1xf32>
    %32 = vector.broadcast %31 : vector<2x8x1xf32> to vector<2x8x128xf32>
    %33 = arith.mulf %0, %32 : vector<2x8x128xf32>
    %34 = vector.shape_cast %21 : vector<1x128xf32> to vector<1x1x128xf32>
    %35 = vector.broadcast %34 : vector<1x1x128xf32> to vector<2x8x128xf32>
    %36 = arith.mulf %33, %35 : vector<2x8x128xf32>
    %37 = vector.shape_cast %36 : vector<2x8x128xf32> to vector<16x128xf32>
    %38 = arith.truncf %37 : vector<16x128xf32> to vector<16x128xbf16>
    %c0_23 = arith.constant 0 : index
    %c0_24 = arith.constant 0 : index
    %39 = vector.load %arg5[%c0_23, %c0_24] : memref<128x384xbf16, #tpu.memory_space<vmem>>, vector<128x384xbf16>
    %cst_25 = arith.constant dense<0.000000e+00> : vector<16x384xf32>
    %40 = tpu.matmul %38, %39, %cst_25 {dimension_numbers = #tpu.dot_dimension_numbers<[1], [0], [0], [1], [0, 0, 1, 1], [], []>} : vector<16x128xbf16>, vector<128x384xbf16>, vector<16x384xf32> -> vector<16x384xf32>
    %41 = vector.extract_strided_slice %40 {offsets = [0, 0], sizes = [16, 128], strides = [1, 1]} : vector<16x384xf32> to vector<16x128xf32>
    %42 = vector.shape_cast %41 : vector<16x128xf32> to vector<2x8x128xf32>
    %43 = arith.truncf %42 : vector<2x8x128xf32> to vector<2x8x128xbf16>
    %44 = vector.extract_strided_slice %40 {offsets = [0, 128], sizes = [16, 128], strides = [1, 1]} : vector<16x384xf32> to vector<16x128xf32>
    %45 = vector.shape_cast %44 : vector<16x128xf32> to vector<2x8x128xf32>
    %46 = arith.truncf %45 : vector<2x8x128xf32> to vector<2x8x128xbf16>
    %47 = vector.extract_strided_slice %40 {offsets = [0, 256], sizes = [16, 128], strides = [1, 1]} : vector<16x384xf32> to vector<16x128xf32>
    %48 = vector.shape_cast %47 : vector<16x128xf32> to vector<2x8x128xf32>
    %49 = arith.truncf %48 : vector<2x8x128xf32> to vector<2x8x128xbf16>
    "tpu.trace_start"() <{level = 10 : i32, message = "bqd,bkd->bqk"}> : () -> ()
    %cst_26 = arith.constant dense<0.000000e+00> : vector<2x8x8xf32>
    %50 = tpu.matmul %43, %46, %cst_26 {dimension_numbers = #tpu.dot_dimension_numbers<[2], [2], [1], [1], [0, 0, 0, 1, 1, 1], [0], [0]>} : vector<2x8x128xbf16>, vector<2x8x128xbf16>, vector<2x8x8xf32> -> vector<2x8x8xf32>
    "tpu.trace_stop"() : () -> ()
    %cst_27 = arith.constant 0.0883883461 : f32
    %51 = vector.broadcast %cst_27 : f32 to vector<2x8x8xf32>
    %52 = arith.mulf %50, %51 : vector<2x8x8xf32>
    %53 = arith.addf %52, %16 : vector<2x8x8xf32>
    %cst_28 = arith.constant dense<0xFF800000> : vector<2x8xf32>
    %54 = vector.multi_reduction <maximumf>, %53, %cst_28 [2] : vector<2x8x8xf32> to vector<2x8xf32>
    %55 = vector.shape_cast %54 : vector<2x8xf32> to vector<2x8x1xf32>
    %56 = vector.broadcast %55 : vector<2x8x1xf32> to vector<2x8x8xf32>
    %57 = arith.subf %53, %56 : vector<2x8x8xf32>
    %58 = math.exp %57 : vector<2x8x8xf32>
    %cst_29 = arith.constant dense<0.000000e+00> : vector<2x8xf32>
    %59 = vector.multi_reduction <add>, %58, %cst_29 [2] : vector<2x8x8xf32> to vector<2x8xf32>
    %60 = vector.shape_cast %59 : vector<2x8xf32> to vector<2x8x1xf32>
    %61 = tpu.reciprocal %60 {approx = true} : vector<2x8x1xf32> -> vector<2x8x1xf32>
    %62 = vector.broadcast %61 : vector<2x8x1xf32> to vector<2x8x8xf32>
    %63 = arith.mulf %58, %62 : vector<2x8x8xf32>
    %64 = arith.truncf %63 : vector<2x8x8xf32> to vector<2x8x8xbf16>
    "tpu.trace_start"() <{level = 10 : i32, message = "bqk,bkd->bqd"}> : () -> ()
    %cst_30 = arith.constant dense<0.000000e+00> : vector<2x8x128xf32>
    %65 = tpu.matmul %64, %49, %cst_30 {dimension_numbers = #tpu.dot_dimension_numbers<[2], [1], [1], [2], [0, 0, 0, 1, 1, 2], [0], [0]>} : vector<2x8x8xbf16>, vector<2x8x128xbf16>, vector<2x8x128xf32> -> vector<2x8x128xf32>
    "tpu.trace_stop"() : () -> ()
    %66 = vector.shape_cast %65 : vector<2x8x128xf32> to vector<16x128xf32>
    %67 = arith.truncf %66 : vector<16x128xf32> to vector<16x128xbf16>
    %c0_31 = arith.constant 0 : index
    %c0_32 = arith.constant 0 : index
    %68 = vector.load %arg6[%c0_31, %c0_32] : memref<128x128xbf16, #tpu.memory_space<vmem>>, vector<128x128xbf16>
    %cst_33 = arith.constant dense<0.000000e+00> : vector<16x128xf32>
    %69 = tpu.matmul %67, %68, %cst_33 {dimension_numbers = #tpu.dot_dimension_numbers<[1], [0], [0], [1], [0, 0, 1, 1], [], []>} : vector<16x128xbf16>, vector<128x128xbf16>, vector<16x128xf32> -> vector<16x128xf32>
    %70 = vector.shape_cast %69 : vector<16x128xf32> to vector<2x8x128xf32>
    %71 = arith.addf %0, %70 : vector<2x8x128xf32>
    %72 = arith.mulf %71, %71 : vector<2x8x128xf32>
    %cst_34 = arith.constant dense<0.000000e+00> : vector<2x8xf32>
    %73 = vector.multi_reduction <add>, %72, %cst_34 [2] : vector<2x8x128xf32> to vector<2x8xf32>
    %74 = vector.shape_cast %73 : vector<2x8xf32> to vector<2x8x1xf32>
    %cst_35 = arith.constant 1.280000e+02 : f32
    %75 = vector.broadcast %cst_35 : f32 to vector<2x8x1xf32>
    %76 = arith.divf %74, %75 : vector<2x8x1xf32>
    %cst_36 = arith.constant 9.99999997E-7 : f32
    %77 = vector.broadcast %cst_36 : f32 to vector<2x8x1xf32>
    %78 = arith.addf %76, %77 : vector<2x8x1xf32>
    %79 = math.rsqrt %78 : vector<2x8x1xf32>
    %80 = vector.broadcast %79 : vector<2x8x1xf32> to vector<2x8x128xf32>
    %81 = arith.mulf %71, %80 : vector<2x8x128xf32>
    %82 = vector.shape_cast %22 : vector<1x128xf32> to vector<1x1x128xf32>
    %83 = vector.broadcast %82 : vector<1x1x128xf32> to vector<2x8x128xf32>
    %84 = arith.mulf %81, %83 : vector<2x8x128xf32>
    %85 = vector.shape_cast %84 : vector<2x8x128xf32> to vector<16x128xf32>
    %86 = arith.truncf %85 : vector<16x128xf32> to vector<16x128xbf16>
    %87 = vector.shape_cast %1 : vector<2x16x128xf32> to vector<32x128xf32>
    %88 = arith.truncf %87 : vector<32x128xf32> to vector<32x128xbf16>
    %c0_37 = arith.constant 0 : index
    %c0_38 = arith.constant 0 : index
    %89 = vector.load %arg7[%c0_37, %c0_38] : memref<128x128xbf16, #tpu.memory_space<vmem>>, vector<128x128xbf16>
    %cst_39 = arith.constant dense<0.000000e+00> : vector<16x128xf32>
    %90 = tpu.matmul %86, %89, %cst_39 {dimension_numbers = #tpu.dot_dimension_numbers<[1], [0], [0], [1], [0, 0, 1, 1], [], []>} : vector<16x128xbf16>, vector<128x128xbf16>, vector<16x128xf32> -> vector<16x128xf32>
    %91 = vector.shape_cast %90 : vector<16x128xf32> to vector<2x8x128xf32>
    %92 = arith.truncf %91 : vector<2x8x128xf32> to vector<2x8x128xbf16>
    %c0_40 = arith.constant 0 : index
    %c0_41 = arith.constant 0 : index
    %93 = vector.load %arg8[%c0_40, %c0_41] : memref<128x256xbf16, #tpu.memory_space<vmem>>, vector<128x256xbf16>
    %cst_42 = arith.constant dense<0.000000e+00> : vector<32x256xf32>
    %94 = tpu.matmul %88, %93, %cst_42 {dimension_numbers = #tpu.dot_dimension_numbers<[1], [0], [0], [1], [0, 0, 1, 1], [], []>} : vector<32x128xbf16>, vector<128x256xbf16>, vector<32x256xf32> -> vector<32x256xf32>
    %95 = vector.extract_strided_slice %94 {offsets = [0, 0], sizes = [32, 128], strides = [1, 1]} : vector<32x256xf32> to vector<32x128xf32>
    %96 = vector.shape_cast %95 : vector<32x128xf32> to vector<2x16x128xf32>
    %97 = arith.truncf %96 : vector<2x16x128xf32> to vector<2x16x128xbf16>
    %98 = vector.extract_strided_slice %94 {offsets = [0, 128], sizes = [32, 128], strides = [1, 1]} : vector<32x256xf32> to vector<32x128xf32>
    %99 = vector.shape_cast %98 : vector<32x128xf32> to vector<2x16x128xf32>
    %100 = arith.truncf %99 : vector<2x16x128xf32> to vector<2x16x128xbf16>
    "tpu.trace_start"() <{level = 10 : i32, message = "bqd,bkd->bqk"}> : () -> ()
    %cst_43 = arith.constant dense<0.000000e+00> : vector<2x8x16xf32>
    %101 = tpu.matmul %92, %97, %cst_43 {dimension_numbers = #tpu.dot_dimension_numbers<[2], [2], [1], [1], [0, 0, 0, 1, 1, 1], [0], [0]>} : vector<2x8x128xbf16>, vector<2x16x128xbf16>, vector<2x8x16xf32> -> vector<2x8x16xf32>
    "tpu.trace_stop"() : () -> ()
    %cst_44 = arith.constant 0.0883883461 : f32
    %102 = vector.broadcast %cst_44 : f32 to vector<2x8x16xf32>
    %103 = arith.mulf %101, %102 : vector<2x8x16xf32>
    %104 = vector.broadcast %20 : vector<2x1x16xf32> to vector<2x8x16xf32>
    %105 = arith.addf %103, %104 : vector<2x8x16xf32>
    %cst_45 = arith.constant dense<0xFF800000> : vector<2x8xf32>
    %106 = vector.multi_reduction <maximumf>, %105, %cst_45 [2] : vector<2x8x16xf32> to vector<2x8xf32>
    %107 = vector.shape_cast %106 : vector<2x8xf32> to vector<2x8x1xf32>
    %108 = vector.broadcast %107 : vector<2x8x1xf32> to vector<2x8x16xf32>
    %109 = arith.subf %105, %108 : vector<2x8x16xf32>
    %110 = math.exp %109 : vector<2x8x16xf32>
    %cst_46 = arith.constant dense<0.000000e+00> : vector<2x8xf32>
    %111 = vector.multi_reduction <add>, %110, %cst_46 [2] : vector<2x8x16xf32> to vector<2x8xf32>
    %112 = vector.shape_cast %111 : vector<2x8xf32> to vector<2x8x1xf32>
    %113 = tpu.reciprocal %112 {approx = true} : vector<2x8x1xf32> -> vector<2x8x1xf32>
    %114 = vector.broadcast %113 : vector<2x8x1xf32> to vector<2x8x16xf32>
    %115 = arith.mulf %110, %114 : vector<2x8x16xf32>
    %116 = arith.truncf %115 : vector<2x8x16xf32> to vector<2x8x16xbf16>
    "tpu.trace_start"() <{level = 10 : i32, message = "bqk,bkd->bqd"}> : () -> ()
    %cst_47 = arith.constant dense<0.000000e+00> : vector<2x8x128xf32>
    %117 = tpu.matmul %116, %100, %cst_47 {dimension_numbers = #tpu.dot_dimension_numbers<[2], [1], [1], [2], [0, 0, 0, 1, 1, 2], [0], [0]>} : vector<2x8x16xbf16>, vector<2x16x128xbf16>, vector<2x8x128xf32> -> vector<2x8x128xf32>
    "tpu.trace_stop"() : () -> ()
    %118 = vector.shape_cast %117 : vector<2x8x128xf32> to vector<16x128xf32>
    %119 = arith.truncf %118 : vector<16x128xf32> to vector<16x128xbf16>
    %c0_48 = arith.constant 0 : index
    %c0_49 = arith.constant 0 : index
    %120 = vector.load %arg9[%c0_48, %c0_49] : memref<128x128xbf16, #tpu.memory_space<vmem>>, vector<128x128xbf16>
    %cst_50 = arith.constant dense<0.000000e+00> : vector<16x128xf32>
    %121 = tpu.matmul %119, %120, %cst_50 {dimension_numbers = #tpu.dot_dimension_numbers<[1], [0], [0], [1], [0, 0, 1, 1], [], []>} : vector<16x128xbf16>, vector<128x128xbf16>, vector<16x128xf32> -> vector<16x128xf32>
    %122 = vector.shape_cast %121 : vector<16x128xf32> to vector<2x8x128xf32>
    %123 = arith.addf %71, %122 : vector<2x8x128xf32>
    %124 = arith.mulf %123, %123 : vector<2x8x128xf32>
    %cst_51 = arith.constant dense<0.000000e+00> : vector<2x8xf32>
    %125 = vector.multi_reduction <add>, %124, %cst_51 [2] : vector<2x8x128xf32> to vector<2x8xf32>
    %126 = vector.shape_cast %125 : vector<2x8xf32> to vector<2x8x1xf32>
    %cst_52 = arith.constant 1.280000e+02 : f32
    %127 = vector.broadcast %cst_52 : f32 to vector<2x8x1xf32>
    %128 = arith.divf %126, %127 : vector<2x8x1xf32>
    %cst_53 = arith.constant 9.99999997E-7 : f32
    %129 = vector.broadcast %cst_53 : f32 to vector<2x8x1xf32>
    %130 = arith.addf %128, %129 : vector<2x8x1xf32>
    %131 = math.rsqrt %130 : vector<2x8x1xf32>
    %132 = vector.broadcast %131 : vector<2x8x1xf32> to vector<2x8x128xf32>
    %133 = arith.mulf %123, %132 : vector<2x8x128xf32>
    %134 = vector.shape_cast %23 : vector<1x128xf32> to vector<1x1x128xf32>
    %135 = vector.broadcast %134 : vector<1x1x128xf32> to vector<2x8x128xf32>
    %136 = arith.mulf %133, %135 : vector<2x8x128xf32>
    %137 = vector.shape_cast %136 : vector<2x8x128xf32> to vector<16x128xf32>
    %138 = arith.truncf %137 : vector<16x128xf32> to vector<16x128xbf16>
    %c0_54 = arith.constant 0 : index
    %c0_55 = arith.constant 0 : index
    %139 = vector.load %arg11[%c0_54, %c0_55] : memref<128x256xbf16, #tpu.memory_space<vmem>>, vector<128x256xbf16>
    %cst_56 = arith.constant dense<0.000000e+00> : vector<16x256xf32>
    %140 = tpu.matmul %138, %139, %cst_56 {dimension_numbers = #tpu.dot_dimension_numbers<[1], [0], [0], [1], [0, 0, 1, 1], [], []>} : vector<16x128xbf16>, vector<128x256xbf16>, vector<16x256xf32> -> vector<16x256xf32>
    %c0_57 = arith.constant 0 : index
    %c0_58 = arith.constant 0 : index
    %141 = vector.load %arg12[%c0_57, %c0_58] : memref<1x256xf32, #tpu.memory_space<vmem>>, vector<1x256xf32>
    %142 = vector.broadcast %141 : vector<1x256xf32> to vector<16x256xf32>
    %143 = arith.addf %140, %142 : vector<16x256xf32>
    %cst_59 = arith.constant 0.000000e+00 : f32
    %144 = vector.broadcast %cst_59 : f32 to vector<16x256xf32>
    %145 = arith.maximumf %143, %144 : vector<16x256xf32>
    %146 = arith.truncf %145 : vector<16x256xf32> to vector<16x256xbf16>
    %c0_60 = arith.constant 0 : index
    %c0_61 = arith.constant 0 : index
    %147 = vector.load %arg13[%c0_60, %c0_61] : memref<256x128xbf16, #tpu.memory_space<vmem>>, vector<256x128xbf16>
    %cst_62 = arith.constant dense<0.000000e+00> : vector<16x128xf32>
    %148 = tpu.matmul %146, %147, %cst_62 {dimension_numbers = #tpu.dot_dimension_numbers<[1], [0], [0], [1], [0, 0, 1, 1], [], []>} : vector<16x256xbf16>, vector<256x128xbf16>, vector<16x128xf32> -> vector<16x128xf32>
    %c0_63 = arith.constant 0 : index
    %c0_64 = arith.constant 0 : index
    %149 = vector.load %arg14[%c0_63, %c0_64] : memref<1x128xf32, #tpu.memory_space<vmem>>, vector<1x128xf32>
    %150 = vector.broadcast %149 : vector<1x128xf32> to vector<16x128xf32>
    %151 = arith.addf %148, %150 : vector<16x128xf32>
    %152 = vector.shape_cast %151 : vector<16x128xf32> to vector<2x8x128xf32>
    %153 = arith.addf %123, %152 : vector<2x8x128xf32>
    %c0_65 = arith.constant 0 : index
    %c0_66 = arith.constant 0 : index
    %c0_67 = arith.constant 0 : index
    %154 = vector.load %arg15[%c0_65, %c0_66, %c0_67] : memref<2x8x128xf32, #tpu.memory_space<vmem>>, vector<2x8x128xf32>
    tpu.vector_store %arg15[%c0_65, %c0_66, %c0_67], %153 {strides = array<i32>} : memref<2x8x128xf32, #tpu.memory_space<vmem>>, vector<2x8x128xf32>,
    return
  }
  func.func @transform_0(%arg0: i32) -> (i32, i32, i32) {
    %c0_i32 = arith.constant 0 : i32
    %c0_i32_0 = arith.constant 0 : i32
    %c0_i32_1 = arith.constant 0 : i32
    %c0_i32_2 = arith.constant 0 : i32
    return %c0_i32, %c0_i32_0, %c0_i32_1 : i32, i32, i32
  }
  func.func @transform_1(%arg0: i32) -> (i32, i32, i32) {
    %c0_i32 = arith.constant 0 : i32
    %c0_i32_0 = arith.constant 0 : i32
    %c0_i32_1 = arith.constant 0 : i32
    %c0_i32_2 = arith.constant 0 : i32
    return %c0_i32, %c0_i32_0, %c0_i32_1 : i32, i32, i32
  }
  func.func @transform_2(%arg0: i32) -> (i32, i32, i32) {
    %c0_i32 = arith.constant 0 : i32
    %c0_i32_0 = arith.constant 0 : i32
    %c0_i32_1 = arith.constant 0 : i32
    %c0_i32_2 = arith.constant 0 : i32
    return %c0_i32, %c0_i32_0, %c0_i32_1 : i32, i32, i32
  }
  func.func @transform_3(%arg0: i32) -> (i32, i32, i32) {
    %c0_i32 = arith.constant 0 : i32
    %c0_i32_0 = arith.constant 0 : i32
    %c0_i32_1 = arith.constant 0 : i32
    %c0_i32_2 = arith.constant 0 : i32
    return %c0_i32, %c0_i32_0, %c0_i32_1 : i32, i32, i32
  }
  func.func @transform_4(%arg0: i32) -> (i32, i32) {
    %c0_i32 = arith.constant 0 : i32
    %c0_i32_0 = arith.constant 0 : i32
    %c0_i32_1 = arith.constant 0 : i32
    return %c0_i32, %c0_i32_0 : i32, i32
  }
  func.func @transform_5(%arg0: i32) -> (i32, i32) {
    %c0_i32 = arith.constant 0 : i32
    %c0_i32_0 = arith.constant 0 : i32
    %c0_i32_1 = arith.constant 0 : i32
    return %c0_i32, %c0_i32_0 : i32, i32
  }
  func.func @transform_6(%arg0: i32) -> (i32, i32) {
    %c0_i32 = arith.constant 0 : i32
    %c0_i32_0 = arith.constant 0 : i32
    %c0_i32_1 = arith.constant 0 : i32
    return %c0_i32, %c0_i32_0 : i32, i32
  }
  func.func @transform_7(%arg0: i32) -> (i32, i32) {
    %c0_i32 = arith.constant 0 : i32
    %c0_i32_0 = arith.constant 0 : i32
    %c0_i32_1 = arith.constant 0 : i32
    return %c0_i32, %c0_i32_0 : i32, i32
  }
  func.func @transform_8(%arg0: i32) -> (i32, i32) {
    %c0_i32 = arith.constant 0 : i32
    %c0_i32_0 = arith.constant 0 : i32
    %c0_i32_1 = arith.constant 0 : i32
    return %c0_i32, %c0_i32_0 : i32, i32
  }
  func.func @transform_9(%arg0: i32) -> (i32, i32) {
    %c0_i32 = arith.constant 0 : i32
    %c0_i32_0 = arith.constant 0 : i32
    %c0_i32_1 = arith.constant 0 : i32
    return %c0_i32, %c0_i32_0 : i32, i32
  }
  func.func @transform_10(%arg0: i32) -> (i32, i32) {
    %c0_i32 = arith.constant 0 : i32
    %c0_i32_0 = arith.constant 0 : i32
    %c0_i32_1 = arith.constant 0 : i32
    return %c0_i32, %c0_i32_0 : i32, i32
  }
  func.func @transform_11(%arg0: i32) -> (i32, i32) {
    %c0_i32 = arith.constant 0 : i32
    %c0_i32_0 = arith.constant 0 : i32
    %c0_i32_1 = arith.constant 0 : i32
    return %c0_i32, %c0_i32_0 : i32, i32
  }
  func.func @transform_12(%arg0: i32) -> (i32, i32) {
    %c0_i32 = arith.constant 0 : i32
    %c0_i32_0 = arith.constant 0 : i32
    %c0_i32_1 = arith.constant 0 : i32
    return %c0_i32, %c0_i32_0 : i32, i32
  }
  func.func @transform_13(%arg0: i32) -> (i32, i32) {
    %c0_i32 = arith.constant 0 : i32
    %c0_i32_0 = arith.constant 0 : i32
    %c0_i32_1 = arith.constant 0 : i32
    return %c0_i32, %c0_i32_0 : i32, i32
  }
  func.func @transform_14(%arg0: i32) -> (i32, i32, i32) {
    %c0_i32 = arith.constant 0 : i32
    %c0_i32_0 = arith.constant 0 : i32
    %c0_i32_1 = arith.constant 0 : i32
    %c0_i32_2 = arith.constant 0 : i32
    return %c0_i32, %c0_i32_0, %c0_i32_1 : i32, i32, i32
  }
}

</mosaic_0001>

<bundles_post_ra>
// kernel: molqa_forward.4
= control target key start
LH: loop header
LB: loop body
LE: loop exit
PB: predicated region body
PF: predicated region fallthrough
CT: control target
= control target key end

     0   :  { %v356_v0 = vmov 0.0   ;;  %vm357_vm0 = vmmov 0   ;;  %s451_s1 = inlined_call_operand.vmem [shape: bf16[128,128], index: 1, kind: input, shape index: {}]   ;;  %s452_s3 = inlined_call_operand.vmem [shape: bf16[128,128], index: 3, kind: input, shape index: {}]   ;;  %s453_s0 = inlined_call_operand.vmem [shape: bf16[16,128], index: 0, kind: input, shape index: {}]   ;;  %s454_s2 = inlined_call_operand.vmem [shape: f32[1,128], index: 2, kind: input, shape index: {}]   ;;  %s455_s4 = inlined_call_operand.vmem [shape: f32[1,128], index: 4, kind: input, shape index: {}]   ;;  %s456_s5 = inlined_call_operand.vmem [shape: f32[16,128], index: 5, kind: output, shape index: {}]  }
   0x1   :  { %297 = vmatprep.subr.bf16.mxu0 %v356_v0  ;;  %v339_v1 = vld [vmem:[%s451_s1 + $0x38] sm:$0xff]   ;;  %313 = vmatprep.mubr.msk.bf16.mxu0 %vm357_vm0, %v356_v0  ;;  %v340_v2 = vld [vmem:[%s451_s1 + $0x30] sm:$0xff]   ;;  %v341_v3 = vld [vmem:[%s451_s1 + $0x28] sm:$0xff]  }
   0x2   :  { %317 = vmatprep.subr.bf16.mxu1 %v356_v0  ;;  %333 = vmatprep.mubr.msk.bf16.mxu1 %vm357_vm0, %v356_v0  ;;  %v348_v4 = vld [vmem:[%s452_s3 + $0x38] sm:$0xff]   ;;  %v342_v5 = vld [vmem:[%s451_s1 + $0x20] sm:$0xff]   ;;  %v349_v6 = vld [vmem:[%s452_s3 + $0x30] sm:$0xff]  }
   0x3   :  { %298 = vmatpush3.bf16.msra.mxu0 %v339_v1  ;;  %318 = vmatpush3.bf16.msra.mxu1 %v348_v4  ;;  %v343_v7 = vld [vmem:[%s451_s1 + $0x18] sm:$0xff]   ;;  %v350_v8 = vld [vmem:[%s452_s3 + $0x28] sm:$0xff]   ;;  %v344_v9 = vld [vmem:[%s451_s1 + $0x10] sm:$0xff]  }
   0x4   :  { %299 = vmatprep.subr.bf16.mxu0 %v356_v0  ;;  %319 = vmatprep.subr.bf16.mxu1 %v356_v0  ;;  %v351_v10 = vld [vmem:[%s452_s3 + $0x20] sm:$0xff]   ;;  %v345_v11 = vld [vmem:[%s451_s1 + $0x8] sm:$0xff]   ;;  %v352_v12 = vld [vmem:[%s452_s3 + $0x18] sm:$0xff]  }
   0x5   :  { %v346_v13 = vld [vmem:[%s451_s1] sm:$0xff]   ;;  %v353_v14 = vld [vmem:[%s452_s3 + $0x10] sm:$0xff]   ;;  %v354_v16 = vld [vmem:[%s452_s3 + $0x8] sm:$0xff]  }
   0x6   :  { %v347_v15 = vld [vmem:[%s453_s0] sm:$0xff]  }
   0x7   :  { %300 = vmatpush3.bf16.msra.mxu0 %v340_v2  ;;  %320 = vmatpush3.bf16.msra.mxu1 %v349_v6  ;;  %v355_v17 = vld [vmem:[%s452_s3] sm:$0xff]  }
   0x8   :  { %301 = vmatprep.subr.bf16.mxu0 %v356_v0  ;;  %321 = vmatprep.subr.bf16.mxu1 %v356_v0  ;;  %v260_v19 = vld [vmem:[%s454_s2] ss:$0 sm:$0xff] }
   0x9   :  { %v270_v26 = vld [vmem:[%s455_s4] ss:$0 sm:$0xff] }
   0xb   :  { %302 = vmatpush3.bf16.msra.mxu0 %v341_v3  ;;  %322 = vmatpush3.bf16.msra.mxu1 %v350_v8 }
   0xc   :  { %303 = vmatprep.subr.bf16.mxu0 %v356_v0  ;;  %323 = vmatprep.subr.bf16.mxu1 %v356_v0 }
   0xf   :  { %304 = vmatpush3.bf16.msra.mxu0 %v342_v5  ;;  %324 = vmatpush3.bf16.msra.mxu1 %v351_v10 }
  0x10   :  { %305 = vmatprep.subr.bf16.mxu0 %v356_v0  ;;  %325 = vmatprep.subr.bf16.mxu1 %v356_v0 }
  0x13   :  { %306 = vmatpush3.bf16.msra.mxu0 %v343_v7  ;;  %326 = vmatpush3.bf16.msra.mxu1 %v352_v12 }
  0x14   :  { %307 = vmatprep.subr.bf16.mxu0 %v356_v0  ;;  %327 = vmatprep.subr.bf16.mxu1 %v356_v0 }
  0x17   :  { %308 = vmatpush3.bf16.msra.mxu0 %v344_v9  ;;  %328 = vmatpush3.bf16.msra.mxu1 %v353_v14 }
  0x18   :  { %309 = vmatprep.subr.bf16.mxu0 %v356_v0  ;;  %329 = vmatprep.subr.bf16.mxu1 %v356_v0 }
  0x1b   :  { %310 = vmatpush3.bf16.msra.mxu0 %v345_v11  ;;  %330 = vmatpush3.bf16.msra.mxu1 %v354_v16 }
  0x1c   :  { %311 = vmatprep.subr.bf16.mxu0 %v356_v0  ;;  %331 = vmatprep.subr.bf16.mxu1 %v356_v0 }
  0x1f   :  { %312 = vmatpush3.bf16.msra.mxu0 %v346_v13  ;;  %332 = vmatpush3.bf16.msra.mxu1 %v355_v17 }
  0x22   :  { %314 = vmatmul.mubr.bf16.vlgmr.msra.gmra.mxu0 %v347_v15 }
  0xe2   :  { %v134_v18 = vpop.f32.mrf.mxu0 }
  0xe3   :  { %v135_v22 = vadd.f32 %v260_v19, %v134_v18 }
  0xe4   :  { %v315_v20 = vpop.f32.mrf.mxu0 }
  0xe6   :  { %v137_v21 = vpop.f32.mrf.mxu0 }
  0xe7   :  { %v138_v23 = vadd.f32 %v260_v19, %v137_v21 }
  0xe8   :  { %v316_v24 = vpop.f32.mrf.mxu0 }
  0xe9   :  { %v141_v25 = vpack.c.bf16 %v138_v23, %v135_v22 }
  0xeb   :  { %334 = vmatmul.mubr.bf16.vlgmr.msra.gmra.mxu1 %v141_v25 }
 0x1ab   :  { %v247_v27 = vpop.f32.mrf.mxu1 }
 0x1ac   :  { %v248_v28 = vadd.f32 %v270_v26, %v247_v27 }
 0x1ad   :  { %v335_v29 = vpop.f32.mrf.mxu1 }
 0x1ae   :  { %254 = vst [vmem:[%s456_s5] sm:$0xff] %v248_v28 }
 0x1af   :  { %v250_v30 = vpop.f32.mrf.mxu1 }
 0x1b0   :  { %v251_v31 = vadd.f32 %v270_v26, %v250_v30 }
 0x1b1   :  { %v336_v32 = vpop.f32.mrf.mxu1 }
 0x1b2   :  { %255 = vst [vmem:[%s456_s5 + $0x8] sm:$0xff] %v251_v31 }

// kernel: molqa_forward.7
= control target key start
LH: loop header
LB: loop body
LE: loop exit
PB: predicated region body
PF: predicated region fallthrough
CT: control target
= control target key end

     0   :  { %11 = vsyncpa [#allocation7], 0  ;;  %s1196_s0 = inlined_call_operand.vmem [shape: bf16[16,128], index: 0, kind: input, shape index: {}]   ;;  %s1197_s1 = inlined_call_operand.vmem [shape: bf16[128,256], index: 1, kind: input, shape index: {}]   ;;  %s1198_s2 = inlined_call_operand.vmem [shape: f32[1,256], index: 2, kind: input, shape index: {}]   ;;  %s1199_s3 = inlined_call_operand.vmem [shape: s32[16,1], index: 3, kind: input, shape index: {}]   ;;  %s1200_s4 = inlined_call_operand.hbm [shape: f32[16,256], index: 4, kind: output, shape index: {0}]   ;;  %s1201_s5 = inlined_call_operand.hbm [shape: f32[1,1], index: 5, kind: output, shape index: {1}]  }
   0x1   :  { %13 = vsyncpa [#allocation7 + $0x1], 0 }
   0x2   :  { %14 = vsyncpa [#allocation8], 0  ;;  %s986_s18 = smov 0   ;;  %s988_s19 = smov 0  }
   0x3   :  { %s990_s20 = smov 0   ;;  %s992_s21 = smov 0  }
   0x4 LB: > { %s1007_s22 = sadd.s32 4294967295, %s942_s21   ;;  %s721_s23 = sadd.s32 4294967294, %s942_s21   ;;  %s942_s21 = sphi %s992_s21, %s1207_s21   ;;  %s938_s20 = sphi %s990_s20, %s1206_s20   ;;  %s934_s19 = sphi %s988_s19, %s1205_s19   ;;  %s930_s18 = sphi %s986_s18, %s1204_s18  }
   0x5   : > { %s1011_s24 = sadd.s32 1, %s942_s21   ;;  %s48_s25 = sadd.s32 1, %s938_s20 }
   0x6   : > { %s45_s26 = ssub.s32 %s942_s21, %s1011_s24  ;;  %p55_p0 = scmp.ne.s32.totalorder %s938_s20, %s934_s19 }
   0x7   : > { %p46_p1 = scmp.eq.s32.totalorder %s45_s26, 0  ;;  %p56_p2 = scmp.eq.s32.totalorder %s942_s21, 0 }
   0x8   : > { %p132_p3 = scmp.eq.s32.totalorder %s1007_s22, 1  ;;  %p137_p4 = scmp.ne.s32.totalorder %s934_s19, %s930_s18 }
   0x9   : > { %s1023_s27 = scalar_select %p46_p1, %s938_s20, %s48_s25  }
   0xa   : > { %p57_p5 = por %p56_p2, %p55_p0  ;;  %p1027_p6 = por %p132_p3, %p55_p0 }
   0xb   : > { %p138_p7 = scmp.eq.s32.totalorder %s721_s23, 1  ;;  %p723_p9 = scmp.ge.s32.totalorder %s942_s21, 2 }
   0xd   : > { %p1031_p8 = por %p138_p7, %p137_p4  ;;  %181 = sbr.rel (%p723_p9) target bundleno = 32 (0x20), region = 24 }
  0x12   : > { %184 = sbr.rel (!%p57_p5) target bundleno = 32 (0x20), region = 28  ;;  %s186_s30 = sand.u32 (%p57_p5), 1, %s938_s20  }
  0x13   : > { %s725_s6 = sshll.u32 (%p57_p5), %s942_s21, 2  ;;  %s724_s7 = sshll.u32 (%p57_p5), %s186_s30, 6 }
  0x14   : > { %s1043_s10 = scalar_lea.vmem (%p57_p5), %s1197_s1, %s725_s6  ;;  %s188_s11 = scalar_lea.vmem (%p57_p5), [#allocation5], %s724_s7 }
  0x15   : > { %v207_v0 = vld [vmem:[%s1043_s10] sm:$0xf] (%p57_p5)  ;;  %v209_v1 = vld [vmem:[%s1043_s10 + $0x8] sm:$0xf] (%p57_p5)  ;;  %v211_v2 = vld [vmem:[%s1043_s10 + $0x10] sm:$0xf] (%p57_p5) }
  0x16   : > { %208 = vst [vmem:[%s188_s11] sm:$0xf] (%p57_p5), %v207_v0  ;;  %210 = vst [vmem:[%s188_s11 + $0x4] sm:$0xf] (%p57_p5), %v209_v1  ;;  %v213_v3 = vld [vmem:[%s1043_s10 + $0x18] sm:$0xf] (%p57_p5) }
  0x17   : > { %v215_v4 = vld [vmem:[%s1043_s10 + $0x20] sm:$0xf]  ;;  %212 = vst [vmem:[%s188_s11 + $0x8] sm:$0xf] %v211_v2  ;;  %214 = vst [vmem:[%s188_s11 + $0xc] sm:$0xf] %v213_v3 }
  0x18   : > { %216 = vst [vmem:[%s188_s11 + $0x10] sm:$0xf] %v215_v4  ;;  %v217_v5 = vld [vmem:[%s1043_s10 + $0x28] sm:$0xf]  ;;  %v219_v6 = vld [vmem:[%s1043_s10 + $0x30] sm:$0xf] }
  0x19   : > { %v221_v7 = vld [vmem:[%s1043_s10 + $0x38] sm:$0xf]  ;;  %218 = vst [vmem:[%s188_s11 + $0x14] sm:$0xf] %v217_v5  ;;  %220 = vst [vmem:[%s188_s11 + $0x18] sm:$0xf] %v219_v6 }
  0x1a   : > { %222 = vst [vmem:[%s188_s11 + $0x1c] sm:$0xf] %v221_v7  ;;  %v223_v8 = vld [vmem:[%s1043_s10 + $0x40] sm:$0xf]  ;;  %v225_v9 = vld [vmem:[%s1043_s10 + $0x48] sm:$0xf] }
  0x1b   : > { %v227_v10 = vld [vmem:[%s1043_s10 + $0x50] sm:$0xf]  ;;  %224 = vst [vmem:[%s188_s11 + $0x20] sm:$0xf] %v223_v8  ;;  %226 = vst [vmem:[%s188_s11 + $0x24] sm:$0xf] %v225_v9 }
  0x1c   : > { %228 = vst [vmem:[%s188_s11 + $0x28] sm:$0xf] %v227_v10  ;;  %v229_v11 = vld [vmem:[%s1043_s10 + $0x58] sm:$0xf]  ;;  %v231_v12 = vld [vmem:[%s1043_s10 + $0x60] sm:$0xf] }
  0x1d   : > { %v233_v13 = vld [vmem:[%s1043_s10 + $0x68] sm:$0xf]  ;;  %230 = vst [vmem:[%s188_s11 + $0x2c] sm:$0xf] %v229_v11  ;;  %232 = vst [vmem:[%s188_s11 + $0x30] sm:$0xf] %v231_v12 }
  0x1e   : > { %234 = vst [vmem:[%s188_s11 + $0x34] sm:$0xf] %v233_v13  ;;  %v235_v14 = vld [vmem:[%s1043_s10 + $0x70] sm:$0xf]  ;;  %v237_v15 = vld [vmem:[%s1043_s10 + $0x78] sm:$0xf] }
  0x1f   : > { %236 = vst [vmem:[%s188_s11 + $0x38] sm:$0xf] %v235_v14  ;;  %238 = vst [vmem:[%s188_s11 + $0x3c] sm:$0xf] %v237_v15 }
  0x20 PF: > { %p726_p10 = scmp.ge.s32.totalorder %s942_s21, 1  ;;  %p299_p11 = scmp.lt.s32.totalorder %s942_s21, 3 }
  0x22   : > { %p300_p12 = pnand %p726_p10, %p299_p11 }
  0x23   : > { %s1064_s12 = sand.u32 (!%p300_p12), 1, %s934_s19   ;;  %p336_p13 = scmp.lt.s32.totalorder (!%p300_p12), %s1007_s22, 1 }
  0x24   : > { %303 = sbr.rel (%p300_p12) target bundleno = 1040 (0x410), region = 73  ;;  %s727_s13 = sshll.u32 (!%p300_p12), %s1064_s12, 6 }
  0x25   : > { %s728_s14 = sshll.u32 (!%p300_p12), %s1064_s12, 4  ;;  %s1076_s25 = scalar_lea.vmem (!%p300_p12), [#allocation5], %s727_s13 }
  0x26   : > { %s1078_s26 = scalar_lea.vmem (!%p300_p12), [#allocation6], %s728_s14  ;;  %p729_p0 = scmp.ne.s32.totalorder (!%p300_p12), %s1007_s22, 0 }
  0x29   : > { %s1070_s15 = scalar_select %p336_p13, %s1007_s22, 1 }
  0x2a   : > { %343 = sbr.rel (%p729_p0) target bundleno = 51 (0x33), region = 81 }
  0x2b   : > { %s338_s23 = scalar_lea.vmem %s1198_s2, %s1070_s15 }
  0x2f   : > { %vm344_vm0 = vcmask 7168   ;;  %v944_v16 = vmov -1e+30   ;;  %v945_v17 = vmov 0.0  }
  0x30   : > { %345 = vst.msk [vmem:[#allocation2] sm:$0xff] %vm344_vm0, %v944_v16  ;;  %346 = vst.msk [vmem:[#allocation2 + $0x8] sm:$0xff] %vm344_vm0, %v944_v16 }
  0x31   : > { %347 = vst.msk [vmem:[#allocation3] sm:$0xff] %vm344_vm0, %v945_v17  ;;  %348 = vst.msk [vmem:[#allocation3 + $0x8] sm:$0xff] %vm344_vm0, %v945_v17 }
  0x32   : > { %349 = vst.msk [vmem:[#allocation4] sm:$0xff] %vm344_vm0, %v945_v17  ;;  %350 = vst.msk [vmem:[#allocation4 + $0x8] sm:$0xff] %vm344_vm0, %v945_v17 }
  0x33 PF: > { %v845_v18 = vld [vmem:[%s1076_s25 + $0x38] sm:$0xff]   ;;  %v946_v19 = vmov 0.0   ;;  %v846_v20 = vld [vmem:[%s1076_s25 + $0x30] sm:$0xff]   ;;  %vm947_vm1 = vmmov 0   ;;  %v847_v21 = vld [vmem:[%s1076_s25 + $0x28] sm:$0xff]   ;;  %v948_v28 = vmov 0   ;;  %v518_v40 = vlaneseq }
  0x34   : > { %761 = vmatprep.subr.bf16.mxu0 %v946_v19  ;;  %777 = vmatprep.mubr.msk.bf16.mxu0 %vm947_vm1, %v946_v19  ;;  %v848_v22 = vld [vmem:[%s1076_s25 + $0x20] sm:$0xff]   ;;  %v849_v23 = vld [vmem:[%s1076_s25 + $0x18] sm:$0xff]   ;;  %v850_v24 = vld [vmem:[%s1076_s25 + $0x10] sm:$0xff]   ;;  %vm513_vm2 = vcmask 7168   ;;  %s740_s11 = sshll.u32 %s1007_s22, 7  ;;  %p743_p1 = scmp.ne.s32.totalorder %s1007_s22, 1 }
  0x35   : > { %762 = vmatpush3.bf16.msra.mxu0 %v845_v18  ;;  %v851_v25 = vld [vmem:[%s1076_s25 + $0x8] sm:$0xff]   ;;  %v852_v26 = vld [vmem:[%s1076_s25] sm:$0xff]   ;;  %v853_v27 = vld [vmem:[%s1196_s0] sm:$0xff]   ;;  %844 = vset.pattern.permute.xlu0 %v948_v28  ;;  %v519_v45 = vand.u32 127, %v518_v40  ;;  %v521_v46 = vstv %s740_s11  ;;  %s950_s6 = smov (!%p743_p1), 1.0  }
  0x36   : > { %763 = vmatprep.subr.bf16.mxu0 %v946_v19  ;;  %843 = vset.pattern.permute.xlu1 %v948_v28  ;;  %v730_v29 = vld [vmem:[%s338_s23] ss:$0 sm:$0xff]  ;;  %v524_v48 = vld [vmem:[%s1199_s3 + $0x8] sm:$0xff] }
  0x37   : > { %v523_v36 = vld [vmem:[%s1199_s3] sm:$0xff]  ;;  %v474_v41 = vld [vmem:[#allocation2 + $0x8] sm:$0xff]  ;;  %v522_v49 = vadd.s32 %v521_v46, %v519_v45 }
  0x38   : > { %v473_v37 = vld [vmem:[#allocation2] sm:$0xff]  ;;  %v487_v6 = vld [vmem:[#allocation3] sm:$0xff]  ;;  %v488_v10 = vld [vmem:[#allocation3 + $0x8] sm:$0xff] }
  0x39   : > { %764 = vmatpush3.bf16.msra.mxu0 %v846_v20  ;;  %v537_v0 = vld [vmem:[#allocation4] sm:$0xff]  ;;  %v538_v15 = vld [vmem:[#allocation4 + $0x8] sm:$0xff] }
  0x3a   : > { %765 = vmatprep.subr.bf16.mxu0 %v946_v19 }
  0x3d   : > { %766 = vmatpush3.bf16.msra.mxu0 %v847_v21 }
  0x3e   : > { %767 = vmatprep.subr.bf16.mxu0 %v946_v19 }
  0x41   : > { %768 = vmatpush3.bf16.msra.mxu0 %v848_v22 }
  0x42   : > { %769 = vmatprep.subr.bf16.mxu0 %v946_v19 }
  0x45   : > { %770 = vmatpush3.bf16.msra.mxu0 %v849_v23 }
  0x46   : > { %771 = vmatprep.subr.bf16.mxu0 %v946_v19 }
  0x49   : > { %772 = vmatpush3.bf16.msra.mxu0 %v850_v24 }
  0x4a   : > { %773 = vmatprep.subr.bf16.mxu0 %v946_v19 }
  0x4d   : > { %774 = vmatpush3.bf16.msra.mxu0 %v851_v25 }
  0x4e   : > { %775 = vmatprep.subr.bf16.mxu0 %v946_v19 }
  0x51   : > { %776 = vmatpush3.bf16.msra.mxu0 %v852_v26 }
  0x54   : > { %778 = vmatmul.mubr.bf16.vlgmr.msra.gmra.mxu0 %v853_v27 }
 0x114   : > { %v464_v30 = vpop.f32.mrf.mxu0 }
 0x115   : > { %v465_v31 = vadd.f32 %v730_v29, %v464_v30 }
 0x116   : > { %v779_v32 = vpop.f32.mrf.mxu0 }
 0x117   : > { %471 = vst [vmem:[%s1078_s26] sm:$0xff] %v465_v31  ;;  %475 = vmax.xlane.f32.xlu0 %v465_v31 }
 0x118   : > { %v467_v33 = vpop.f32.mrf.mxu0 }
 0x119   : > { %v468_v34 = vadd.f32 %v730_v29, %v467_v33 }
 0x11a   : > { %v780_v35 = vpop.f32.mrf.mxu0 }
 0x11b   : > { %472 = vst [vmem:[%s1078_s26 + $0x8] sm:$0xff] %v468_v34  ;;  %477 = vmax.xlane.f32.xlu0 %v468_v34 }
 0x131   : > { %526 = vperm.xlu0 %844, %v523_v36  }
 0x1a0   : > { %v476_v38 = vpop.xlane.xlu0 %475 }
 0x1a1   : > { %v479_v39 = vmax.f32 %v473_v37, %v476_v38 }
 0x1a3   : > { %v481_v42 = vsub.f32 %v473_v37, %v479_v39  ;;  %516 = vst.msk [vmem:[#allocation2] sm:$0xff] %vm513_vm2, %v479_v39  ;;  %493 = vperm.xlu1 %843, %v479_v39  }
 0x1a4   : > { %v478_v43 = vpop.xlane.xlu0 %477 }
 0x1a5   : > { %v480_v44 = vmax.f32 %v474_v41, %v478_v43  ;;  %v483_v3 = vmul.f32 1.442695, %v481_v42 }
 0x1a7   : > { %v482_v47 = vsub.f32 %v474_v41, %v480_v44  ;;  %517 = vst.msk [vmem:[#allocation2 + $0x8] sm:$0xff] %vm513_vm2, %v480_v44  ;;  %498 = vperm.xlu1 %843, %v480_v44  }
 0x1a9   : > { %v485_v4 = vmul.f32 1.442695, %v482_v47 }
 0x1ab   : > { %529 = vperm.xlu1 %843, %v524_v48  }
 0x1ac   : > { %v527_v50 = vpop.permute.xlu0 %526 }
 0x1ad   : > { %vm531_vm3 = vcmp.eq.s32.totalorder %v527_v50, %v522_v49 }
 0x1ae   : > { %v741_v51 = vsel %vm531_vm3, 1.0, %v946_v19 }
 0x1af   : > { %v539_v52 = vmul.f32 %v741_v51, %v465_v31 }
 0x1b1   : > { %541 = vadd.xlane.f32.xlu0 %v539_v52 }
 0x21e   : > { %v494_v53 = vpop.permute.xlu1 %493 }
 0x21f   : > { %v501_v54 = vsub.f32 %v465_v31, %v494_v53 }
 0x221   : > { %v503_v55 = vmul.f32 1.442695, %v501_v54 }
 0x222   : > { %v499_v56 = vpop.permute.xlu1 %498 }
 0x223   : > { %854 = vpow2.f32 %v503_v55  ;;  %v502_v57 = vsub.f32 %v468_v34, %v499_v56 }
 0x225   : > { %v505_v58 = vmul.f32 1.442695, %v502_v57 }
 0x226   : > { %v530_v59 = vpop.permute.xlu1 %529 }
 0x227   : > { %856 = vpow2.f32 %v505_v58  ;;  %vm532_vm4 = vcmp.eq.s32.totalorder %v530_v59, %v522_v49 }
 0x228   : > { %v742_v62 = vsel %vm532_vm4, 1.0, %v946_v19  ;;  %858 = vpow2.f32 %v483_v3 }
 0x229   : > { %v540_v63 = vmul.f32 %v742_v62, %v468_v34  ;;  %860 = vpow2.f32 %v485_v4 }
 0x230   : > { %v855_v60 = vpop.eup %854 }
 0x231   : > { %507 = vadd.xlane.f32.xlu1 %v855_v60 }
 0x234   : > { %v857_v61 = vpop.eup %856 }
 0x235   : > { %509 = vadd.xlane.f32.xlu1 %v857_v61  ;;  %v859_v5 = vpop.eup %858 }
 0x236   : > { %v489_v7 = vmul.f32 %v859_v5, %v487_v6  ;;  %v861_v8 = vpop.eup %860 }
 0x237   : > { %v490_v12 = vmul.f32 %v861_v8, %v488_v10 }
 0x239   : > { %543 = vadd.xlane.f32.xlu1 %v540_v63 }
 0x23a   : > { %v542_v1 = vpop.xlane.xlu0 %541 }
 0x23b   : > { %v545_v2 = vadd.f32 %v542_v1, %v537_v0 }
 0x23d   : > { %547 = vst.msk [vmem:[#allocation4] sm:$0xff] %vm513_vm2, %v545_v2 }
 0x2ba   : > { %v508_v9 = vpop.xlane.xlu1 %507 }
 0x2bb   : > { %v511_v11 = vadd.f32 %v508_v9, %v489_v7 }
 0x2bd   : > { %514 = vst.msk [vmem:[#allocation3] sm:$0xff] %vm513_vm2, %v511_v11 }
 0x2be   : > { %v510_v13 = vpop.xlane.xlu1 %509 }
 0x2bf   : > { %v512_v14 = vadd.f32 %v510_v13, %v490_v12 }
 0x2c1   : > { %515 = vst.msk [vmem:[#allocation3 + $0x8] sm:$0xff] %vm513_vm2, %v512_v14  ;;  %552 = sbr.rel (%p743_p1) target bundleno = 1011 (0x3f3), region = 85 }
 0x2c2   : > { %v544_v16 = vpop.xlane.xlu1 %543 }
 0x2c3   : > { %v546_v17 = vadd.f32 %v544_v16, %v538_v15 }
 0x2c5   : > { %548 = vst.msk [vmem:[#allocation4 + $0x8] sm:$0xff] %vm513_vm2, %v546_v17 }
 0x2c6   : > { %v563_v18 = vld [vmem:[#allocation3] sm:$0xff]  ;;  %v553_v20 = vld [vmem:[%s1199_s3] sm:$0xff]  ;;  %v554_v21 = vld [vmem:[%s1199_s3 + $0x8] sm:$0xff]  ;;  %v949_v31 = vmov 0.0  }
 0x2c7   : > { %862 = vlog2.f32 %v563_v18  ;;  %v561_v23 = vld [vmem:[#allocation2] sm:$0xff]  ;;  %vm555_vm5 = vcmp.ne.s32.totalorder %v553_v20, 4294967196  ;;  %v562_v25 = vld [vmem:[#allocation2 + $0x8] sm:$0xff]  ;;  %vm556_vm6 = vcmp.ne.s32.totalorder %v554_v21, 4294967196 }
 0x2c8   : > { %v564_v19 = vld [vmem:[#allocation3 + $0x8] sm:$0xff]  ;;  %v571_v28 = vld [vmem:[#allocation4] sm:$0xff]  ;;  %v744_v32 = vsel %vm555_vm5, 1.0, %v949_v31  ;;  %v745_v34 = vsel %vm556_vm6, 1.0, %v949_v31 }
 0x2c9   : > { %864 = vlog2.f32 %v564_v19  ;;  %v589_v41 = vsel %vm513_vm2, %v744_v32, 0.0  ;;  %v590_v42 = vsel %vm513_vm2, %v745_v34, 0.0 }
 0x2ca   : > { %v591_v44 = vadd.f32 %v590_v42, %v589_v41 }
 0x2cc   : > { %v572_v30 = vld [vmem:[#allocation4 + $0x8] sm:$0xff] }
 0x2d4   : > { %v863_v22 = vpop.eup %862 }
 0x2d5   : > { %v566_v26 = vmul.f32 0.6931472, %v863_v22 }
 0x2d6   : > { %v865_v24 = vpop.eup %864 }
 0x2d7   : > { %v568_v27 = vmul.f32 0.6931472, %v865_v24  ;;  %v569_v29 = vadd.f32 %v566_v26, %v561_v23 }
 0x2d9   : > { %v570_v33 = vadd.f32 %v568_v27, %v562_v25  ;;  %v573_v35 = vsub.f32 %v569_v29, %v571_v28 }
 0x2db   : > { %v574_v36 = vsub.f32 %v570_v33, %v572_v30  ;;  %v575_v37 = vmul.f32 %v744_v32, %v573_v35 }
 0x2dd   : > { %v576_v38 = vmul.f32 %v745_v34, %v574_v36  ;;  %v577_v39 = vsel %vm513_vm2, %v575_v37, 0.0 }
 0x2df   : > { %v578_v40 = vsel %vm513_vm2, %v576_v38, 0.0 }
 0x2e0   : > { %v579_v43 = vadd.f32 %v578_v40, %v577_v39 }
 0x2e2   : > { %580 = vadd.xlane.f32.xlu0 %v579_v43 }
 0x2e6   : > { %592 = vadd.xlane.f32.xlu0 %v591_v44 }
 0x36b   : > { %v581_v45 = vpop.xlane.xlu0 %580 }
 0x36c   : > { %v582_v46 = vrot.slane %v581_v45, 4 }
 0x36e   : > { %v583_v47 = vadd.f32 %v582_v46, %v581_v45 }
 0x36f   : > { %v593_v48 = vpop.xlane.xlu0 %592 }
 0x370   : > { %v584_v49 = vrot.slane %v583_v47, 2  ;;  %v594_v50 = vrot.slane %v593_v48, 4 }
 0x372   : > { %v595_v51 = vadd.f32 %v594_v50, %v593_v48  ;;  %v585_v52 = vadd.f32 %v584_v49, %v583_v47 }
 0x374   : > { %v596_v53 = vrot.slane %v595_v51, 2  ;;  %v586_v54 = vrot.slane %v585_v52, 1 }
 0x376   : > { %v597_v55 = vadd.f32 %v596_v53, %v595_v51  ;;  %v587_v56 = vadd.f32 %v586_v54, %v585_v52 }
 0x378   : > { %781 = vpush %v587_v56  ;;  %v598_v57 = vrot.slane %v597_v55, 1 }
 0x37a   : > { %v599_v58 = vadd.f32 %v598_v57, %v597_v55 }
 0x37c   : > { %783 = vpush %v599_v58 }
 0x3a9   : > { %s782_s25 = spop %781 }
 0x3ad   : > { %s784_s30 = spop %783 }
 0x3ae   : > { %s601_s7 = smax.f32 %s950_s6, %s784_s30 }
 0x3af   : > { %v602_v59 = vstv %s601_s7 }
 0x3b0   : > { %866 = vrcp.f32 %v602_v59 }
 0x3bd   : > { %v867_v60 = vpop.eup %866 }
 0x3be   : > { %785 = vpush %v867_v60 }
 0x3ef   : > { %s786_s8 = spop %785 }
 0x3f0   : > { %s605_s9 = smul.f32 %s786_s8, %s782_s25 }
 0x3f2   : > { %607 = sst [smem:[#allocation9]] %s605_s9 }
 0x3f3 PF: > { %s1141_s14 = scalar_lea.hbm %s1200_s4, %s740_s11  ;;  %s621_s15 = sshll.u32 %s1078_s26, 4  ;;  %s1144_s15 = int_to_ptr.vmem [resolvable:$true] %s621_s15 }
 0x3f4   : > { %s609_s16 = scalar_lea.sflag [#allocation7], %s1064_s12  ;;  %s868_s17 = scalar_lea.vmem %s1144_s15, 256 }
 0x3f5   : > { %p869_p2 = scmp.ne.s32.totalorder %s1144_s15, %s868_s17  ;;  %s951_s23 = smov [#allocation6]  }
 0x3f6   : > { %s872_s25 = sshll.u32 %s951_s23, 4  ;;  %s873_s25 = int_to_ptr.vmem [resolvable:$false] %s872_s25 }
 0x3f7   : > { %p870_p4 = pnand %p869_p2, %p1027_p6  ;;  %s874_s30 = scalar_lea.vmem %s873_s25, 512 }
 0x3f8   : > { %p875_p7 = scmp.lt.s32.totalorder %s1144_s15, %s873_s25  ;;  %p876_p10 = scmp.lt.s32.totalorder %s874_s30, %s868_s17 }
 0x3f9   : > { %p871_p5 = pneg %p870_p4 }
 0x3fa   : > { %p877_p11 = por %p876_p10, %p875_p7 }
 0x3fc   : > { %p878_p12 = pnand %p877_p11, %p871_p5 }
 0x3fe   : > { %881 = shalt.err (!%p878_p12)
}
 0x3ff   : > { %s882_s26 = scalar_lea.hbm %s1141_s14, 256  ;;  %s886_s7 = scalar_lea.hbm %s1200_s4, 512 }
 0x400   : > { %p883_p13 = scmp.ne.s32.totalorder %s1141_s14, %s882_s26  ;;  %p887_p2 = scmp.lt.s32.totalorder %s1141_s14, %s1200_s4 }
 0x401   : > { %p888_p4 = scmp.lt.s32.totalorder %s886_s7, %s882_s26 }
 0x402   : > { %p884_p0 = pnand %p883_p13, %p1027_p6 }
 0x403   : > { %p889_p5 = por %p888_p4, %p887_p2 }
 0x404   : > { %p885_p1 = pneg %p884_p0 }
 0x406   : > { %p890_p7 = pnand %p889_p5, %p885_p1 }
 0x408   : > { %893 = shalt.err (!%p890_p7)
}
 0x409   : > { %s952_s10 = smov 128   ;;  %s953_s13 = smov 256  }
 0x40a   : > { %s954_s17 = smov 8   ;;  %s955_s23 = smov [#allocation9]  }
 0x40b   : > { %787 = dma.vmem_to_hbm [thread:$0]  (%p1027_p6), %s1144_s15, 256, %s1141_s14, %s609_s16, %s952_s10, %s953_s13, %s954_s17  }
 0x40c   : > { %789 = dma.smem_to_hbm (%p132_p3), %s955_s23, 16, %s1201_s5, [#allocation8]  }
 0x40d   : > { %921 = dma.done.wait (%p132_p3), [#allocation8], 16  }
 0x40e   : > { %923 = vsyncadd (%p132_p3), [#allocation8], 4294967280 }
 0x40f   : > { %641 = sfence }
 0x410 PF: > { %s650_s26 = sand.u32 1, %s930_s18   ;;  %p794_p6 = pnand %p723_p9, %p1031_p8 }
 0x411   : > { %s651_s28 = scalar_lea.sflag [#allocation7], %s650_s26 }
 0x412   : > { %p795_p10 = pneg %p794_p6 }
 0x414   : > { %925 = dma.done.wait (%p795_p10), %s651_s28, 256  }
 0x415   : > { %927 = vsyncadd (%p795_p10), %s651_s28, 4294967040  ;;  %p17_p11 = scmp.ge.s32.totalorder %s1011_s24, 4   ;;  %s1204_s18 = smov %s934_s19 }
 0x416   : > { %s1205_s19 = smov %s938_s20  ;;  %s1206_s20 = smov %s1023_s27 }
 0x417   : > { %s1207_s21 = smov %s1011_s24  ;;  %19 = sbr.rel (!%p17_p11) target bundleno = 4 (0x4), region = 138 }
 0x41c   :  { %656 = vsyncpa [#allocation7], 1 }
 0x41d   :  { %658 = vsyncpa [#allocation7 + $0x1], 1 }
 0x41e   :  { %659 = vsyncpa [#allocation8], 1 }
 0x41f   :  { %661 = vsyncpa [#allocation8 + $0x1], 1 }

// kernel: molqa_forward.5
= control target key start
LH: loop header
LB: loop body
LE: loop exit
PB: predicated region body
PF: predicated region fallthrough
CT: control target
= control target key end

     0   :  { %v1596_v28 = vmov 0   ;;  %v1597_v60 = vmov 0.0   ;;  %vm1598_vm0 = vmmov 0   ;;  %vm460_vm1 = vcmask 130048   ;;  %s1995_s0 = inlined_call_operand.vmem [shape: f32[2,16,128], index: 0, kind: input, shape index: {}]   ;;  %s1996_s2 = inlined_call_operand.vmem [shape: bf16[128,384], index: 2, kind: input, shape index: {}]   ;;  %s1997_s4 = inlined_call_operand.vmem [shape: f32[2,128], index: 4, kind: input, shape index: {}]   ;;  %s1998_s1 = inlined_call_operand.vmem [shape: f32[2,1,16], index: 1, kind: input, shape index: {}]   ;;  %s1999_s3 = inlined_call_operand.vmem [shape: bf16[128,128], index: 3, kind: input, shape index: {}]   ;;  %s2000_s5 = inlined_call_operand.vmem [shape: bf16[128,256], index: 5, kind: input, shape index: {}]   ;;  %s2001_s7 = inlined_call_operand.vmem [shape: bf16[256,128], index: 7, kind: input, shape index: {}]   ;;  %s2002_s9 = inlined_call_operand.vmem [shape: bf16[128,128], index: 9, kind: input, shape index: {}]   ;;  %s2003_s6 = inlined_call_operand.vmem [shape: f32[1,256], index: 6, kind: input, shape index: {}]   ;;  %s2004_s8 = inlined_call_operand.vmem [shape: f32[1,128], index: 8, kind: input, shape index: {}]   ;;  %s2005_s10 = inlined_call_operand.vmem [shape: f32[1,128], index: 10, kind: input, shape index: {}]   ;;  %s2006_s11 = inlined_call_operand.vmem [shape: f32[2,16,128], index: 11, kind: output, shape index: {}]  }
   0x1   :  { %v1662_v0 = vld [vmem:[%s1995_s0] sm:$0xff]  ;;  %v1667_v1 = vld [vmem:[%s1995_s0 + $0x10] sm:$0xff]  ;;  %v1672_v2 = vld [vmem:[%s1995_s0 + $0x8] sm:$0xff]  ;;  %282 = vmatprep.mubr.bf16.mxu0 %v1596_v28 }
   0x2   :  { %v51_v3 = vmul.f32 %v1662_v0, %v1662_v0  ;;  %v53_v4 = vmul.f32 %v1667_v1, %v1667_v1  ;;  %v1681_v5 = vld [vmem:[%s1995_s0 + $0x18] sm:$0xff]  ;;  %v1478_v7 = vld [vmem:[%s1996_s2 + $0xa8] ss:$12 sps:$4 sm:$0xff]   ;;  %v52_v8 = vmul.f32 %v1672_v2, %v1672_v2  ;;  %v1487_v16 = vld [vmem:[%s1996_s2 + $0x80] ss:$12 sps:$4 sm:$0xff]  }
   0x3   :  { %v1476_v6 = vld [vmem:[%s1996_s2 + $0xac] ss:$12 sps:$4 sm:$0xff]   ;;  %v54_v9 = vmul.f32 %v1681_v5, %v1681_v5  ;;  %v1479_v10 = vld [vmem:[%s1996_s2 + $0xb0] ss:$12 sps:$4 sm:$0xff]   ;;  %v1480_v11 = vld [vmem:[%s1996_s2 + $0x94] ss:$12 sps:$4 sm:$0xff]  }
   0x4   :  { %55 = vadd.xlane.f32.xlu0 %v51_v3  ;;  %59 = vadd.xlane.f32.xlu1 %v53_v4  ;;  %v1482_v12 = vld [vmem:[%s1996_s2 + $0x90] ss:$12 sps:$4 sm:$0xff]   ;;  %v1483_v13 = vld [vmem:[%s1996_s2 + $0x98] ss:$12 sps:$4 sm:$0xff]   ;;  %v1490_v18 = vld [vmem:[%s1996_s2 + $0x60] ss:$12 sps:$4 sm:$0xff]  }
   0x5   :  { %250 = vmatprep.subr.bf16.mxu0 %v1476_v6  ;;  %1389 = vmatprep.subr.bf16.mxu1 %v1479_v10  ;;  %v1484_v14 = vld [vmem:[%s1996_s2 + $0x7c] ss:$12 sps:$4 sm:$0xff]   ;;  %v1486_v15 = vld [vmem:[%s1996_s2 + $0x78] ss:$12 sps:$4 sm:$0xff]   ;;  %v1496_v23 = vld [vmem:[%s1996_s2 + $0x34] ss:$12 sps:$4 sm:$0xff]  }
   0x6   :  { %251 = vmatpush1.bf16.msra.mxu0 %v1478_v7  ;;  %1390 = vmatpush3.bf16.msra.mxu1 %v1479_v10  ;;  %v1488_v17 = vld [vmem:[%s1996_s2 + $0x64] ss:$12 sps:$4 sm:$0xff]   ;;  %v1491_v19 = vld [vmem:[%s1996_s2 + $0x68] ss:$12 sps:$4 sm:$0xff]   ;;  %v1492_v20 = vld [vmem:[%s1996_s2 + $0x4c] ss:$12 sps:$4 sm:$0xff]  }
   0x7   :  { %252 = vmatprep.subr.bf16.mxu0 %v1480_v11  ;;  %1391 = vmatprep.subr.bf16.mxu1 %v1483_v13  ;;  %v1494_v21 = vld [vmem:[%s1996_s2 + $0x48] ss:$12 sps:$4 sm:$0xff]   ;;  %v1495_v22 = vld [vmem:[%s1996_s2 + $0x50] ss:$12 sps:$4 sm:$0xff]   ;;  %v1499_v24 = vld [vmem:[%s1996_s2 + $0x38] ss:$12 sps:$4 sm:$0xff]  }
   0x8   :  { %57 = vadd.xlane.f32.xlu0 %v52_v8  ;;  %61 = vadd.xlane.f32.xlu1 %v54_v9  ;;  %v1498_v25 = vld [vmem:[%s1996_s2 + $0x30] ss:$12 sps:$4 sm:$0xff]   ;;  %v1503_v27 = vld [vmem:[%s1996_s2 + $0x20] ss:$12 sps:$4 sm:$0xff]   ;;  %v1502_v29 = vld [vmem:[%s1996_s2 + $0x18] ss:$12 sps:$4 sm:$0xff]  }
   0x9   :  { %v1500_v26 = vld [vmem:[%s1996_s2 + $0x1c] ss:$12 sps:$4 sm:$0xff]   ;;  %v1504_v30 = vld [vmem:[%s1996_s2 + $0x4] ss:$12 sps:$4 sm:$0xff]   ;;  %v1506_v32 = vld [vmem:[%s1996_s2] ss:$12 sps:$4 sm:$0xff]  }
   0xa   :  { %253 = vmatpush1.bf16.msra.mxu0 %v1482_v12  ;;  %1392 = vmatpush3.bf16.msra.mxu1 %v1483_v13  ;;  %v1507_v31 = vld [vmem:[%s1996_s2 + $0x8] ss:$12 sps:$4 sm:$0xff]   ;;  %v1245_v50 = vld [vmem:[%s1997_s4] ss:$0 sm:$0xff] }
   0xb   :  { %254 = vmatprep.subr.bf16.mxu0 %v1484_v14  ;;  %1393 = vmatprep.subr.bf16.mxu1 %v1487_v16 }
   0xe   :  { %255 = vmatpush1.bf16.msra.mxu0 %v1486_v15  ;;  %1394 = vmatpush3.bf16.msra.mxu1 %v1487_v16 }
   0xf   :  { %256 = vmatprep.subr.bf16.mxu0 %v1488_v17  ;;  %1395 = vmatprep.subr.bf16.mxu1 %v1491_v19 }
  0x12   :  { %257 = vmatpush1.bf16.msra.mxu0 %v1490_v18  ;;  %1396 = vmatpush3.bf16.msra.mxu1 %v1491_v19  ;;  %v446_v19 = vlaneseq }
  0x13   :  { %258 = vmatprep.subr.bf16.mxu0 %v1492_v20  ;;  %1397 = vmatprep.subr.bf16.mxu1 %v1495_v22  ;;  %v43_v20 = vld [vmem:[%s1998_s1] sm:$0x1] }
  0x16   :  { %259 = vmatpush1.bf16.msra.mxu0 %v1494_v21  ;;  %1398 = vmatpush3.bf16.msra.mxu1 %v1495_v22  ;;  %v1243_v21 = vadd.f32 -1.0, %v43_v20  ;;  %v1775_v22 = vshrl.u32 %v446_v19, 7 }
  0x17   :  { %260 = vmatprep.subr.bf16.mxu0 %v1496_v23  ;;  %1399 = vmatprep.subr.bf16.mxu1 %v1499_v24 }
  0x18   :  { %v47_v23 = vmul.f32 1e+09, %v1243_v21  ;;  %v1509_v21 = vld [vmem:[%s1999_s3 + $0x30] sm:$0xff]  }
  0x1a   :  { %261 = vmatpush1.bf16.msra.mxu0 %v1498_v25  ;;  %1400 = vmatpush3.bf16.msra.mxu1 %v1499_v24  ;;  %v1778_v24 = vsub.s32 0, %v1775_v22  ;;  %v44_v25 = vld [vmem:[%s1998_s1 + $0x1] sm:$0x1] }
  0x1b   :  { %262 = vmatprep.subr.bf16.mxu0 %v1500_v26  ;;  %1401 = vmatprep.subr.bf16.mxu1 %v1503_v27 }
  0x1c   :  { %v449_v26 = vrot.slane %v47_v23, %v1778_v24 }
  0x1e   :  { %263 = vmatpush1.bf16.msra.mxu0 %v1502_v29  ;;  %1402 = vmatpush3.bf16.msra.mxu1 %v1503_v27  ;;  %v1244_v27 = vadd.f32 -1.0, %v44_v25  ;;  %v1510_v25 = vld [vmem:[%s1999_s3 + $0x28] sm:$0xff]  }
  0x1f   :  { %264 = vmatprep.subr.bf16.mxu0 %v1504_v30  ;;  %1403 = vmatprep.subr.bf16.mxu1 %v1507_v31 }
  0x22   :  { %265 = vmatpush1.bf16.msra.mxu0 %v1506_v32  ;;  %1404 = vmatpush3.bf16.msra.mxu1 %v1507_v31 }
  0x23   :  { %1409 = vmatprep.subr.bf16.mxu1 %v1597_v60  ;;  %1415 = vmatprep.subr.bf16.mxu0 %v1597_v60 }
  0x8d   :  { %v56_v33 = vpop.xlane.xlu0 %55  ;;  %v60_v34 = vpop.xlane.xlu1 %59 }
  0x8e   :  { %v64_v35 = vmul.f32 0.0078125, %v56_v33  ;;  %v66_v36 = vmul.f32 0.0078125, %v60_v34  ;;  %v48_v33 = vmul.f32 1e+09, %v1244_v27 }
  0x90   :  { %v68_v37 = vadd.f32 1e-06, %v64_v35  ;;  %v70_v38 = vadd.f32 1e-06, %v66_v36 }
  0x91   :  { %v58_v39 = vpop.xlane.xlu0 %57  ;;  %v62_v40 = vpop.xlane.xlu1 %61 }
  0x92   :  { %1564 = vrsqrt.f32 %v68_v37  ;;  %v65_v41 = vmul.f32 0.0078125, %v58_v39  ;;  %v67_v42 = vmul.f32 0.0078125, %v62_v40  ;;  %v453_v39 = vrot.slane %v48_v33, %v1778_v24  ;;  %v1513_v33 = vld [vmem:[%s1999_s3 + $0x10] sm:$0xff]  }
  0x93   :  { %1566 = vrsqrt.f32 %v70_v38 }
  0x94   :  { %v69_v43 = vadd.f32 1e-06, %v65_v41  ;;  %v71_v44 = vadd.f32 1e-06, %v67_v42 }
  0x96   :  { %1568 = vrsqrt.f32 %v69_v43 }
  0x97   :  { %1570 = vrsqrt.f32 %v71_v44 }
  0x9f   :  { %v1565_v45 = vpop.eup %1564 }
  0xa0   :  { %v1567_v46 = vpop.eup %1566  ;;  %v76_v48 = vmul.f32 %v1565_v45, %v1662_v0 }
  0xa1   :  { %v78_v47 = vmul.f32 %v1567_v46, %v1667_v1 }
  0xa2   :  { %v84_v55 = vmul.f32 %v1245_v50, %v76_v48 }
  0xa3   :  { %v1569_v49 = vpop.eup %1568  ;;  %v86_v54 = vmul.f32 %v1245_v50, %v78_v47 }
  0xa4   :  { %v1571_v51 = vpop.eup %1570  ;;  %v77_v52 = vmul.f32 %v1569_v49, %v1672_v2 }
  0xa5   :  { %v79_v53 = vmul.f32 %v1571_v51, %v1681_v5 }
  0xa6   :  { %v85_v56 = vmul.f32 %v1245_v50, %v77_v52 }
  0xa7   :  { %v87_v57 = vmul.f32 %v1245_v50, %v79_v53 }
  0xa8   :  { %v88_v58 = vpack.c.bf16 %v85_v56, %v84_v55 }
  0xa9   :  { %v89_v59 = vpack.c.bf16 %v87_v57, %v86_v54 }
  0xaa   :  { %283 = vmatmul.mubr.bf16.vlgmr.msra.gmra.mxu0 %v88_v58  ;;  %1405 = vmatprep.mubr.bf16.mxu1 %v88_v58 }
  0xab   :  { %1406 = vmatmul.mubr.bf16.vlgmr.msra.gmra.mxu1 %v89_v59  ;;  %292 = vmatprep.mubr.bf16.mxu0 %v1596_v28 }
  0xac   :  { %1411 = vmatprep.mubr.msk.bf16.mxu1 %vm1598_vm0, %v1597_v60 }
  0xb2   :  { %293 = vmatmul.mubr.bf16.gmra.mxu0 %v89_v59 }
  0xb3   :  { %1417 = vmatprep.mubr.msk.bf16.mxu0 %vm1598_vm0, %v1597_v60 }
 0x16a   :  { %v284_v61 = vpop.f32.mrf.mxu0 }
 0x16b   :  { %v1407_v62 = vpop.f32.mrf.mxu1 }
 0x16c   :  { %v286_v63 = vpop.f32.mrf.mxu0 }
 0x16d   :  { %v337_v3 = vpop.f32.mrf.mxu1 }
 0x16e   :  { %v288_v4 = vpop.f32.mrf.mxu0 }
 0x16f   :  { %v1408_v8 = vpop.f32.mrf.mxu1  ;;  %v352_v13 = vpack.c.bf16 %v288_v4, %v284_v61 }
 0x170   :  { %v290_v6 = vpop.f32.mrf.mxu0  ;;  %v357_v18 = vpack.c.bf16 %v1408_v8, %v1407_v62 }
 0x171   :  { %v354_v7 = vpack.c.bf16 %v290_v6, %v286_v63  ;;  %v340_v11 = vpop.f32.mrf.mxu1 }
 0x172   :  { %v294_v9 = vpop.f32.mrf.mxu0  ;;  %v356_v15 = vpack.c.bf16 %v340_v11, %v337_v3  ;;  %v1508_v11 = vld [vmem:[%s1999_s3 + $0x38] sm:$0xff]  }
 0x173   :  { %1410 = vmatpush3.bf16.xpose.msra.mxu1 %v354_v7 }
 0x174   :  { %v296_v10 = vpop.f32.mrf.mxu0  ;;  %1421 = vmatprep.subr.bf16.mxu1 %v1597_v60 }
 0x176   :  { %v298_v12 = vpop.f32.mrf.mxu0 }
 0x177   :  { %v353_v17 = vpack.c.bf16 %v298_v12, %v294_v9 }
 0x178   :  { %v300_v14 = vpop.f32.mrf.mxu0 }
 0x179   :  { %v355_v16 = vpack.c.bf16 %v300_v14, %v296_v10 }
 0x17a   :  { %1412 = vmatmul.mubr.bf16.vlgmr.msra.gmra.mxu1 %v352_v13 }
 0x17b   :  { %1416 = vmatpush3.bf16.xpose.msra.mxu0 %v355_v16  ;;  %1422 = vmatpush3.bf16.msra.mxu1 %v356_v15 }
 0x17c   :  { %1427 = vmatprep.subr.bf16.mxu0 %v1597_v60  ;;  %1423 = vmatprep.mubr.msk.bf16.mxu1 %vm1598_vm0, %v1597_v60 }
 0x17d   :  { %1433 = vmatprep.subr.bf16.mxu1 %v1508_v11 }
 0x182   :  { %1418 = vmatmul.mubr.bf16.vlgmr.msra.gmra.mxu0 %v353_v17 }
 0x183   :  { %1428 = vmatpush3.bf16.msra.mxu0 %v357_v18  ;;  %1429 = vmatprep.mubr.msk.bf16.mxu0 %vm1598_vm0, %v1597_v60 }
 0x23a   :  { %v392_v29 = vpop.f32.mrf.mxu1 }
 0x23b   :  { %v440_v30 = vmul.f32 0.088388346, %v392_v29 }
 0x23c   :  { %v1413_v31 = vpop.f32.mrf.mxu1 }
 0x23d   :  { %v456_v32 = vadd.f32 %v449_v26, %v440_v30  ;;  %v1511_v31 = vld [vmem:[%s1999_s3 + $0x20] sm:$0xff]  }
 0x23e   :  { %v395_v34 = vpop.f32.mrf.mxu1 }
 0x23f   :  { %v441_v35 = vmul.f32 0.088388346, %v395_v34  ;;  %v461_v36 = vsel %vm460_vm1, %v456_v32, -inf  ;;  %v1514_v34 = vld [vmem:[%s1999_s3 + $0x8] sm:$0xff]  }
 0x240   :  { %462 = vmax.xlane.f32.xlu0 %v461_v36  ;;  %v1414_v37 = vpop.f32.mrf.mxu1 }
 0x241   :  { %v457_v38 = vadd.f32 %v449_v26, %v441_v35  ;;  %v1515_v35 = vld [vmem:[%s1999_s3] sm:$0xff]  }
 0x242   :  { %v433_v40 = vpop.f32.mrf.mxu0 }
 0x243   :  { %v442_v41 = vmul.f32 0.088388346, %v433_v40  ;;  %v464_v42 = vsel %vm460_vm1, %v457_v38, -inf }
 0x244   :  { %465 = vmax.xlane.f32.xlu1 %v464_v42  ;;  %v1419_v43 = vpop.f32.mrf.mxu0 }
 0x245   :  { %v458_v44 = vadd.f32 %v453_v39, %v442_v41 }
 0x246   :  { %v436_v45 = vpop.f32.mrf.mxu0 }
 0x247   :  { %v443_v46 = vmul.f32 0.088388346, %v436_v45  ;;  %v467_v47 = vsel %vm460_vm1, %v458_v44, -inf }
 0x248   :  { %468 = vmax.xlane.f32.xlu0 %v467_v47  ;;  %v1420_v48 = vpop.f32.mrf.mxu0  ;;  %v1518_v47 = vld [vmem:[%s2000_s5 + $0x74] ss:$8 sps:$4 sm:$0xff]  }
 0x249   :  { %v459_v49 = vadd.f32 %v453_v39, %v443_v46  ;;  %v1516_v46 = vld [vmem:[%s2000_s5 + $0x70] ss:$8 sps:$4 sm:$0xff]   ;;  %860 = vmatprep.subr.bf16.mxu0 %v1518_v47 }
 0x24b   :  { %v470_v50 = vsel %vm460_vm1, %v459_v49, -inf }
 0x24c   :  { %471 = vmax.xlane.f32.xlu1 %v470_v50 }
 0x2c9   :  { %v463_v51 = vpop.xlane.xlu0 %462 }
 0x2ca   :  { %v473_v52 = vsub.f32 %v456_v32, %v463_v51  ;;  %v1512_v32 = vld [vmem:[%s1999_s3 + $0x18] sm:$0xff]  }
 0x2cc   :  { %v477_v53 = vmul.f32 1.442695, %v473_v52 }
 0x2cd   :  { %v466_v54 = vpop.xlane.xlu1 %465 }
 0x2ce   :  { %1572 = vpow2.f32 %v477_v53  ;;  %v474_v55 = vsub.f32 %v457_v38, %v466_v54 }
 0x2d0   :  { %v479_v56 = vmul.f32 1.442695, %v474_v55 }
 0x2d1   :  { %v469_v57 = vpop.xlane.xlu0 %468 }
 0x2d2   :  { %1574 = vpow2.f32 %v479_v56  ;;  %v475_v58 = vsub.f32 %v458_v44, %v469_v57 }
 0x2d4   :  { %v481_v59 = vmul.f32 1.442695, %v475_v58  ;;  %v1524_v58 = vld [vmem:[%s2000_s5 + $0x54] ss:$8 sps:$4 sm:$0xff]  }
 0x2d5   :  { %v472_v60 = vpop.xlane.xlu1 %471 }
 0x2d6   :  { %1576 = vpow2.f32 %v481_v59  ;;  %v476_v61 = vsub.f32 %v459_v49, %v472_v60  ;;  %v1522_v59 = vld [vmem:[%s2000_s5 + $0x50] ss:$8 sps:$4 sm:$0xff]   ;;  %v1527_v60 = vld [vmem:[%s2000_s5 + $0x44] ss:$8 sps:$4 sm:$0xff]  }
 0x2d8   :  { %v483_v62 = vmul.f32 1.442695, %v476_v61  ;;  %v1525_v61 = vld [vmem:[%s2000_s5 + $0x40] ss:$8 sps:$4 sm:$0xff]  }
 0x2da   :  { %1578 = vpow2.f32 %v483_v62  ;;  %v1530_v62 = vld [vmem:[%s2000_s5 + $0x34] ss:$8 sps:$4 sm:$0xff]  }
 0x2db   :  { %v1573_v63 = vpop.eup %1572 }
 0x2dc   :  { %v485_v3 = vsel %vm460_vm1, %v1573_v63, 0.0 }
 0x2dd   :  { %486 = vadd.xlane.f32.xlu0 %v485_v3  ;;  %v1533_v3 = vld [vmem:[%s2000_s5 + $0x24] ss:$8 sps:$4 sm:$0xff]  }
 0x2df   :  { %v1575_v4 = vpop.eup %1574 }
 0x2e0   :  { %v488_v6 = vsel %vm460_vm1, %v1575_v4, 0.0 }
 0x2e1   :  { %489 = vadd.xlane.f32.xlu1 %v488_v6  ;;  %v1536_v6 = vld [vmem:[%s2000_s5 + $0x14] ss:$8 sps:$4 sm:$0xff]  }
 0x2e3   :  { %v1577_v7 = vpop.eup %1576 }
 0x2e4   :  { %v491_v8 = vsel %vm460_vm1, %v1577_v7, 0.0 }
 0x2e5   :  { %492 = vadd.xlane.f32.xlu0 %v491_v8  ;;  %v1539_v8 = vld [vmem:[%s2000_s5 + $0x4] ss:$8 sps:$4 sm:$0xff]  }
 0x2e7   :  { %v1579_v9 = vpop.eup %1578 }
 0x2e8   :  { %v494_v10 = vsel %vm460_vm1, %v1579_v9, 0.0 }
 0x2e9   :  { %495 = vadd.xlane.f32.xlu1 %v494_v10  ;;  %v1540_v10 = vld [vmem:[%s2001_s7 + $0x78] sm:$0xff]  }
 0x366   :  { %v487_v12 = vpop.xlane.xlu0 %486 }
 0x367   :  { %1580 = vrcp.f32 %v487_v12  ;;  %v1542_v12 = vld [vmem:[%s2001_s7 + $0x70] sm:$0xff]  }
 0x36a   :  { %v490_v13 = vpop.xlane.xlu1 %489 }
 0x36b   :  { %1582 = vrcp.f32 %v490_v13  ;;  %v1543_v13 = vld [vmem:[%s2001_s7 + $0x30] sm:$0xff]  }
 0x36e   :  { %v493_v14 = vpop.xlane.xlu0 %492 }
 0x36f   :  { %1584 = vrcp.f32 %v493_v14  ;;  %v1544_v14 = vld [vmem:[%s2001_s7 + $0x68] sm:$0xff]  }
 0x372   :  { %v496_v15 = vpop.xlane.xlu1 %495 }
 0x373   :  { %1586 = vrcp.f32 %v496_v15  ;;  %v1545_v15 = vld [vmem:[%s2001_s7 + $0x28] sm:$0xff]  }
 0x374   :  { %v1581_v16 = vpop.eup %1580 }
 0x375   :  { %v501_v18 = vmul.f32 %v1581_v16, %v1573_v63  ;;  %v1528_v63 = vld [vmem:[%s2000_s5 + $0x30] ss:$8 sps:$4 sm:$0xff]   ;;  %v1546_v16 = vld [vmem:[%s2001_s7 + $0x60] sm:$0xff]  }
 0x378   :  { %v1583_v17 = vpop.eup %1582 }
 0x379   :  { %v502_v19 = vmul.f32 %v1583_v17, %v1575_v4  ;;  %v1531_v4 = vld [vmem:[%s2000_s5 + $0x20] ss:$8 sps:$4 sm:$0xff]  }
 0x37a   :  { %v1547_v17 = vld [vmem:[%s2001_s7 + $0x20] sm:$0xff]  }
 0x37b   :  { %v505_v20 = vpack.c.bf16 %v502_v19, %v501_v18  ;;  %v1548_v18 = vld [vmem:[%s2001_s7 + $0x58] sm:$0xff]  }
 0x37c   :  { %v1585_v23 = vpop.eup %1584  ;;  %v1549_v19 = vld [vmem:[%s2001_s7 + $0x18] sm:$0xff]  }
 0x37d   :  { %1424 = vmatmul.mubr.msk.bf16.vlgmr.msra.gmra.mxu1 %vm460_vm1, %v505_v20  ;;  %v503_v27 = vmul.f32 %v1585_v23, %v1577_v7  ;;  %v1534_v7 = vld [vmem:[%s2000_s5 + $0x10] ss:$8 sps:$4 sm:$0xff]  }
 0x37e   :  { %1434 = vmatpush3.bf16.msra.mxu1 %v1508_v11  ;;  %v1541_v11 = vld [vmem:[%s2001_s7 + $0x38] sm:$0xff]  }
 0x37f   :  { %1435 = vmatprep.subr.bf16.mxu1 %v1509_v21 }
 0x380   :  { %v1587_v26 = vpop.eup %1586 }
 0x381   :  { %v504_v29 = vmul.f32 %v1587_v26, %v1579_v9  ;;  %v1537_v9 = vld [vmem:[%s2000_s5] ss:$8 sps:$4 sm:$0xff]  }
 0x382   :  { %1436 = vmatpush3.bf16.msra.mxu1 %v1509_v21 }
 0x383   :  { %v506_v30 = vpack.c.bf16 %v504_v29, %v503_v27  ;;  %1437 = vmatprep.subr.bf16.mxu1 %v1510_v25 }
 0x385   :  { %1430 = vmatmul.mubr.msk.bf16.vlgmr.msra.gmra.mxu0 %vm460_vm1, %v506_v30 }
 0x386   :  { %1438 = vmatpush3.bf16.msra.mxu1 %v1510_v25  ;;  %892 = vmatprep.mubr.bf16.mxu0 %v1596_v28 }
 0x387   :  { %1439 = vmatprep.subr.bf16.mxu1 %v1511_v31  ;;  %861 = vmatpush1.bf16.msra.mxu0 %v1516_v46 }
 0x38a   :  { %1440 = vmatpush3.bf16.msra.mxu1 %v1511_v31 }
 0x38b   :  { %1441 = vmatprep.subr.bf16.mxu1 %v1512_v32 }
 0x38e   :  { %1442 = vmatpush3.bf16.msra.mxu1 %v1512_v32 }
 0x38f   :  { %1443 = vmatprep.subr.bf16.mxu1 %v1513_v33 }
 0x392   :  { %1444 = vmatpush3.bf16.msra.mxu1 %v1513_v33 }
 0x393   :  { %1445 = vmatprep.subr.bf16.mxu1 %v1514_v34 }
 0x396   :  { %1446 = vmatpush3.bf16.msra.mxu1 %v1514_v34 }
 0x397   :  { %1447 = vmatprep.subr.bf16.mxu1 %v1515_v35 }
 0x39a   :  { %1448 = vmatpush3.bf16.msra.mxu1 %v1515_v35 }
 0x39b   :  { %1351 = vmatprep.subr.bf16.mxu1 %v1540_v10 }
 0x43d   :  { %v544_v36 = vpop.f32.mrf.mxu1 }
 0x43f   :  { %v1425_v37 = vpop.f32.mrf.mxu1 }
 0x441   :  { %v547_v38 = vpop.f32.mrf.mxu1 }
 0x442   :  { %v595_v39 = vpack.c.bf16 %v547_v38, %v544_v36  ;;  %v1280_v38 = vld [vmem:[%s1997_s4 + $0x1] ss:$0 sm:$0xff] }
 0x443   :  { %v1426_v40 = vpop.f32.mrf.mxu1 }
 0x444   :  { %1449 = vmatprep.mubr.bf16.mxu1 %v595_v39 }
 0x445   :  { %v588_v41 = vpop.f32.mrf.mxu0 }
 0x447   :  { %v1431_v42 = vpop.f32.mrf.mxu0 }
 0x449   :  { %v591_v43 = vpop.f32.mrf.mxu0 }
 0x44a   :  { %v596_v44 = vpack.c.bf16 %v591_v43, %v588_v41 }
 0x44b   :  { %v1432_v45 = vpop.f32.mrf.mxu0 }
 0x44c   :  { %1450 = vmatmul.mubr.bf16.vlgmr.msra.gmra.mxu1 %v596_v44 }
 0x44d   :  { %1352 = vmatpush3.bf16.msra.mxu1 %v1541_v11 }
 0x44e   :  { %1353 = vmatprep.subr.bf16.mxu1 %v1542_v12 }
 0x451   :  { %1354 = vmatpush3.bf16.msra.mxu1 %v1543_v13 }
 0x452   :  { %1355 = vmatprep.subr.bf16.mxu1 %v1544_v14 }
 0x455   :  { %1356 = vmatpush3.bf16.msra.mxu1 %v1545_v15 }
 0x456   :  { %1357 = vmatprep.subr.bf16.mxu1 %v1546_v16 }
 0x459   :  { %1358 = vmatpush3.bf16.msra.mxu1 %v1547_v17 }
 0x45a   :  { %1359 = vmatprep.subr.bf16.mxu1 %v1548_v18 }
 0x45d   :  { %1360 = vmatpush3.bf16.msra.mxu1 %v1549_v19 }
 0x50c   :  { %v1451_v48 = vpop.f32.mrf.mxu1 }
 0x50d   :  { %v1830_v52 = vadd.f32 %v1451_v48, %v1667_v1 }
 0x50e   :  { %v695_v49 = vpop.f32.mrf.mxu1 }
 0x50f   :  { %v1827_v50 = vadd.f32 %v695_v49, %v1662_v0  ;;  %v716_v57 = vmul.f32 %v1830_v52, %v1830_v52 }
 0x510   :  { %v1452_v51 = vpop.f32.mrf.mxu1 }
 0x511   :  { %v714_v53 = vmul.f32 %v1827_v50, %v1827_v50  ;;  %v1838_v56 = vadd.f32 %v1452_v51, %v1681_v5  ;;  %v1519_v5 = vld [vmem:[%s2000_s5 + $0x60] ss:$8 sps:$4 sm:$0xff]   ;;  %v1550_v51 = vld [vmem:[%s2001_s7 + $0x50] sm:$0xff]  }
 0x512   :  { %v698_v54 = vpop.f32.mrf.mxu1  ;;  %1361 = vmatprep.subr.bf16.mxu1 %v1550_v51 }
 0x513   :  { %v1835_v55 = vadd.f32 %v698_v54, %v1672_v2  ;;  %718 = vadd.xlane.f32.xlu0 %v714_v53  ;;  %v717_v1 = vmul.f32 %v1838_v56, %v1838_v56  ;;  %v1521_v2 = vld [vmem:[%s2000_s5 + $0x64] ss:$8 sps:$4 sm:$0xff]   ;;  %v1551_v53 = vld [vmem:[%s2001_s7 + $0x10] sm:$0xff]  }
 0x514   :  { %862 = vmatprep.subr.bf16.mxu0 %v1521_v2  ;;  %1362 = vmatpush3.bf16.msra.mxu1 %v1551_v53  ;;  %v1552_v54 = vld [vmem:[%s2001_s7 + $0x48] sm:$0xff]   ;;  %v1557_v2 = vld [vmem:[%s2002_s9 + $0x30] sm:$0xff]  }
 0x515   :  { %v715_v0 = vmul.f32 %v1835_v55, %v1835_v55  ;;  %863 = vmatpush1.bf16.msra.mxu0 %v1519_v5  ;;  %1363 = vmatprep.subr.bf16.mxu1 %v1552_v54  ;;  %v1558_v5 = vld [vmem:[%s2002_s9 + $0x28] sm:$0xff]  }
 0x516   :  { %864 = vmatprep.subr.bf16.mxu0 %v1524_v58  ;;  %v776_v58 = vsub.s32 1, %v1775_v22 }
 0x517   :  { %722 = vadd.xlane.f32.xlu0 %v716_v57  ;;  %720 = vadd.xlane.f32.xlu1 %v715_v0  ;;  %v1554_v57 = vld [vmem:[%s2001_s7 + $0x40] sm:$0xff]  }
 0x518   :  { %v1555_v0 = vld [vmem:[%s2001_s7] sm:$0xff]  }
 0x519   :  { %865 = vmatpush1.bf16.msra.mxu0 %v1522_v59  ;;  %v768_v59 = vld [vmem:[%s2003_s6] sm:$0x3] }
 0x51a   :  { %866 = vmatprep.subr.bf16.mxu0 %v1527_v60 }
 0x51b   :  { %724 = vadd.xlane.f32.xlu1 %v717_v1  ;;  %v1556_v1 = vld [vmem:[%s2002_s9 + $0x38] sm:$0xff]  }
 0x51d   :  { %867 = vmatpush1.bf16.msra.mxu0 %v1525_v61  ;;  %v777_v61 = vrot.slane %v768_v59, %v776_v58 }
 0x51e   :  { %868 = vmatprep.subr.bf16.mxu0 %v1530_v62  ;;  %v773_v62 = vrot.slane %v768_v59, %v1778_v24 }
 0x521   :  { %869 = vmatpush1.bf16.msra.mxu0 %v1528_v63 }
 0x522   :  { %870 = vmatprep.subr.bf16.mxu0 %v1533_v3 }
 0x525   :  { %871 = vmatpush1.bf16.msra.mxu0 %v1531_v4 }
 0x526   :  { %872 = vmatprep.subr.bf16.mxu0 %v1536_v6 }
 0x529   :  { %873 = vmatpush1.bf16.msra.mxu0 %v1534_v7 }
 0x52a   :  { %874 = vmatprep.subr.bf16.mxu0 %v1539_v8 }
 0x52d   :  { %875 = vmatpush1.bf16.msra.mxu0 %v1537_v9 }
 0x52e   :  { %1453 = vmatprep.subr.bf16.mxu0 %v1556_v1 }
 0x59c   :  { %v719_v20 = vpop.xlane.xlu0 %718 }
 0x59d   :  { %v726_v21 = vmul.f32 0.0078125, %v719_v20 }
 0x59f   :  { %v730_v23 = vadd.f32 1e-06, %v726_v21 }
 0x5a0   :  { %v723_v25 = vpop.xlane.xlu0 %722  ;;  %v721_v26 = vpop.xlane.xlu1 %720 }
 0x5a1   :  { %v727_v27 = vmul.f32 0.0078125, %v721_v26  ;;  %1588 = vrsqrt.f32 %v730_v23  ;;  %v728_v29 = vmul.f32 0.0078125, %v723_v25 }
 0x5a3   :  { %v731_v30 = vadd.f32 1e-06, %v727_v27  ;;  %v732_v33 = vadd.f32 1e-06, %v728_v29 }
 0x5a4   :  { %v725_v31 = vpop.xlane.xlu1 %724 }
 0x5a5   :  { %v729_v32 = vmul.f32 0.0078125, %v725_v31  ;;  %1590 = vrsqrt.f32 %v731_v30  ;;  %v1559_v31 = vld [vmem:[%s2002_s9 + $0x20] sm:$0xff]  }
 0x5a7   :  { %v733_v34 = vadd.f32 1e-06, %v729_v32  ;;  %v1560_v32 = vld [vmem:[%s2002_s9 + $0x18] sm:$0xff]  }
 0x5a9   :  { %1592 = vrsqrt.f32 %v733_v34  ;;  %v1562_v34 = vld [vmem:[%s2002_s9 + $0x8] sm:$0xff]  }
 0x5aa   :  { %1594 = vrsqrt.f32 %v732_v33  ;;  %v1561_v33 = vld [vmem:[%s2002_s9 + $0x10] sm:$0xff]  }
 0x5ae   :  { %v1589_v35 = vpop.eup %1588 }
 0x5af   :  { %v738_v36 = vmul.f32 %v1589_v35, %v1827_v50  ;;  %v1563_v35 = vld [vmem:[%s2002_s9] sm:$0xff]  }
 0x5b1   :  { %v746_v41 = vmul.f32 %v1280_v38, %v738_v36 }
 0x5b2   :  { %v1591_v37 = vpop.eup %1590 }
 0x5b3   :  { %v739_v39 = vmul.f32 %v1591_v37, %v1835_v55 }
 0x5b5   :  { %v747_v42 = vmul.f32 %v1280_v38, %v739_v39  ;;  %v1297_v39 = vld [vmem:[%s2004_s8] ss:$0 sm:$0xff] }
 0x5b6   :  { %v1593_v40 = vpop.eup %1592 }
 0x5b7   :  { %v1595_v43 = vpop.eup %1594  ;;  %v750_v44 = vpack.c.bf16 %v747_v42, %v746_v41  ;;  %v741_v45 = vmul.f32 %v1593_v40, %v1838_v56 }
 0x5b8   :  { %v740_v46 = vmul.f32 %v1595_v43, %v1830_v52 }
 0x5b9   :  { %893 = vmatmul.mubr.bf16.vlgmr.msra.gmra.mxu0 %v750_v44  ;;  %v749_v47 = vmul.f32 %v1280_v38, %v741_v45 }
 0x5ba   :  { %902 = vmatprep.mubr.bf16.mxu0 %v1596_v28  ;;  %v748_v48 = vmul.f32 %v1280_v38, %v740_v46  ;;  %v1553_v28 = vld [vmem:[%s2001_s7 + $0x8] sm:$0xff]   ;;  %1454 = vmatpush3.bf16.msra.mxu0 %v1556_v1 }
 0x5bb   :  { %1364 = vmatpush3.bf16.msra.mxu1 %v1553_v28  ;;  %1455 = vmatprep.subr.bf16.mxu0 %v1557_v2 }
 0x5bc   :  { %v751_v49 = vpack.c.bf16 %v749_v47, %v748_v48  ;;  %1365 = vmatprep.subr.bf16.mxu1 %v1554_v57 }
 0x5be   :  { %1456 = vmatpush3.bf16.msra.mxu0 %v1557_v2 }
 0x5bf   :  { %1366 = vmatpush3.bf16.msra.mxu1 %v1555_v0  ;;  %1457 = vmatprep.subr.bf16.mxu0 %v1558_v5 }
 0x5c1   :  { %903 = vmatmul.mubr.bf16.gmra.mxu0 %v751_v49 }
 0x5c2   :  { %1458 = vmatpush3.bf16.msra.mxu0 %v1558_v5 }
 0x5c3   :  { %1459 = vmatprep.subr.bf16.mxu0 %v1559_v31 }
 0x5c6   :  { %1460 = vmatpush3.bf16.msra.mxu0 %v1559_v31 }
 0x5c7   :  { %1461 = vmatprep.subr.bf16.mxu0 %v1560_v32 }
 0x5ca   :  { %1462 = vmatpush3.bf16.msra.mxu0 %v1560_v32 }
 0x5cb   :  { %1463 = vmatprep.subr.bf16.mxu0 %v1561_v33 }
 0x5ce   :  { %1464 = vmatpush3.bf16.msra.mxu0 %v1561_v33 }
 0x5cf   :  { %1465 = vmatprep.subr.bf16.mxu0 %v1562_v34 }
 0x5d2   :  { %1466 = vmatpush3.bf16.msra.mxu0 %v1562_v34 }
 0x5d3   :  { %1467 = vmatprep.subr.bf16.mxu0 %v1563_v35 }
 0x5d6   :  { %1468 = vmatpush3.bf16.msra.mxu0 %v1563_v35 }
 0x679   :  { %v894_v60 = vpop.f32.mrf.mxu0 }
 0x67a   :  { %v895_v7 = vadd.f32 %v894_v60, %v773_v62 }
 0x67b   :  { %v896_v63 = vpop.f32.mrf.mxu0 }
 0x67c   :  { %v897_v4 = vadd.f32 %v896_v63, %v777_v61  ;;  %v913_v22 = vmax.f32 %v895_v7, 0.0 }
 0x67d   :  { %v898_v3 = vpop.f32.mrf.mxu0 }
 0x67e   :  { %v899_v6 = vadd.f32 %v898_v3, %v773_v62  ;;  %v914_v12 = vmax.f32 %v897_v4, 0.0 }
 0x67f   :  { %v900_v8 = vpop.f32.mrf.mxu0 }
 0x680   :  { %v901_v9 = vadd.f32 %v900_v8, %v777_v61  ;;  %v915_v10 = vmax.f32 %v899_v6, 0.0 }
 0x681   :  { %v904_v11 = vpop.f32.mrf.mxu0 }
 0x682   :  { %v916_v13 = vmax.f32 %v901_v9, 0.0  ;;  %v921_v16 = vpack.c.bf16 %v915_v10, %v913_v22  ;;  %v905_v24 = vadd.f32 %v904_v11, %v773_v62 }
 0x683   :  { %v906_v14 = vpop.f32.mrf.mxu0 }
 0x684   :  { %v922_v15 = vpack.c.bf16 %v916_v13, %v914_v12  ;;  %v907_v18 = vadd.f32 %v906_v14, %v777_v61  ;;  %v917_v27 = vmax.f32 %v905_v24, 0.0 }
 0x685   :  { %v908_v17 = vpop.f32.mrf.mxu0 }
 0x686   :  { %v909_v19 = vadd.f32 %v908_v17, %v773_v62  ;;  %1092 = vmatprep.mubr.bf16.mxu1 %v922_v15  ;;  %v918_v25 = vmax.f32 %v907_v18, 0.0 }
 0x687   :  { %v910_v20 = vpop.f32.mrf.mxu0  ;;  %1093 = vmatmul.mubr.bf16.vlgmr.msra.gmra.mxu1 %v921_v16 }
 0x688   :  { %v911_v21 = vadd.f32 %v910_v20, %v777_v61  ;;  %v919_v23 = vmax.f32 %v909_v19, 0.0 }
 0x68a   :  { %v920_v26 = vmax.f32 %v911_v21, 0.0  ;;  %v923_v30 = vpack.c.bf16 %v919_v23, %v917_v27 }
 0x68c   :  { %v924_v29 = vpack.c.bf16 %v920_v26, %v918_v25 }
 0x68e   :  { %1100 = vmatprep.mubr.bf16.mxu1 %v924_v29 }
 0x68f   :  { %1101 = vmatmul.mubr.bf16.gmra.mxu1 %v923_v30 }
 0x747   :  { %v1367_v36 = vpop.f32.mrf.mxu1 }
 0x749   :  { %v1368_v37 = vpop.f32.mrf.mxu1 }
 0x74a   :  { %v1369_v38 = vadd.f32 %v1368_v37, %v1367_v36 }
 0x74b   :  { %v1370_v40 = vpop.f32.mrf.mxu1 }
 0x74c   :  { %v1095_v42 = vadd.f32 %v1369_v38, %v1297_v39 }
 0x74d   :  { %v1371_v41 = vpop.f32.mrf.mxu1 }
 0x74e   :  { %v1372_v43 = vadd.f32 %v1371_v41, %v1370_v40  ;;  %v1109_v47 = vadd.f32 %v1095_v42, %v1827_v50  ;;  %v1314_v50 = vld [vmem:[%s2005_s10] ss:$0 sm:$0xff] }
 0x74f   :  { %v1373_v44 = vpop.f32.mrf.mxu1 }
 0x750   :  { %v1098_v45 = vadd.f32 %v1372_v43, %v1297_v39 }
 0x751   :  { %v1374_v46 = vpop.f32.mrf.mxu1 }
 0x752   :  { %v1110_v48 = vadd.f32 %v1098_v45, %v1835_v55  ;;  %v1375_v49 = vadd.f32 %v1374_v46, %v1373_v44 }
 0x753   :  { %v1376_v51 = vpop.f32.mrf.mxu1 }
 0x754   :  { %v1113_v53 = vpack.c.bf16 %v1110_v48, %v1109_v47  ;;  %v1103_v28 = vadd.f32 %v1375_v49, %v1297_v39 }
 0x755   :  { %v1377_v54 = vpop.f32.mrf.mxu1 }
 0x756   :  { %v1378_v57 = vadd.f32 %v1377_v54, %v1376_v51  ;;  %1469 = vmatprep.mubr.bf16.mxu0 %v1113_v53  ;;  %v1111_v1 = vadd.f32 %v1103_v28, %v1830_v52 }
 0x758   :  { %v1106_v0 = vadd.f32 %v1378_v57, %v1297_v39 }
 0x75a   :  { %v1112_v2 = vadd.f32 %v1106_v0, %v1838_v56 }
 0x75c   :  { %v1114_v5 = vpack.c.bf16 %v1112_v2, %v1111_v1 }
 0x75e   :  { %1470 = vmatmul.mubr.bf16.vlgmr.msra.gmra.mxu0 %v1114_v5 }
 0x81e   :  { %v1471_v58 = vpop.f32.mrf.mxu0 }
 0x81f   :  { %v1229_v55 = vadd.f32 %v1471_v58, %v1314_v50 }
 0x820   :  { %v1220_v59 = vpop.f32.mrf.mxu0 }
 0x821   :  { %1237 = vst [vmem:[%s2006_s11 + $0x10] sm:$0xff] %v1229_v55  ;;  %v1221_v60 = vadd.f32 %v1314_v50, %v1220_v59 }
 0x822   :  { %v1472_v61 = vpop.f32.mrf.mxu0 }
 0x823   :  { %1235 = vst [vmem:[%s2006_s11] sm:$0xff] %v1221_v60  ;;  %v1232_v52 = vadd.f32 %v1472_v61, %v1314_v50 }
 0x824   :  { %v1223_v56 = vpop.f32.mrf.mxu0 }
 0x825   :  { %1238 = vst [vmem:[%s2006_s11 + $0x18] sm:$0xff] %v1232_v52  ;;  %v1224_v62 = vadd.f32 %v1314_v50, %v1223_v56 }
 0x827   :  { %1236 = vst [vmem:[%s2006_s11 + $0x8] sm:$0xff] %v1224_v62 }

// kernel: molqa_forward.6
= control target key start
LH: loop header
LB: loop body
LE: loop exit
PB: predicated region body
PF: predicated region fallthrough
CT: control target
= control target key end

     0   :  { %v2093_v2 = vmov 0.0   ;;  %v2094_v24 = vmov 0   ;;  %vm2095_vm0 = vmmov 0   ;;  %vm473_vm1 = vcmask 1043456   ;;  %s2645_s0 = inlined_call_operand.vmem [shape: f32[2,8,128], index: 0, kind: input, shape index: {}]   ;;  %s2646_s4 = inlined_call_operand.vmem [shape: bf16[128,384], index: 4, kind: input, shape index: {}]   ;;  %s2647_s9 = inlined_call_operand.vmem [shape: f32[3,128], index: 9, kind: input, shape index: {}]   ;;  %s2648_s1 = inlined_call_operand.vmem [shape: f32[2,1,8], index: 1, kind: input, shape index: {}]   ;;  %s2649_s5 = inlined_call_operand.vmem [shape: bf16[128,128], index: 5, kind: input, shape index: {}]   ;;  %s2650_s7 = inlined_call_operand.vmem [shape: bf16[128,256], index: 7, kind: input, shape index: {}]   ;;  %s2651_s6 = inlined_call_operand.vmem [shape: bf16[128,128], index: 6, kind: input, shape index: {}]   ;;  %s2652_s2 = inlined_call_operand.vmem [shape: f32[2,16,128], index: 2, kind: input, shape index: {}]   ;;  %s2653_s3 = inlined_call_operand.vmem [shape: f32[2,1,16], index: 3, kind: input, shape index: {}]   ;;  %s2654_s8 = inlined_call_operand.vmem [shape: bf16[128,128], index: 8, kind: input, shape index: {}]   ;;  %s2655_s10 = inlined_call_operand.vmem [shape: bf16[128,256], index: 10, kind: input, shape index: {}]   ;;  %s2656_s12 = inlined_call_operand.vmem [shape: bf16[256,128], index: 12, kind: input, shape index: {}]   ;;  %s2657_s11 = inlined_call_operand.vmem [shape: f32[1,256], index: 11, kind: input, shape index: {}]   ;;  %s2658_s13 = inlined_call_operand.vmem [shape: f32[1,128], index: 13, kind: input, shape index: {}]   ;;  %s2659_s14 = inlined_call_operand.vmem [shape: f32[2,8,128], index: 14, kind: output, shape index: {}]  }
   0x1   :  { %v2175_v0 = vld [vmem:[%s2645_s0] sm:$0xff]  ;;  %v2180_v1 = vld [vmem:[%s2645_s0 + $0x8] sm:$0xff]  ;;  %1813 = vmatprep.subr.bf16.mxu1 %v2093_v2  ;;  %v1948_v6 = vld [vmem:[%s2646_s4 + $0xb0] ss:$12 sps:$4 sm:$0xff]   ;;  %303 = vmatprep.mubr.bf16.mxu0 %v2094_v24  ;;  %v58_v60 = vlaneseq  ;;  %vm445_vm3 = vcmask 64512   ;;  %vm1050_vm4 = vcmask 130048  }
   0x2   :  { %v89_v3 = vmul.f32 %v2175_v0, %v2175_v0  ;;  %v1945_v4 = vld [vmem:[%s2646_s4 + $0xac] ss:$12 sps:$4 sm:$0xff]   ;;  %v1947_v5 = vld [vmem:[%s2646_s4 + $0xa8] ss:$12 sps:$4 sm:$0xff]   ;;  %v90_v7 = vmul.f32 %v2180_v1, %v2180_v1  ;;  %1814 = vmatpush3.bf16.msra.mxu1 %v1948_v6  ;;  %v1951_v9 = vld [vmem:[%s2646_s4 + $0x90] ss:$12 sps:$4 sm:$0xff]   ;;  %1829 = vmatprep.mubr.msk.bf16.mxu1 %vm2095_vm0, %v2093_v2 }
   0x3   :  { %271 = vmatprep.subr.bf16.mxu0 %v1945_v4  ;;  %1815 = vmatprep.subr.bf16.mxu1 %v2093_v2  ;;  %v1949_v8 = vld [vmem:[%s2646_s4 + $0x94] ss:$12 sps:$4 sm:$0xff]   ;;  %v1952_v10 = vld [vmem:[%s2646_s4 + $0x98] ss:$12 sps:$4 sm:$0xff]   ;;  %v1953_v11 = vld [vmem:[%s2646_s4 + $0x7c] ss:$12 sps:$4 sm:$0xff]  }
   0x4   :  { %91 = vadd.xlane.f32.xlu0 %v89_v3  ;;  %272 = vmatpush1.bf16.msra.mxu0 %v1947_v5  ;;  %v1955_v12 = vld [vmem:[%s2646_s4 + $0x78] ss:$12 sps:$4 sm:$0xff]   ;;  %v1956_v13 = vld [vmem:[%s2646_s4 + $0x80] ss:$12 sps:$4 sm:$0xff]   ;;  %v1960_v16 = vld [vmem:[%s2646_s4 + $0x68] ss:$12 sps:$4 sm:$0xff]  }
   0x5   :  { %273 = vmatprep.subr.bf16.mxu0 %v1949_v8  ;;  %v1957_v14 = vld [vmem:[%s2646_s4 + $0x64] ss:$12 sps:$4 sm:$0xff]   ;;  %v1959_v15 = vld [vmem:[%s2646_s4 + $0x60] ss:$12 sps:$4 sm:$0xff]   ;;  %v1963_v18 = vld [vmem:[%s2646_s4 + $0x48] ss:$12 sps:$4 sm:$0xff]  }
   0x6   :  { %1816 = vmatpush3.bf16.msra.mxu1 %v1952_v10  ;;  %v1961_v17 = vld [vmem:[%s2646_s4 + $0x4c] ss:$12 sps:$4 sm:$0xff]   ;;  %v1964_v19 = vld [vmem:[%s2646_s4 + $0x50] ss:$12 sps:$4 sm:$0xff]   ;;  %v1965_v20 = vld [vmem:[%s2646_s4 + $0x34] ss:$12 sps:$4 sm:$0xff]  }
   0x7   :  { %1817 = vmatprep.subr.bf16.mxu1 %v2093_v2  ;;  %v1967_v21 = vld [vmem:[%s2646_s4 + $0x30] ss:$12 sps:$4 sm:$0xff]   ;;  %v1968_v22 = vld [vmem:[%s2646_s4 + $0x38] ss:$12 sps:$4 sm:$0xff]   ;;  %v1972_v26 = vld [vmem:[%s2646_s4 + $0x20] ss:$12 sps:$4 sm:$0xff]  }
   0x8   :  { %93 = vadd.xlane.f32.xlu0 %v90_v7  ;;  %274 = vmatpush1.bf16.msra.mxu0 %v1951_v9  ;;  %v1969_v23 = vld [vmem:[%s2646_s4 + $0x1c] ss:$12 sps:$4 sm:$0xff]   ;;  %v1971_v25 = vld [vmem:[%s2646_s4 + $0x18] ss:$12 sps:$4 sm:$0xff]   ;;  %v1975_v28 = vld [vmem:[%s2646_s4] ss:$12 sps:$4 sm:$0xff]  }
   0x9   :  { %275 = vmatprep.subr.bf16.mxu0 %v1953_v11  ;;  %v1973_v27 = vld [vmem:[%s2646_s4 + $0x4] ss:$12 sps:$4 sm:$0xff]   ;;  %v1976_v29 = vld [vmem:[%s2646_s4 + $0x8] ss:$12 sps:$4 sm:$0xff]   ;;  %v1635_v39 = vld [vmem:[%s2647_s9] ss:$0 sm:$0xff] }
   0xa   :  { %1818 = vmatpush3.bf16.msra.mxu1 %v1956_v13  ;;  %v54_v61 = vld [vmem:[%s2648_s1] sm:$0x1]  ;;  %v2292_v62 = vshrl.u32 %v58_v60, 7  ;;  %v61_v3 = vand.u32 127, %v58_v60  ;;  %v55_v6 = vld [vmem:[%s2648_s1 + $0x1] sm:$0x1] }
   0xb   :  { %1819 = vmatprep.subr.bf16.mxu1 %v2093_v2  ;;  %v1631_v63 = vadd.f32 -1.0, %v54_v61  ;;  %v1632_v8 = vadd.f32 -1.0, %v55_v6  ;;  %v2096_v9 = vmov -1e+09   ;;  %v1985_v6 = vld [vmem:[%s2650_s7 + $0x70] ss:$8 sps:$4 sm:$0xff]  }
   0xc   :  { %276 = vmatpush1.bf16.msra.mxu0 %v1955_v12  ;;  %v2295_v5 = vsub.s32 0, %v2292_v62  ;;  %vm62_vm2 = vcmp.ge.s32.totalorder %v2292_v62, %v61_v3 }
   0xd   :  { %277 = vmatprep.subr.bf16.mxu0 %v1957_v14  ;;  %v66_v4 = vmul.f32 1e+09, %v1631_v63  ;;  %v63_v10 = vsel %vm62_vm2, 0.0, %v2096_v9  ;;  %v67_v12 = vmul.f32 1e+09, %v1632_v8 }
   0xe   :  { %1820 = vmatpush3.bf16.msra.mxu1 %v1960_v16  ;;  %v1990_v8 = vld [vmem:[%s2650_s7 + $0x64] ss:$8 sps:$4 sm:$0xff]   ;;  %v1988_v9 = vld [vmem:[%s2650_s7 + $0x60] ss:$8 sps:$4 sm:$0xff]  }
   0xf   :  { %1821 = vmatprep.subr.bf16.mxu1 %v2093_v2  ;;  %v73_v7 = vrot.slane %v66_v4, %v2295_v5 }
  0x10   :  { %278 = vmatpush1.bf16.msra.mxu0 %v1959_v15 }
  0x11   :  { %279 = vmatprep.subr.bf16.mxu0 %v1961_v17  ;;  %v80_v11 = vadd.f32 %v73_v7, %v63_v10  ;;  %v77_v17 = vrot.slane %v67_v12, %v2295_v5  ;;  %v1987_v7 = vld [vmem:[%s2650_s7 + $0x74] ss:$8 sps:$4 sm:$0xff]   ;;  %v1991_v12 = vld [vmem:[%s2650_s7 + $0x50] ss:$8 sps:$4 sm:$0xff]  }
  0x12   :  { %1822 = vmatpush3.bf16.msra.mxu1 %v1964_v19 }
  0x13   :  { %1823 = vmatprep.subr.bf16.mxu1 %v2093_v2 }
  0x14   :  { %280 = vmatpush1.bf16.msra.mxu0 %v1963_v18 }
  0x15   :  { %281 = vmatprep.subr.bf16.mxu0 %v1965_v20 }
  0x16   :  { %1824 = vmatpush3.bf16.msra.mxu1 %v1968_v22 }
  0x17   :  { %1825 = vmatprep.subr.bf16.mxu1 %v2093_v2 }
  0x18   :  { %282 = vmatpush1.bf16.msra.mxu0 %v1967_v21  ;;  %v81_v21 = vadd.f32 %v77_v17, %v63_v10  ;;  %v1993_v10 = vld [vmem:[%s2650_s7 + $0x54] ss:$8 sps:$4 sm:$0xff]   ;;  %v2003_v17 = vld [vmem:[%s2650_s7 + $0x24] ss:$8 sps:$4 sm:$0xff]  }
  0x19   :  { %283 = vmatprep.subr.bf16.mxu0 %v1969_v23 }
  0x1a   :  { %1826 = vmatpush3.bf16.msra.mxu1 %v1972_v26 }
  0x1b   :  { %1827 = vmatprep.subr.bf16.mxu1 %v2093_v2 }
  0x1c   :  { %284 = vmatpush1.bf16.msra.mxu0 %v1971_v25 }
  0x1d   :  { %285 = vmatprep.subr.bf16.mxu0 %v1973_v27 }
  0x1e   :  { %1828 = vmatpush3.bf16.msra.mxu1 %v1976_v29 }
  0x1f   :  { %1833 = vmatprep.subr.bf16.mxu1 %v2093_v2 }
  0x20   :  { %286 = vmatpush1.bf16.msra.mxu0 %v1975_v28 }
  0x21   :  { %1857 = vmatprep.subr.bf16.mxu0 %v2093_v2 }
  0x8d   :  { %v92_v30 = vpop.xlane.xlu0 %91 }
  0x8e   :  { %v96_v31 = vmul.f32 0.0078125, %v92_v30 }
  0x90   :  { %v98_v32 = vadd.f32 1e-06, %v96_v31 }
  0x91   :  { %v94_v33 = vpop.xlane.xlu0 %93 }
  0x92   :  { %2065 = vrsqrt.f32 %v98_v32  ;;  %v97_v34 = vmul.f32 0.0078125, %v94_v33 }
  0x94   :  { %v99_v35 = vadd.f32 1e-06, %v97_v34 }
  0x96   :  { %2067 = vrsqrt.f32 %v99_v35 }
  0x9f   :  { %v2066_v36 = vpop.eup %2065 }
  0xa0   :  { %v102_v37 = vmul.f32 %v2066_v36, %v2175_v0 }
  0xa2   :  { %v108_v41 = vmul.f32 %v1635_v39, %v102_v37 }
  0xa3   :  { %v2068_v38 = vpop.eup %2067 }
  0xa4   :  { %v103_v40 = vmul.f32 %v2068_v38, %v2180_v1 }
  0xa6   :  { %v109_v42 = vmul.f32 %v1635_v39, %v103_v40  ;;  %v1977_v40 = vld [vmem:[%s2649_s5 + $0x38] sm:$0xff]  }
  0xa8   :  { %v110_v43 = vpack.c.bf16 %v109_v42, %v108_v41  ;;  %v1978_v41 = vld [vmem:[%s2649_s5 + $0x30] sm:$0xff]   ;;  %v1979_v42 = vld [vmem:[%s2649_s5 + $0x28] sm:$0xff]  }
  0xaa   :  { %304 = vmatmul.mubr.bf16.vlgmr.msra.gmra.mxu0 %v110_v43  ;;  %1830 = vmatmul.mubr.bf16.vlgmr.msra.gmra.mxu1 %v110_v43  ;;  %v1980_v43 = vld [vmem:[%s2649_s5 + $0x20] sm:$0xff]  }
  0xab   :  { %1835 = vmatprep.mubr.msk.bf16.mxu1 %vm2095_vm0, %v2093_v2  ;;  %1873 = vmatprep.mubr.msk.bf16.mxu0 %vm2095_vm0, %v2093_v2 }
  0xac   :  { %1858 = vmatpush3.bf16.msra.mxu0 %v1977_v40 }
  0xad   :  { %1859 = vmatprep.subr.bf16.mxu0 %v2093_v2 }
  0xb0   :  { %1860 = vmatpush3.bf16.msra.mxu0 %v1978_v41  ;;  %v2015_v41 = vld [vmem:[%s2651_s6 + $0x8] sm:$0xff]  }
  0xb1   :  { %1861 = vmatprep.subr.bf16.mxu0 %v2093_v2 }
  0xb4   :  { %1862 = vmatpush3.bf16.msra.mxu0 %v1979_v42  ;;  %v2016_v42 = vld [vmem:[%s2651_s6] sm:$0xff]  }
  0xb5   :  { %1863 = vmatprep.subr.bf16.mxu0 %v2093_v2 }
  0xb8   :  { %1864 = vmatpush3.bf16.msra.mxu0 %v1980_v43 }
  0xb9   :  { %1865 = vmatprep.subr.bf16.mxu0 %v2093_v2 }
 0x16a   :  { %v305_v44 = vpop.f32.mrf.mxu0  ;;  %v348_v45 = vpop.f32.mrf.mxu1 }
 0x16b   :  { %v355_v55 = vpack.c.bf16 %v305_v44, %v305_v44  ;;  %v359_v57 = vpack.c.bf16 %v348_v45, %v348_v45  ;;  %v1981_v44 = vld [vmem:[%s2649_s5 + $0x18] sm:$0xff]  }
 0x16c   :  { %v307_v46 = vpop.f32.mrf.mxu0  ;;  %v1831_v47 = vpop.f32.mrf.mxu1  ;;  %1866 = vmatpush3.bf16.msra.mxu0 %v1981_v44 }
 0x16d   :  { %v357_v48 = vpack.c.bf16 %v307_v46, %v307_v46  ;;  %v475_v59 = vsel %vm473_vm1, %v359_v57, 0  ;;  %1867 = vmatprep.subr.bf16.mxu0 %v2093_v2 }
 0x16e   :  { %v309_v49 = vpop.f32.mrf.mxu0  ;;  %v351_v50 = vpop.f32.mrf.mxu1 }
 0x16f   :  { %v360_v51 = vpack.c.bf16 %v351_v50, %v351_v50  ;;  %1834 = vmatpush3.bf16.xpose.msra.mxu1 %v357_v48  ;;  %v356_v58 = vpack.c.bf16 %v309_v49, %v309_v49 }
 0x170   :  { %v1832_v52 = vpop.f32.mrf.mxu1  ;;  %1839 = vmatprep.subr.bf16.mxu1 %v2093_v2  ;;  %v311_v54 = vpop.f32.mrf.mxu0 }
 0x171   :  { %v2281_v53 = vsel %vm473_vm1, %v360_v51, 0  ;;  %v358_v56 = vpack.c.bf16 %v311_v54, %v311_v54  ;;  %v1982_v54 = vld [vmem:[%s2649_s5 + $0x10] sm:$0xff]  }
 0x172   :  { %1868 = vmatpush3.bf16.msra.mxu0 %v1982_v54 }
 0x173   :  { %1869 = vmatprep.subr.bf16.mxu0 %v2093_v2 }
 0x176   :  { %1836 = vmatmul.mubr.bf16.vlgmr.msra.gmra.mxu1 %v355_v55  ;;  %v1984_v55 = vld [vmem:[%s2649_s5] sm:$0xff]  }
 0x177   :  { %1840 = vmatpush3.bf16.xpose.msra.mxu1 %v358_v56  ;;  %1841 = vmatprep.mubr.msk.bf16.mxu1 %vm2095_vm0, %v2093_v2 }
 0x178   :  { %1845 = vmatprep.subr.bf16.mxu1 %v2093_v2 }
 0x17e   :  { %1842 = vmatmul.mubr.bf16.vlgmr.msra.gmra.mxu1 %v356_v58 }
 0x17f   :  { %1846 = vmatpush3.bf16.msra.mxu1 %v475_v59  ;;  %1847 = vmatprep.mubr.msk.bf16.mxu1 %vm2095_vm0, %v2093_v2 }
 0x180   :  { %1851 = vmatprep.subr.bf16.mxu1 %v2093_v2 }
 0x236   :  { %v395_v13 = vpop.f32.mrf.mxu1 }
 0x237   :  { %v441_v14 = vmul.f32 0.088388346, %v395_v13  ;;  %v1996_v13 = vld [vmem:[%s2650_s7 + $0x44] ss:$8 sps:$4 sm:$0xff]  }
 0x238   :  { %v1837_v15 = vpop.f32.mrf.mxu1 }
 0x239   :  { %v443_v16 = vadd.f32 %v441_v14, %v80_v11  ;;  %v2000_v11 = vld [vmem:[%s2651_s6 + $0x38] sm:$0xff]   ;;  %v1994_v14 = vld [vmem:[%s2650_s7 + $0x40] ss:$8 sps:$4 sm:$0xff]  }
 0x23a   :  { %v398_v18 = vpop.f32.mrf.mxu1  ;;  %v1999_v15 = vld [vmem:[%s2650_s7 + $0x34] ss:$8 sps:$4 sm:$0xff]  }
 0x23b   :  { %v446_v19 = vsel %vm445_vm3, %v443_v16, -inf  ;;  %v2001_v18 = vld [vmem:[%s2650_s7 + $0x20] ss:$8 sps:$4 sm:$0xff]  }
 0x23c   :  { %447 = vmax.xlane.f32.xlu1 %v446_v19  ;;  %v1838_v20 = vpop.f32.mrf.mxu1 }
 0x23e   :  { %v435_v22 = vpop.f32.mrf.mxu1 }
 0x23f   :  { %v442_v23 = vmul.f32 0.088388346, %v435_v22 }
 0x240   :  { %v1843_v25 = vpop.f32.mrf.mxu1 }
 0x241   :  { %v444_v26 = vadd.f32 %v442_v23, %v81_v21 }
 0x242   :  { %v438_v27 = vpop.f32.mrf.mxu1 }
 0x243   :  { %v449_v28 = vsel %vm445_vm3, %v444_v26, -inf }
 0x244   :  { %450 = vmax.xlane.f32.xlu1 %v449_v28  ;;  %v1844_v29 = vpop.f32.mrf.mxu1  ;;  %v2004_v28 = vld [vmem:[%s2651_s6 + $0x30] sm:$0xff]  }
 0x245   :  { %v2008_v29 = vld [vmem:[%s2651_s6 + $0x28] sm:$0xff]  }
 0x2c5   :  { %v448_v30 = vpop.xlane.xlu1 %447 }
 0x2c6   :  { %v452_v31 = vsub.f32 %v443_v16, %v448_v30  ;;  %v1997_v16 = vld [vmem:[%s2650_s7 + $0x30] ss:$8 sps:$4 sm:$0xff]   ;;  %v2011_v30 = vld [vmem:[%s2650_s7 + $0x4] ss:$8 sps:$4 sm:$0xff]  }
 0x2c8   :  { %v454_v32 = vmul.f32 1.442695, %v452_v31  ;;  %v2009_v31 = vld [vmem:[%s2650_s7] ss:$8 sps:$4 sm:$0xff]  }
 0x2ca   :  { %2069 = vpow2.f32 %v454_v32  ;;  %v2012_v32 = vld [vmem:[%s2651_s6 + $0x20] sm:$0xff]  }
 0x2cd   :  { %v451_v33 = vpop.xlane.xlu1 %450 }
 0x2ce   :  { %v453_v34 = vsub.f32 %v444_v26, %v451_v33  ;;  %v50_v33 = vld [vmem:[%s2652_s2] sm:$0xff] }
 0x2d0   :  { %v456_v35 = vmul.f32 1.442695, %v453_v34  ;;  %v51_v34 = vld [vmem:[%s2652_s2 + $0x8] sm:$0xff] }
 0x2d2   :  { %2071 = vpow2.f32 %v456_v35  ;;  %v692_v35 = vpack.c.bf16 %v51_v34, %v50_v33 }
 0x2d7   :  { %v2070_v36 = vpop.eup %2069 }
 0x2d8   :  { %v458_v37 = vsel %vm445_vm3, %v2070_v36, 0.0 }
 0x2d9   :  { %459 = vadd.xlane.f32.xlu0 %v458_v37  ;;  %v52_v37 = vld [vmem:[%s2652_s2 + $0x10] sm:$0xff] }
 0x2df   :  { %v2072_v38 = vpop.eup %2071 }
 0x2e0   :  { %v461_v39 = vsel %vm445_vm3, %v2072_v38, 0.0 }
 0x2e1   :  { %462 = vadd.xlane.f32.xlu1 %v461_v39  ;;  %v2014_v39 = vld [vmem:[%s2651_s6 + $0x10] sm:$0xff]  }
 0x362   :  { %v460_v45 = vpop.xlane.xlu0 %459 }
 0x363   :  { %2073 = vrcp.f32 %v460_v45 }
 0x36a   :  { %v463_v46 = vpop.xlane.xlu1 %462 }
 0x36b   :  { %2075 = vrcp.f32 %v463_v46 }
 0x370   :  { %v2074_v47 = vpop.eup %2073 }
 0x371   :  { %v466_v48 = vmul.f32 %v2074_v47, %v2070_v36  ;;  %v2013_v36 = vld [vmem:[%s2651_s6 + $0x18] sm:$0xff]  }
 0x373   :  { %v468_v49 = vpack.c.bf16 %v466_v48, %v466_v48 }
 0x375   :  { %1848 = vmatmul.mubr.msk.bf16.vlgmr.msra.gmra.mxu1 %vm445_vm3, %v468_v49 }
 0x376   :  { %1852 = vmatpush3.bf16.msra.mxu1 %v2281_v53  ;;  %1853 = vmatprep.mubr.msk.bf16.mxu1 %vm2095_vm0, %v2093_v2  ;;  %v1983_v53 = vld [vmem:[%s2649_s5 + $0x8] sm:$0xff]  }
 0x377   :  { %1877 = vmatprep.subr.bf16.mxu1 %v2093_v2  ;;  %1870 = vmatpush3.bf16.msra.mxu0 %v1983_v53 }
 0x378   :  { %v2076_v50 = vpop.eup %2075  ;;  %1871 = vmatprep.subr.bf16.mxu0 %v2093_v2 }
 0x379   :  { %v467_v51 = vmul.f32 %v2076_v50, %v2072_v38  ;;  %v53_v38 = vld [vmem:[%s2652_s2 + $0x18] sm:$0xff] }
 0x37a   :  { %v693_v40 = vpack.c.bf16 %v53_v38, %v52_v37 }
 0x37b   :  { %v469_v52 = vpack.c.bf16 %v467_v51, %v467_v51  ;;  %1872 = vmatpush3.bf16.msra.mxu0 %v1984_v55 }
 0x37c   :  { %897 = vmatprep.subr.bf16.mxu0 %v1987_v7 }
 0x37d   :  { %1854 = vmatmul.mubr.msk.bf16.vlgmr.msra.gmra.mxu1 %vm445_vm3, %v469_v52  ;;  %v1670_v52 = vld [vmem:[%s2647_s9 + $0x1] ss:$0 sm:$0xff] }
 0x37e   :  { %1893 = vmatprep.mubr.msk.bf16.mxu1 %vm2095_vm0, %v2093_v2  ;;  %1878 = vmatpush3.bf16.msra.mxu1 %v2000_v11 }
 0x37f   :  { %1879 = vmatprep.subr.bf16.mxu1 %v2093_v2 }
 0x382   :  { %1880 = vmatpush3.bf16.msra.mxu1 %v2004_v28 }
 0x383   :  { %1881 = vmatprep.subr.bf16.mxu1 %v2093_v2 }
 0x386   :  { %1882 = vmatpush3.bf16.msra.mxu1 %v2008_v29 }
 0x387   :  { %1883 = vmatprep.subr.bf16.mxu1 %v2093_v2 }
 0x38a   :  { %1884 = vmatpush3.bf16.msra.mxu1 %v2012_v32 }
 0x38b   :  { %1885 = vmatprep.subr.bf16.mxu1 %v2093_v2 }
 0x38e   :  { %1886 = vmatpush3.bf16.msra.mxu1 %v2013_v36 }
 0x38f   :  { %1887 = vmatprep.subr.bf16.mxu1 %v2093_v2 }
 0x392   :  { %1888 = vmatpush3.bf16.msra.mxu1 %v2014_v39 }
 0x393   :  { %1889 = vmatprep.subr.bf16.mxu1 %v2093_v2 }
 0x396   :  { %1890 = vmatpush3.bf16.msra.mxu1 %v2015_v41 }
 0x397   :  { %1891 = vmatprep.subr.bf16.mxu1 %v2093_v2 }
 0x39a   :  { %1892 = vmatpush3.bf16.msra.mxu1 %v2016_v42 }
 0x39b   :  { %1897 = vmatprep.subr.bf16.mxu1 %v2093_v2 }
 0x435   :  { %v511_v56 = vpop.f32.mrf.mxu1 }
 0x437   :  { %v1849_v57 = vpop.f32.mrf.mxu1 }
 0x439   :  { %v514_v58 = vpop.f32.mrf.mxu1 }
 0x43b   :  { %v1850_v59 = vpop.f32.mrf.mxu1 }
 0x43d   :  { %v557_v60 = vpop.f32.mrf.mxu1 }
 0x43e   :  { %v563_v61 = vpack.c.bf16 %v557_v60, %v511_v56 }
 0x43f   :  { %v1855_v63 = vpop.f32.mrf.mxu1 }
 0x440   :  { %1874 = vmatmul.mubr.bf16.vlgmr.msra.gmra.mxu0 %v563_v61 }
 0x441   :  { %v560_v3 = vpop.f32.mrf.mxu1  ;;  %929 = vmatprep.mubr.bf16.mxu0 %v2094_v24  ;;  %898 = vmatpush1.bf16.msra.mxu0 %v1985_v6 }
 0x442   :  { %899 = vmatprep.subr.bf16.mxu0 %v1990_v8 }
 0x443   :  { %v1856_v4 = vpop.f32.mrf.mxu1 }
 0x445   :  { %900 = vmatpush1.bf16.msra.mxu0 %v1988_v9 }
 0x446   :  { %901 = vmatprep.subr.bf16.mxu0 %v1993_v10 }
 0x449   :  { %902 = vmatpush1.bf16.msra.mxu0 %v1991_v12 }
 0x44a   :  { %903 = vmatprep.subr.bf16.mxu0 %v1996_v13 }
 0x44d   :  { %904 = vmatpush1.bf16.msra.mxu0 %v1994_v14  ;;  %v56_v14 = vld [vmem:[%s2653_s3] sm:$0x1] }
 0x44e   :  { %905 = vmatprep.subr.bf16.mxu0 %v1999_v15  ;;  %v1633_v15 = vadd.f32 -1.0, %v56_v14  ;;  %v2025_v14 = vld [vmem:[%s2655_s10 + $0x70] ss:$8 sps:$4 sm:$0xff]  }
 0x451   :  { %906 = vmatpush1.bf16.msra.mxu0 %v1997_v16  ;;  %v84_v16 = vmul.f32 1e+09, %v1633_v15 }
 0x452   :  { %907 = vmatprep.subr.bf16.mxu0 %v2003_v17  ;;  %v57_v17 = vld [vmem:[%s2653_s3 + $0x1] sm:$0x1] }
 0x455   :  { %908 = vmatpush1.bf16.msra.mxu0 %v2001_v18  ;;  %v1041_v18 = vrot.slane %v84_v16, %v2295_v5 }
 0x500   :  { %v662_v19 = vpop.f32.mrf.mxu0 }
 0x501   :  { %v2388_v20 = vadd.f32 %v662_v19, %v2175_v0  ;;  %v2007_v0 = vld [vmem:[%s2650_s7 + $0x14] ss:$8 sps:$4 sm:$0xff]   ;;  %v1634_v19 = vadd.f32 -1.0, %v57_v17 }
 0x502   :  { %v1875_v21 = vpop.f32.mrf.mxu0  ;;  %909 = vmatprep.subr.bf16.mxu0 %v2007_v0 }
 0x503   :  { %v671_v22 = vmul.f32 %v2388_v20, %v2388_v20 }
 0x504   :  { %v665_v23 = vpop.f32.mrf.mxu0 }
 0x505   :  { %v2393_v25 = vadd.f32 %v665_v23, %v2180_v1  ;;  %673 = vadd.xlane.f32.xlu0 %v671_v22  ;;  %v2005_v1 = vld [vmem:[%s2650_s7 + $0x10] ss:$8 sps:$4 sm:$0xff]  }
 0x506   :  { %v1876_v26 = vpop.f32.mrf.mxu0  ;;  %910 = vmatpush1.bf16.msra.mxu0 %v2005_v1 }
 0x507   :  { %v672_v27 = vmul.f32 %v2393_v25, %v2393_v25  ;;  %911 = vmatprep.subr.bf16.mxu0 %v2011_v30 }
 0x509   :  { %675 = vadd.xlane.f32.xlu1 %v672_v27  ;;  %v85_v27 = vmul.f32 1e+09, %v1634_v19 }
 0x50a   :  { %912 = vmatpush1.bf16.msra.mxu0 %v2009_v31 }
 0x50b   :  { %1921 = vmatprep.subr.bf16.mxu0 %v2093_v2  ;;  %v1045_v29 = vrot.slane %v85_v27, %v2295_v5  ;;  %v2031_v27 = vld [vmem:[%s2655_s10 + $0x50] ss:$8 sps:$4 sm:$0xff]  }
 0x50d   :  { %930 = vmatmul.mubr.bf16.vlgmr.msra.gmra.mxu0 %v692_v35 }
 0x50e   :  { %939 = vmatprep.mubr.bf16.mxu0 %v2094_v24 }
 0x515   :  { %940 = vmatmul.mubr.bf16.gmra.mxu0 %v693_v40 }
 0x516   :  { %1937 = vmatprep.mubr.msk.bf16.mxu0 %vm2095_vm0, %v2093_v2 }
 0x58e   :  { %v674_v43 = vpop.xlane.xlu0 %673 }
 0x58f   :  { %v677_v44 = vmul.f32 0.0078125, %v674_v43 }
 0x591   :  { %v679_v45 = vadd.f32 1e-06, %v677_v44 }
 0x592   :  { %v676_v46 = vpop.xlane.xlu1 %675 }
 0x593   :  { %2077 = vrsqrt.f32 %v679_v45  ;;  %v678_v47 = vmul.f32 0.0078125, %v676_v46 }
 0x595   :  { %v680_v48 = vadd.f32 1e-06, %v678_v47  ;;  %v2017_v47 = vld [vmem:[%s2654_s8 + $0x38] sm:$0xff]  }
 0x596   :  { %1922 = vmatpush3.bf16.msra.mxu0 %v2017_v47 }
 0x597   :  { %2079 = vrsqrt.f32 %v680_v48  ;;  %v2018_v48 = vld [vmem:[%s2654_s8 + $0x30] sm:$0xff]   ;;  %1923 = vmatprep.subr.bf16.mxu0 %v2093_v2 }
 0x59a   :  { %1924 = vmatpush3.bf16.msra.mxu0 %v2018_v48 }
 0x59b   :  { %1925 = vmatprep.subr.bf16.mxu0 %v2093_v2 }
 0x5a0   :  { %v2078_v49 = vpop.eup %2077 }
 0x5a1   :  { %v683_v50 = vmul.f32 %v2078_v49, %v2388_v20  ;;  %v2019_v49 = vld [vmem:[%s2654_s8 + $0x28] sm:$0xff]  }
 0x5a2   :  { %1926 = vmatpush3.bf16.msra.mxu0 %v2019_v49 }
 0x5a3   :  { %v689_v53 = vmul.f32 %v1670_v52, %v683_v50  ;;  %v2020_v50 = vld [vmem:[%s2654_s8 + $0x20] sm:$0xff]   ;;  %1927 = vmatprep.subr.bf16.mxu0 %v2093_v2 }
 0x5a4   :  { %v2080_v51 = vpop.eup %2079 }
 0x5a5   :  { %v684_v54 = vmul.f32 %v2080_v51, %v2393_v25  ;;  %v2021_v51 = vld [vmem:[%s2654_s8 + $0x18] sm:$0xff]  }
 0x5a6   :  { %1928 = vmatpush3.bf16.msra.mxu0 %v2020_v50 }
 0x5a7   :  { %v690_v55 = vmul.f32 %v1670_v52, %v684_v54  ;;  %1929 = vmatprep.subr.bf16.mxu0 %v2093_v2 }
 0x5a9   :  { %v691_v56 = vpack.c.bf16 %v690_v55, %v689_v53 }
 0x5aa   :  { %1930 = vmatpush3.bf16.msra.mxu0 %v2021_v51 }
 0x5ab   :  { %1894 = vmatmul.mubr.bf16.vlgmr.msra.gmra.mxu1 %v691_v56  ;;  %1931 = vmatprep.subr.bf16.mxu0 %v2093_v2 }
 0x5ac   :  { %1899 = vmatprep.mubr.msk.bf16.mxu1 %vm2095_vm0, %v2093_v2 }
 0x5cd   :  { %v931_v57 = vpop.f32.mrf.mxu0 }
 0x5cf   :  { %v933_v58 = vpop.f32.mrf.mxu0 }
 0x5d1   :  { %v935_v59 = vpop.f32.mrf.mxu0 }
 0x5d2   :  { %v950_v60 = vpack.c.bf16 %v935_v59, %v931_v57 }
 0x5d3   :  { %v937_v61 = vpop.f32.mrf.mxu0 }
 0x5d4   :  { %1898 = vmatpush3.bf16.xpose.msra.mxu1 %v950_v60  ;;  %v952_v13 = vpack.c.bf16 %v937_v61, %v933_v58 }
 0x5d5   :  { %1903 = vmatprep.subr.bf16.mxu1 %v2093_v2  ;;  %v941_v63 = vpop.f32.mrf.mxu0 }
 0x5d7   :  { %v2461_v3 = vpop.f32.mrf.mxu0 }
 0x5d9   :  { %v945_v6 = vpop.f32.mrf.mxu0 }
 0x5da   :  { %v951_v8 = vpack.c.bf16 %v945_v6, %v941_v63  ;;  %v2022_v63 = vld [vmem:[%s2654_s8 + $0x10] sm:$0xff]  }
 0x5db   :  { %v947_v55 = vpop.f32.mrf.mxu0  ;;  %1932 = vmatpush3.bf16.msra.mxu0 %v2022_v63  ;;  %v2061_v63 = vld [vmem:[%s2656_s12 + $0x48] sm:$0xff]  }
 0x5dc   :  { %v953_v58 = vpack.c.bf16 %v947_v55, %v2461_v3  ;;  %1933 = vmatprep.subr.bf16.mxu0 %v2093_v2  ;;  %v2023_v3 = vld [vmem:[%s2654_s8 + $0x8] sm:$0xff]   ;;  %v1705_v55 = vld [vmem:[%s2647_s9 + $0x2] ss:$0 sm:$0xff] }
 0x5df   :  { %1934 = vmatpush3.bf16.msra.mxu0 %v2023_v3  ;;  %v2062_v3 = vld [vmem:[%s2656_s12 + $0x8] sm:$0xff]  }
 0x5e0   :  { %1935 = vmatprep.subr.bf16.mxu0 %v2093_v2 }
 0x66b   :  { %v792_v4 = vpop.f32.mrf.mxu1 }
 0x66c   :  { %v799_v7 = vpack.c.bf16 %v792_v4, %v792_v4  ;;  %v2024_v4 = vld [vmem:[%s2654_s8] sm:$0xff]  }
 0x66d   :  { %v1895_v9 = vpop.f32.mrf.mxu1  ;;  %1936 = vmatpush3.bf16.msra.mxu0 %v2024_v4  ;;  %v2063_v4 = vld [vmem:[%s2656_s12 + $0x40] sm:$0xff]  }
 0x66e   :  { %1900 = vmatmul.mubr.bf16.vlgmr.msra.gmra.mxu1 %v799_v7 }
 0x66f   :  { %1904 = vmatpush3.bf16.xpose.msra.mxu1 %v951_v8  ;;  %v795_v10 = vpop.f32.mrf.mxu1  ;;  %1905 = vmatprep.mubr.msk.bf16.mxu1 %vm2095_vm0, %v2093_v2 }
 0x670   :  { %1909 = vmatprep.subr.bf16.mxu1 %v2093_v2  ;;  %v800_v12 = vpack.c.bf16 %v795_v10, %v795_v10 }
 0x671   :  { %v1896_v11 = vpop.f32.mrf.mxu1 }
 0x676   :  { %1906 = vmatmul.mubr.bf16.vlgmr.msra.gmra.mxu1 %v800_v12 }
 0x677   :  { %1910 = vmatpush3.bf16.msra.mxu1 %v952_v13  ;;  %1911 = vmatprep.mubr.msk.bf16.mxu1 %vm2095_vm0, %v2093_v2 }
 0x678   :  { %1915 = vmatprep.subr.bf16.mxu1 %v2093_v2 }
 0x72e   :  { %v988_v21 = vpop.f32.mrf.mxu1 }
 0x72f   :  { %v1034_v22 = vmul.f32 0.088388346, %v988_v21 }
 0x730   :  { %v1901_v23 = vpop.f32.mrf.mxu1 }
 0x731   :  { %v1048_v26 = vadd.f32 %v1041_v18, %v1034_v22 }
 0x732   :  { %v991_v28 = vpop.f32.mrf.mxu1 }
 0x733   :  { %v1051_v0 = vsel %vm1050_vm4, %v1048_v26, -inf  ;;  %v2036_v28 = vld [vmem:[%s2655_s10 + $0x44] ss:$8 sps:$4 sm:$0xff]  }
 0x734   :  { %1052 = vmax.xlane.f32.xlu0 %v1051_v0  ;;  %v1902_v1 = vpop.f32.mrf.mxu1  ;;  %v2034_v0 = vld [vmem:[%s2655_s10 + $0x40] ss:$8 sps:$4 sm:$0xff]  }
 0x735   :  { %v2039_v1 = vld [vmem:[%s2655_s10 + $0x34] ss:$8 sps:$4 sm:$0xff]  }
 0x736   :  { %v1028_v30 = vpop.f32.mrf.mxu1 }
 0x737   :  { %v1035_v31 = vmul.f32 0.088388346, %v1028_v30  ;;  %v2042_v30 = vld [vmem:[%s2655_s10 + $0x24] ss:$8 sps:$4 sm:$0xff]  }
 0x738   :  { %v1907_v32 = vpop.f32.mrf.mxu1 }
 0x739   :  { %v1049_v33 = vadd.f32 %v1045_v29, %v1035_v31  ;;  %v2037_v29 = vld [vmem:[%s2655_s10 + $0x30] ss:$8 sps:$4 sm:$0xff]   ;;  %v2040_v31 = vld [vmem:[%s2655_s10 + $0x20] ss:$8 sps:$4 sm:$0xff]   ;;  %v2045_v32 = vld [vmem:[%s2655_s10 + $0x14] ss:$8 sps:$4 sm:$0xff]  }
 0x73a   :  { %v1031_v34 = vpop.f32.mrf.mxu1 }
 0x73b   :  { %v1054_v35 = vsel %vm1050_vm4, %v1049_v33, -inf  ;;  %v2048_v34 = vld [vmem:[%s2655_s10 + $0x4] ss:$8 sps:$4 sm:$0xff]  }
 0x73c   :  { %1055 = vmax.xlane.f32.xlu1 %v1054_v35  ;;  %v1908_v36 = vpop.f32.mrf.mxu1  ;;  %v2046_v35 = vld [vmem:[%s2655_s10] ss:$8 sps:$4 sm:$0xff]  }
 0x73d   :  { %v2049_v36 = vld [vmem:[%s2656_s12 + $0x78] sm:$0xff]  }
 0x73e   :  { %1791 = vmatprep.subr.bf16.mxu0 %v2049_v36 }
 0x7bd   :  { %v1053_v37 = vpop.xlane.xlu0 %1052 }
 0x7be   :  { %v1057_v38 = vsub.f32 %v1048_v26, %v1053_v37  ;;  %v2030_v26 = vld [vmem:[%s2655_s10 + $0x64] ss:$8 sps:$4 sm:$0xff]   ;;  %v2050_v37 = vld [vmem:[%s2656_s12 + $0x38] sm:$0xff]  }
 0x7c0   :  { %v1059_v39 = vmul.f32 1.442695, %v1057_v38  ;;  %v2051_v38 = vld [vmem:[%s2656_s12 + $0x70] sm:$0xff]  }
 0x7c2   :  { %2081 = vpow2.f32 %v1059_v39  ;;  %v2052_v39 = vld [vmem:[%s2656_s12 + $0x30] sm:$0xff]  }
 0x7c5   :  { %v1056_v40 = vpop.xlane.xlu1 %1055 }
 0x7c6   :  { %v1058_v41 = vsub.f32 %v1049_v33, %v1056_v40  ;;  %v2043_v33 = vld [vmem:[%s2655_s10 + $0x10] ss:$8 sps:$4 sm:$0xff]   ;;  %v2053_v40 = vld [vmem:[%s2656_s12 + $0x68] sm:$0xff]  }
 0x7c8   :  { %v1061_v42 = vmul.f32 1.442695, %v1058_v41  ;;  %v2054_v41 = vld [vmem:[%s2656_s12 + $0x28] sm:$0xff]  }
 0x7ca   :  { %2083 = vpow2.f32 %v1061_v42  ;;  %v2055_v42 = vld [vmem:[%s2656_s12 + $0x60] sm:$0xff]  }
 0x7cf   :  { %v2082_v43 = vpop.eup %2081 }
 0x7d0   :  { %v1063_v44 = vsel %vm1050_vm4, %v2082_v43, 0.0 }
 0x7d1   :  { %1064 = vadd.xlane.f32.xlu0 %v1063_v44  ;;  %v2057_v44 = vld [vmem:[%s2656_s12 + $0x58] sm:$0xff]  }
 0x7d7   :  { %v2084_v45 = vpop.eup %2083 }
 0x7d8   :  { %v1066_v46 = vsel %vm1050_vm4, %v2084_v45, 0.0 }
 0x7d9   :  { %1067 = vadd.xlane.f32.xlu1 %v1066_v46 }
 0x85a   :  { %v1065_v52 = vpop.xlane.xlu0 %1064 }
 0x85b   :  { %2085 = vrcp.f32 %v1065_v52 }
 0x862   :  { %v1068_v54 = vpop.xlane.xlu1 %1067 }
 0x863   :  { %2087 = vrcp.f32 %v1068_v54 }
 0x868   :  { %v2086_v53 = vpop.eup %2085 }
 0x869   :  { %v1071_v56 = vmul.f32 %v2086_v53, %v2082_v43  ;;  %v2056_v43 = vld [vmem:[%s2656_s12 + $0x20] sm:$0xff]  }
 0x86b   :  { %v1073_v57 = vpack.c.bf16 %v1071_v56, %v1071_v56 }
 0x86d   :  { %1912 = vmatmul.mubr.msk.bf16.vlgmr.msra.gmra.mxu1 %vm1050_vm4, %v1073_v57 }
 0x86e   :  { %1916 = vmatpush3.bf16.msra.mxu1 %v953_v58  ;;  %1917 = vmatprep.mubr.msk.bf16.mxu1 %vm2095_vm0, %v2093_v2  ;;  %v2027_v2 = vld [vmem:[%s2655_s10 + $0x74] ss:$8 sps:$4 sm:$0xff]  }
 0x86f   :  { %1398 = vmatprep.subr.bf16.mxu1 %v2027_v2 }
 0x870   :  { %v2088_v59 = vpop.eup %2087 }
 0x871   :  { %v1072_v60 = vmul.f32 %v2088_v59, %v2084_v45  ;;  %v2058_v45 = vld [vmem:[%s2656_s12 + $0x18] sm:$0xff]  }
 0x873   :  { %v1074_v61 = vpack.c.bf16 %v1072_v60, %v1072_v60  ;;  %v2059_v60 = vld [vmem:[%s2656_s12 + $0x50] sm:$0xff]  }
 0x875   :  { %1918 = vmatmul.mubr.msk.bf16.vlgmr.msra.gmra.mxu1 %vm1050_vm4, %v1074_v61  ;;  %v2060_v61 = vld [vmem:[%s2656_s12 + $0x10] sm:$0xff]  }
 0x876   :  { %1430 = vmatprep.mubr.bf16.mxu1 %v2094_v24  ;;  %1399 = vmatpush1.bf16.msra.mxu1 %v2025_v14 }
 0x877   :  { %1400 = vmatprep.subr.bf16.mxu1 %v2030_v26 }
 0x92d   :  { %v1112_v24 = vpop.f32.mrf.mxu1 }
 0x92f   :  { %v1913_v6 = vpop.f32.mrf.mxu1 }
 0x930   :  { %v1314_v6 = vsub.s32 1, %v2292_v62 }
 0x931   :  { %v1115_v7 = vpop.f32.mrf.mxu1 }
 0x932   :  { %v1306_v7 = vld [vmem:[%s2657_s11] sm:$0x3] }
 0x933   :  { %v1914_v8 = vpop.f32.mrf.mxu1 }
 0x935   :  { %v1155_v9 = vpop.f32.mrf.mxu1 }
 0x936   :  { %v1161_v10 = vpack.c.bf16 %v1155_v9, %v1112_v24  ;;  %v2064_v24 = vld [vmem:[%s2656_s12] sm:$0xff]   ;;  %v1315_v9 = vrot.slane %v1306_v7, %v1314_v6 }
 0x937   :  { %v1919_v11 = vpop.f32.mrf.mxu1 }
 0x938   :  { %1938 = vmatmul.mubr.bf16.vlgmr.msra.gmra.mxu0 %v1161_v10  ;;  %v1311_v10 = vrot.slane %v1306_v7, %v2295_v5  ;;  %v1722_v5 = vld [vmem:[%s2658_s13] ss:$0 sm:$0xff] }
 0x939   :  { %v1158_v12 = vpop.f32.mrf.mxu1  ;;  %1792 = vmatpush3.bf16.msra.mxu0 %v2050_v37 }
 0x93a   :  { %1793 = vmatprep.subr.bf16.mxu0 %v2051_v38 }
 0x93b   :  { %v1920_v13 = vpop.f32.mrf.mxu1 }
 0x93d   :  { %1794 = vmatpush3.bf16.msra.mxu0 %v2052_v39 }
 0x93e   :  { %1795 = vmatprep.subr.bf16.mxu0 %v2053_v40 }
 0x941   :  { %1796 = vmatpush3.bf16.msra.mxu0 %v2054_v41 }
 0x942   :  { %1797 = vmatprep.subr.bf16.mxu0 %v2055_v42 }
 0x945   :  { %1798 = vmatpush3.bf16.msra.mxu0 %v2056_v43 }
 0x946   :  { %1799 = vmatprep.subr.bf16.mxu0 %v2057_v44 }
 0x949   :  { %1800 = vmatpush3.bf16.msra.mxu0 %v2058_v45 }
 0x94a   :  { %1801 = vmatprep.subr.bf16.mxu0 %v2059_v60 }
 0x94d   :  { %1802 = vmatpush3.bf16.msra.mxu0 %v2060_v61 }
 0x94e   :  { %1803 = vmatprep.subr.bf16.mxu0 %v2061_v63 }
 0x951   :  { %1804 = vmatpush3.bf16.msra.mxu0 %v2062_v3 }
 0x952   :  { %1805 = vmatprep.subr.bf16.mxu0 %v2063_v4 }
 0x955   :  { %1806 = vmatpush3.bf16.msra.mxu0 %v2064_v24 }
 0x9f8   :  { %v1260_v15 = vpop.f32.mrf.mxu0 }
 0x9f9   :  { %v2525_v16 = vadd.f32 %v1260_v15, %v2388_v20  ;;  %v2028_v20 = vld [vmem:[%s2655_s10 + $0x60] ss:$8 sps:$4 sm:$0xff]  }
 0x9fa   :  { %v1939_v17 = vpop.f32.mrf.mxu0  ;;  %1401 = vmatpush1.bf16.msra.mxu1 %v2028_v20 }
 0x9fb   :  { %v1269_v18 = vmul.f32 %v2525_v16, %v2525_v16 }
 0x9fc   :  { %v1263_v19 = vpop.f32.mrf.mxu0 }
 0x9fd   :  { %v2530_v21 = vadd.f32 %v1263_v19, %v2393_v25  ;;  %1271 = vadd.xlane.f32.xlu0 %v1269_v18  ;;  %v2033_v25 = vld [vmem:[%s2655_s10 + $0x54] ss:$8 sps:$4 sm:$0xff]  }
 0x9fe   :  { %v1940_v22 = vpop.f32.mrf.mxu0  ;;  %1402 = vmatprep.subr.bf16.mxu1 %v2033_v25 }
 0x9ff   :  { %v1270_v23 = vmul.f32 %v2530_v21, %v2530_v21  ;;  %1403 = vmatpush1.bf16.msra.mxu1 %v2031_v27 }
 0xa00   :  { %1404 = vmatprep.subr.bf16.mxu1 %v2036_v28 }
 0xa01   :  { %1273 = vadd.xlane.f32.xlu1 %v1270_v23 }
 0xa03   :  { %1405 = vmatpush1.bf16.msra.mxu1 %v2034_v0 }
 0xa04   :  { %1406 = vmatprep.subr.bf16.mxu1 %v2039_v1 }
 0xa07   :  { %1407 = vmatpush1.bf16.msra.mxu1 %v2037_v29 }
 0xa08   :  { %1408 = vmatprep.subr.bf16.mxu1 %v2042_v30 }
 0xa0b   :  { %1409 = vmatpush1.bf16.msra.mxu1 %v2040_v31 }
 0xa0c   :  { %1410 = vmatprep.subr.bf16.mxu1 %v2045_v32 }
 0xa0f   :  { %1411 = vmatpush1.bf16.msra.mxu1 %v2043_v33 }
 0xa10   :  { %1412 = vmatprep.subr.bf16.mxu1 %v2048_v34 }
 0xa13   :  { %1413 = vmatpush1.bf16.msra.mxu1 %v2046_v35 }
 0xa86   :  { %v1272_v46 = vpop.xlane.xlu0 %1271 }
 0xa87   :  { %v1275_v47 = vmul.f32 0.0078125, %v1272_v46 }
 0xa89   :  { %v1277_v48 = vadd.f32 1e-06, %v1275_v47 }
 0xa8a   :  { %v1274_v49 = vpop.xlane.xlu1 %1273 }
 0xa8b   :  { %2089 = vrsqrt.f32 %v1277_v48  ;;  %v1276_v50 = vmul.f32 0.0078125, %v1274_v49 }
 0xa8d   :  { %v1278_v51 = vadd.f32 1e-06, %v1276_v50 }
 0xa8f   :  { %2091 = vrsqrt.f32 %v1278_v51 }
 0xa98   :  { %v2090_v52 = vpop.eup %2089 }
 0xa99   :  { %v1281_v54 = vmul.f32 %v2090_v52, %v2525_v16 }
 0xa9b   :  { %v1287_v57 = vmul.f32 %v1705_v55, %v1281_v54 }
 0xa9c   :  { %v2092_v53 = vpop.eup %2091 }
 0xa9d   :  { %v1282_v56 = vmul.f32 %v2092_v53, %v2530_v21 }
 0xa9f   :  { %v1288_v58 = vmul.f32 %v1705_v55, %v1282_v56 }
 0xaa1   :  { %v1289_v59 = vpack.c.bf16 %v1288_v58, %v1287_v57 }
 0xaa3   :  { %1431 = vmatmul.mubr.bf16.vlgmr.msra.gmra.mxu1 %v1289_v59 }
 0xb63   :  { %v1432_v8 = vpop.f32.mrf.mxu1 }
 0xb64   :  { %v1433_v2 = vadd.f32 %v1432_v8, %v1311_v10 }
 0xb65   :  { %v1434_v11 = vpop.f32.mrf.mxu1 }
 0xb66   :  { %v1435_v13 = vadd.f32 %v1434_v11, %v1315_v9  ;;  %v1441_v23 = vmax.f32 %v1433_v2, 0.0 }
 0xb67   :  { %v1436_v12 = vpop.f32.mrf.mxu1 }
 0xb68   :  { %v1437_v14 = vadd.f32 %v1436_v12, %v1311_v10  ;;  %v1442_v19 = vmax.f32 %v1435_v13, 0.0 }
 0xb69   :  { %v1438_v15 = vpop.f32.mrf.mxu1 }
 0xb6a   :  { %v1439_v17 = vadd.f32 %v1438_v15, %v1315_v9  ;;  %v1443_v18 = vmax.f32 %v1437_v14, 0.0 }
 0xb6c   :  { %v1444_v22 = vmax.f32 %v1439_v17, 0.0  ;;  %v1445_v26 = vpack.c.bf16 %v1443_v18, %v1441_v23 }
 0xb6e   :  { %v1446_v62 = vpack.c.bf16 %v1444_v22, %v1442_v19 }
 0xb70   :  { %1614 = vmatprep.mubr.bf16.mxu0 %v1446_v62 }
 0xb71   :  { %1615 = vmatmul.mubr.bf16.vlgmr.msra.gmra.mxu0 %v1445_v26 }
 0xc31   :  { %v1807_v20 = vpop.f32.mrf.mxu0 }
 0xc33   :  { %v1808_v25 = vpop.f32.mrf.mxu0 }
 0xc34   :  { %v1809_v27 = vadd.f32 %v1808_v25, %v1807_v20 }
 0xc35   :  { %v1810_v28 = vpop.f32.mrf.mxu0 }
 0xc36   :  { %v1617_v0 = vadd.f32 %v1809_v27, %v1722_v5 }
 0xc37   :  { %v1811_v1 = vpop.f32.mrf.mxu0 }
 0xc38   :  { %v1623_v29 = vadd.f32 %v1617_v0, %v2525_v16  ;;  %v1812_v30 = vadd.f32 %v1811_v1, %v1810_v28 }
 0xc3a   :  { %1625 = vst [vmem:[%s2659_s14] sm:$0xff] %v1623_v29  ;;  %v1620_v31 = vadd.f32 %v1812_v30, %v1722_v5 }
 0xc3c   :  { %v1624_v32 = vadd.f32 %v1620_v31, %v2530_v21 }
 0xc3e   :  { %1626 = vst [vmem:[%s2659_s14 + $0x8] sm:$0xff] %v1624_v32 }

</bundles_post_ra>
